<compile_context>
chip_gen: v5e
topology: v5e:2x2
jax: 0.10.0
libtpu: 0.0.40
codegen_flags: <defaults>
</compile_context>

<pallas_src>
import jax
import jax.numpy as jnp
from jax.experimental import pallas as pl
from jax.experimental.pallas import tpu as pltpu


def _round_up(v, m):
    return ((v + m - 1) // m) * m


def ffann_kernel(x_ref, w1_ref, p_ref, o_ref):
    # x_ref: (tb, D)  w1_ref: (D, H)  p_ref: (3, H)  o_ref: (1, 1, tb)
    # hidden = x @ W1   (one MXU matmul per batch tile, f32 accumulation)
    h = jnp.dot(x_ref[...], w1_ref[...], preferred_element_type=jnp.float32)

    b1 = p_ref[0:1, :]      # [1, H]  hidden-layer bias (broadcast over batch tile)
    w2 = p_ref[1:2, :]      # [1, H]  output-layer weights as a row
    b2 = p_ref[2:3, 0:1]    # [1, 1]  output-layer bias

    a = jnp.tanh(h + b1)    # EUP transcendental, f32 (v5e-safe)

    # out = act @ W2 + b2 as VPU multiply + cross-lane (XLU) reduce; the result
    # is relayed out sublane->lane so the store is a lane-dense (1, tb) row.
    y = jnp.sum(a * w2, axis=-1)            # (tb,)  lane reduce
    y = jnp.reshape(y, (1, -1)) + b2        # (1, tb) lane-dense + bias
    o_ref[...] = y[None].astype(o_ref.dtype)  # (1, 1, tb)


def pack_params(b1, w2, b2):
    """Pack [b1; w2-row; b2] into one [3, H] f32 operand (do once per weight set)."""
    b1 = jnp.asarray(b1, jnp.float32).reshape(1, -1)
    w2 = jnp.asarray(w2, jnp.float32).reshape(1, -1)
    H = b1.shape[1]
    b2_row = jnp.pad(jnp.asarray(b2, jnp.float32).reshape(1, 1), ((0, 0), (0, H - 1)))
    return jnp.concatenate([b1, w2, b2_row], axis=0)   # (3, H)


def ffann_forward(x, w1, p_packed, *, tile_b=None):
    """Fused FFANN forward.

    x        : [B, D_in] f32
    w1       : [D_in, H] f32   (hidden_layer.weight.T)
    p_packed : [3, H]    f32   (pack_params(b1, w2, b2))
    returns [B, 1] f32
    """
    B, D = x.shape
    H = w1.shape[1]

    # Tile selection: one tile for small batches (removes per-step overhead);
    # for large batches, >= 2 tiles of <= 4096 rows (v7x gets both TCs, step
    # overhead amortized, VMEM fine on every generation).  Always a multiple of 8.
    if tile_b is None:
        if B <= 2048:
            tb = _round_up(B, 8)
        else:
            tb = min(4096, _round_up(-(-B // 2), 8))
    else:
        tb = max(8, _round_up(int(tile_b), 8))
        tb = min(tb, _round_up(B, 8))
    nt = pl.cdiv(B, tb)   # partial last block handled by Pallas; no host-side pad

    cost = pl.CostEstimate(
        flops=2 * B * D * H + 4 * B * H,
        transcendentals=B * H,
        bytes_accessed=4 * (B * D + D * H + 3 * H + nt * tb),
    )

    # TODO(synk): if an xprof trace shows exposed x DMA at the chosen tile size,
    # add pipeline_mode=pl.Buffered(3) to the x BlockSpec only.
    out = pl.pallas_call(
        ffann_kernel,
        out_shape=jax.ShapeDtypeStruct((nt, 1, tb), jnp.float32),
        grid=(nt,),
        in_specs=[
            pl.BlockSpec((tb, D), lambda i: (i, 0)),   # x batch tile (D kept at 72; lane pad only in VMEM)
            pl.BlockSpec((D, H), lambda i: (0, 0)),    # W1, resident across the grid
            pl.BlockSpec((3, H), lambda i: (0, 0)),    # packed [b1; w2; b2] params
        ],
        out_specs=pl.BlockSpec((1, 1, tb), lambda i: (i, 0, 0)),  # lane-dense output row per tile
        compiler_params=pltpu.CompilerParams(
            dimension_semantics=("parallel",),          # shard batch tiles across TCs (v7x)
        ),
        cost_estimate=cost,
    )(x.astype(jnp.float32), w1.astype(jnp.float32), p_packed)

    return out.reshape(nt * tb)[:B].reshape(B, 1)


if __name__ == "__main__":
    # Shapes implied by the module's usage: input_size = 72, hidden_layer_size = 32.
    input_size = 72
    hidden_size = 32

    key = jax.random.PRNGKey(0)
    kx, kw1, kb1, kw2, kb2, kx2 = jax.random.split(key, 6)

    # Deterministic synthetic parameters (nn.Linear-shaped, pre-transposed to [in, out]).
    w1 = 0.1 * jax.random.normal(kw1, (input_size, hidden_size), dtype=jnp.float32)
    b1 = 0.1 * jax.random.normal(kb1, (hidden_size,), dtype=jnp.float32)
    w2 = 0.1 * jax.random.normal(kw2, (hidden_size,), dtype=jnp.float32)
    b2 = 0.1 * jax.random.normal(kb2, (), dtype=jnp.float32)

    # Pack the tiny params once per weight set (hoisted out of the forward path).
    p = pack_params(b1, w2, b2)

    def ref(xx):
        return jnp.tanh(xx @ w1 + b1[None, :]) @ w2[:, None] + b2

    # Batch run: single tile (tb >= B), no host-side pad.
    batch = 512
    x = jax.random.normal(kx, (batch, input_size), dtype=jnp.float32)
    y = jax.block_until_ready(ffann_forward(x, w1, p))
    assert y.shape == (batch, 1)
    assert jnp.allclose(y, ref(x), atol=1e-5, rtol=1e-5)

    # Small, non-multiple-of-tile batch exercises the partial-last-block path
    # with a multi-tile grid (2 tiles of 8 rows, last one partial).
    x2 = jax.random.normal(kx2, (13, input_size), dtype=jnp.float32)
    y2 = jax.block_until_ready(ffann_forward(x2, w1, p, tile_b=8))
    assert y2.shape == (13, 1)
    assert jnp.allclose(y2, ref(x2), atol=1e-5, rtol=1e-5)

    print("KERNEL_OK")
</pallas_src>

<mosaic_0001>
module attributes {stable_mosaic.version = 11 : i64} {
  func.func @ffann_kernel(%arg0: i32, %arg1: memref<512x72xf32, #tpu.memory_space<vmem>>, %arg2: memref<72x32xf32, #tpu.memory_space<vmem>>, %arg3: memref<3x32xf32, #tpu.memory_space<vmem>>, %arg4: memref<1x1x512xf32, #tpu.memory_space<vmem>>) attributes {dimension_semantics = [#tpu.dimension_semantics<parallel>], iteration_bounds = array<i64: 1>, scalar_prefetch = 0 : i64, scratch_operands = 0 : i64, tpu.core_type = #tpu.core_type<tc>, window_params = [{transform_indices = @transform_0, window_bounds = array<i64: 512, 72>}, {pipeline_mode = #tpu.pipeline_mode<synchronous>, transform_indices = @transform_1, window_bounds = array<i64: 72, 32>}, {pipeline_mode = #tpu.pipeline_mode<synchronous>, transform_indices = @transform_2, window_bounds = array<i64: 3, 32>}, {transform_indices = @transform_3, window_bounds = array<i64: 1, 1, 512>}]} {
    %c0 = arith.constant 0 : index
    %c0_0 = arith.constant 0 : index
    %0 = vector.load %arg1[%c0, %c0_0] : memref<512x72xf32, #tpu.memory_space<vmem>>, vector<512x72xf32>
    %c0_1 = arith.constant 0 : index
    %c0_2 = arith.constant 0 : index
    %1 = vector.load %arg2[%c0_1, %c0_2] : memref<72x32xf32, #tpu.memory_space<vmem>>, vector<72x32xf32>
    %cst = arith.constant dense<0.000000e+00> : vector<512x32xf32>
    %2 = tpu.matmul %0, %1, %cst {dimension_numbers = #tpu.dot_dimension_numbers<[1], [0], [0], [1], [0, 0, 1, 1], [], []>} : vector<512x72xf32>, vector<72x32xf32>, vector<512x32xf32> -> vector<512x32xf32>
    %c0_3 = arith.constant 0 : index
    %c0_4 = arith.constant 0 : index
    %3 = vector.load %arg3[%c0_3, %c0_4] : memref<3x32xf32, #tpu.memory_space<vmem>>, vector<1x32xf32>
    %c1 = arith.constant 1 : index
    %c0_5 = arith.constant 0 : index
    %4 = vector.load %arg3[%c1, %c0_5] : memref<3x32xf32, #tpu.memory_space<vmem>>, vector<1x32xf32>
    %c2 = arith.constant 2 : index
    %c0_6 = arith.constant 0 : index
    %5 = vector.load %arg3[%c2, %c0_6] : memref<3x32xf32, #tpu.memory_space<vmem>>, vector<1x1xf32>
    %6 = vector.broadcast %3 : vector<1x32xf32> to vector<512x32xf32>
    %7 = arith.addf %2, %6 : vector<512x32xf32>
    %8 = math.tanh %7 : vector<512x32xf32>
    %9 = vector.broadcast %4 : vector<1x32xf32> to vector<512x32xf32>
    %10 = arith.mulf %8, %9 : vector<512x32xf32>
    %cst_7 = arith.constant dense<0.000000e+00> : vector<512xf32>
    %11 = vector.multi_reduction <add>, %10, %cst_7 [1] : vector<512x32xf32> to vector<512xf32>
    %12 = vector.shape_cast %11 : vector<512xf32> to vector<1x512xf32>
    %13 = vector.broadcast %5 : vector<1x1xf32> to vector<1x512xf32>
    %14 = arith.addf %12, %13 : vector<1x512xf32>
    %15 = vector.shape_cast %14 : vector<1x512xf32> to vector<1x1x512xf32>
    %c0_8 = arith.constant 0 : index
    %c0_9 = arith.constant 0 : index
    %c0_10 = arith.constant 0 : index
    %16 = vector.load %arg4[%c0_8, %c0_9, %c0_10] : memref<1x1x512xf32, #tpu.memory_space<vmem>>, vector<1x1x512xf32>
    tpu.vector_store %arg4[%c0_8, %c0_9, %c0_10], %15 {strides = array<i32>} : memref<1x1x512xf32, #tpu.memory_space<vmem>>, vector<1x1x512xf32>,
    return
  }
  func.func @transform_0(%arg0: i32) -> (i32, i32) {
    %c0_i32 = arith.constant 0 : i32
    %c0_i32_0 = arith.constant 0 : i32
    return %arg0, %c0_i32 : i32, i32
  }
  func.func @transform_1(%arg0: i32) -> (i32, i32) {
    %c0_i32 = arith.constant 0 : i32
    %c0_i32_0 = arith.constant 0 : i32
    %c0_i32_1 = arith.constant 0 : i32
    return %c0_i32, %c0_i32_0 : i32, i32
  }
  func.func @transform_2(%arg0: i32) -> (i32, i32) {
    %c0_i32 = arith.constant 0 : i32
    %c0_i32_0 = arith.constant 0 : i32
    %c0_i32_1 = arith.constant 0 : i32
    return %c0_i32, %c0_i32_0 : i32, i32
  }
  func.func @transform_3(%arg0: i32) -> (i32, i32, i32) {
    %c0_i32 = arith.constant 0 : i32
    %c0_i32_0 = arith.constant 0 : i32
    %c0_i32_1 = arith.constant 0 : i32
    return %arg0, %c0_i32, %c0_i32_0 : i32, i32, i32
  }
}

</mosaic_0001>

<bundles_post_ra>
// kernel: tpu_custom_call.1
= control target key start
LH: loop header
LB: loop body
LE: loop exit
PB: predicated region body
PF: predicated region fallthrough
CT: control target
= control target key end

     0   :  { %s3652_s0 = inlined_call_operand.vmem [shape: f32[512,72], index: 0, kind: input, shape index: {}]   ;;  %s3653_s1 = inlined_call_operand.vmem [shape: f32[72,32], index: 1, kind: input, shape index: {}]   ;;  %s3654_s2 = inlined_call_operand.vmem [shape: f32[3,32], index: 2, kind: input, shape index: {}]   ;;  %s3655_s3 = inlined_call_operand.hbm [shape: f32[1,1,512], index: 3, kind: output, shape index: {}]  }
   0x1   :  { %v87_v0 = vld [vmem:[%s3653_s1 + $0x40] sm:$0xff]  ;;  %v86_v1 = vld [vmem:[%s3653_s1 + $0x38] sm:$0xff]  ;;  %v85_v2 = vld [vmem:[%s3653_s1 + $0x30] sm:$0xff] }
   0x2   :  { %292 = vmatpush.msra.mxu0 %v87_v0  ;;  %2424 = vmatpush.msra.mxu1 %v87_v0  ;;  %v84_v3 = vld [vmem:[%s3653_s1 + $0x28] sm:$0xff] }
   0x3   :  { %2425 = vmatpush.msra.mxu2 %v87_v0  ;;  %2426 = vmatpush.msra.mxu3 %v87_v0 }
   0x4   :  { %293 = vmatpush.msra.mxu0 %v86_v1  ;;  %2427 = vmatpush.msra.mxu1 %v86_v1 }
   0x5   :  { %2428 = vmatpush.msra.mxu2 %v86_v1  ;;  %2429 = vmatpush.msra.mxu3 %v86_v1 }
   0x6   :  { %294 = vmatpush.msra.mxu0 %v85_v2  ;;  %2430 = vmatpush.msra.mxu1 %v85_v2 }
   0x7   :  { %8 = vsyncpa [#allocation3], 0  ;;  %v83_v4 = vld [vmem:[%s3653_s1 + $0x20] sm:$0xff]  ;;  %2431 = vmatpush.msra.mxu2 %v85_v2  ;;  %2432 = vmatpush.msra.mxu3 %v85_v2  ;;  %v82_v5 = vld [vmem:[%s3653_s1 + $0x18] sm:$0xff]  ;;  %vm92_vm0 = vcmask 588800   ;;  %v2614_v29 = vmov 0  }
   0x8   :  { %295 = vmatpush.msra.mxu0 %v84_v3  ;;  %2433 = vmatpush.msra.mxu1 %v84_v3  ;;  %v81_v6 = vld [vmem:[%s3653_s1 + $0x10] sm:$0xff]  ;;  %v80_v7 = vld [vmem:[%s3653_s1 + $0x8] sm:$0xff]  ;;  %v79_v8 = vld [vmem:[%s3653_s1] sm:$0xff]  ;;  %vm623_vm1 = vcmask 261120   ;;  %vm2178_vm2 = vcmask 130112   ;;  %vm2182_vm3 = vcmask 195712  }
   0x9   :  { %2434 = vmatpush.msra.mxu2 %v84_v3  ;;  %2435 = vmatpush.msra.mxu3 %v84_v3  ;;  %v15_v9 = vld [vmem:[%s3652_s0] sm:$0xff]  ;;  %v16_v11 = vld [vmem:[%s3652_s0 + $0x8] sm:$0xff]  ;;  %v17_v13 = vld [vmem:[%s3652_s0 + $0x10] sm:$0xff]  ;;  %vm2186_vm4 = vcmask 261312   ;;  %vm2190_vm5 = vcmask 326912   ;;  %vm2194_vm6 = vcmask 392512  }
   0xa   :  { %296 = vmatpush.msra.mxu0 %v83_v4  ;;  %2436 = vmatpush.msra.mxu1 %v83_v4  ;;  %v31_v10 = vld [vmem:[%s3652_s0 + $0x80] sm:$0xff]  ;;  %v32_v12 = vld [vmem:[%s3652_s0 + $0x88] sm:$0xff]  ;;  %v33_v14 = vld [vmem:[%s3652_s0 + $0x90] sm:$0xff]  ;;  %vm2198_vm7 = vcmask 458112   ;;  %vm2202_vm8 = vcmask 523712   ;;  %vm2206_vm9 = vcmask 589312  }
   0xb   :  { %2437 = vmatpush.msra.mxu2 %v83_v4  ;;  %2438 = vmatpush.msra.mxu3 %v83_v4  ;;  %v18_v15 = vld [vmem:[%s3652_s0 + $0x18] sm:$0xff]  ;;  %v19_v17 = vld [vmem:[%s3652_s0 + $0x20] sm:$0xff]  ;;  %v20_v19 = vld [vmem:[%s3652_s0 + $0x28] sm:$0xff]  ;;  %vm2210_vm10 = vcmask 654912   ;;  %vm2214_vm11 = vcmask 720512   ;;  %vm2218_vm12 = vcmask 786112  }
   0xc   :  { %297 = vmatpush.msra.mxu0 %v82_v5  ;;  %2439 = vmatpush.msra.mxu1 %v82_v5  ;;  %v34_v16 = vld [vmem:[%s3652_s0 + $0x98] sm:$0xff]  ;;  %v35_v18 = vld [vmem:[%s3652_s0 + $0xa0] sm:$0xff]  ;;  %v36_v20 = vld [vmem:[%s3652_s0 + $0xa8] sm:$0xff]  ;;  %vm2222_vm13 = vcmask 851712   ;;  %vm2226_vm14 = vcmask 917312   ;;  %vm2230_vm15 = vcmask 982912  }
   0xd   :  { %2440 = vmatpush.msra.mxu2 %v82_v5  ;;  %2441 = vmatpush.msra.mxu3 %v82_v5  ;;  %v47_v21 = vld [vmem:[%s3652_s0 + $0x100] sm:$0xff]  ;;  %v21_v22 = vld [vmem:[%s3652_s0 + $0x30] sm:$0xff]  ;;  %v48_v24 = vld [vmem:[%s3652_s0 + $0x108] sm:$0xff]  ;;  %s2351_s30 = sshll.u32 %s3655_s3, 4  ;;  %s2352_s30 = int_to_ptr.hbm [resolvable:$true] %s2351_s30 }
   0xe   :  { %298 = vmatpush.msra.mxu0 %v81_v6  ;;  %2442 = vmatpush.msra.mxu1 %v81_v6  ;;  %v37_v23 = vld [vmem:[%s3652_s0 + $0xb0] sm:$0xff]  ;;  %v22_v25 = vld [vmem:[%s3652_s0 + $0x38] sm:$0xff]  ;;  %v90_v28 = vld [vmem:[%s3654_s2 + $0x2] sm:$0x1] }
   0xf   :  { %2443 = vmatpush.msra.mxu2 %v81_v6  ;;  %2444 = vmatpush.msra.mxu3 %v81_v6  ;;  %v38_v26 = vld [vmem:[%s3652_s0 + $0xb8] sm:$0xff]  ;;  %v49_v27 = vld [vmem:[%s3652_s0 + $0x110] sm:$0xff]  ;;  %v23_v30 = vld [vmem:[%s3652_s0 + $0x40] sm:$0xff] }
  0x10   :  { %299 = vmatpush.msra.mxu0 %v80_v7  ;;  %2445 = vmatpush.msra.mxu1 %v80_v7  ;;  %v39_v31 = vld [vmem:[%s3652_s0 + $0xc0] sm:$0xff]  ;;  %v50_v32 = vld [vmem:[%s3652_s0 + $0x118] sm:$0xff]  ;;  %v24_v33 = vld [vmem:[%s3652_s0 + $0x48] sm:$0xff] }
  0x11   :  { %2446 = vmatpush.msra.mxu2 %v80_v7  ;;  %2447 = vmatpush.msra.mxu3 %v80_v7  ;;  %v40_v34 = vld [vmem:[%s3652_s0 + $0xc8] sm:$0xff]  ;;  %v51_v35 = vld [vmem:[%s3652_s0 + $0x120] sm:$0xff]  ;;  %v25_v36 = vld [vmem:[%s3652_s0 + $0x50] sm:$0xff] }
  0x12   :  { %300 = vmatpush.msra.mxu0 %v79_v8  ;;  %2448 = vmatpush.msra.mxu1 %v79_v8  ;;  %v41_v37 = vld [vmem:[%s3652_s0 + $0xd0] sm:$0xff]  ;;  %v52_v38 = vld [vmem:[%s3652_s0 + $0x128] sm:$0xff]  ;;  %v63_v39 = vld [vmem:[%s3652_s0 + $0x180] sm:$0xff] }
  0x13   :  { %2360 = vmatmul.msk.f32.vlgmr.msra.gmra.mxu0 %vm92_vm0, %v15_v9  ;;  %2376 = vmatmul.msk.f32.vlgmr.msra.gmra.mxu1 %vm92_vm0, %v31_v10  ;;  %v26_v40 = vld [vmem:[%s3652_s0 + $0x58] sm:$0xff]  ;;  %v53_v42 = vld [vmem:[%s3652_s0 + $0x130] sm:$0xff]  ;;  %v64_v43 = vld [vmem:[%s3652_s0 + $0x188] sm:$0xff] }
  0x14   :  { %2449 = vmatpush.msra.mxu2 %v79_v8  ;;  %2450 = vmatpush.msra.mxu3 %v79_v8  ;;  %v42_v41 = vld [vmem:[%s3652_s0 + $0xd8] sm:$0xff]  ;;  %v27_v44 = vld [vmem:[%s3652_s0 + $0x60] sm:$0xff]  ;;  %v65_v47 = vld [vmem:[%s3652_s0 + $0x190] sm:$0xff] }
  0x15   :  { %2392 = vmatmul.msk.f32.vlgmr.msra.gmra.mxu2 %vm92_vm0, %v47_v21  ;;  %2453 = vset.pattern.permute.xlu0 %v2614_v29  ;;  %v43_v45 = vld [vmem:[%s3652_s0 + $0xe0] sm:$0xff]  ;;  %v54_v46 = vld [vmem:[%s3652_s0 + $0x138] sm:$0xff]  ;;  %v28_v48 = vld [vmem:[%s3652_s0 + $0x68] sm:$0xff] }
  0x16   :  { %818 = vperm.xlu0 %2453, %v90_v28   ;;  %2454 = vset.pattern.permute.xlu1 %v2614_v29  ;;  %v44_v49 = vld [vmem:[%s3652_s0 + $0xe8] sm:$0xff]  ;;  %v55_v50 = vld [vmem:[%s3652_s0 + $0x140] sm:$0xff]  ;;  %v66_v51 = vld [vmem:[%s3652_s0 + $0x198] sm:$0xff] }
  0x17   :  { %2455 = vset.pattern.permute.xlu2 %v2614_v29  ;;  %2408 = vmatmul.msk.f32.vlgmr.msra.gmra.mxu3 %vm92_vm0, %v63_v39  ;;  %v29_v52 = vld [vmem:[%s3652_s0 + $0x70] sm:$0xff]  ;;  %v56_v54 = vld [vmem:[%s3652_s0 + $0x148] sm:$0xff]  ;;  %v67_v55 = vld [vmem:[%s3652_s0 + $0x1a0] sm:$0xff] }
  0x18   :  { %v45_v53 = vld [vmem:[%s3652_s0 + $0xf0] sm:$0xff]  ;;  %v30_v56 = vld [vmem:[%s3652_s0 + $0x78] sm:$0xff]  ;;  %v68_v59 = vld [vmem:[%s3652_s0 + $0x1a8] sm:$0xff] }
  0x19   :  { %v46_v57 = vld [vmem:[%s3652_s0 + $0xf8] sm:$0xff]  ;;  %v57_v58 = vld [vmem:[%s3652_s0 + $0x150] sm:$0xff]  ;;  %v2865_v60 = vld [vmem:[%s3654_s2] ss:$0 sm:$0xff] }
  0x1a   :  { %v58_v0 = vld [vmem:[%s3652_s0 + $0x158] sm:$0xff]  ;;  %v69_v1 = vld [vmem:[%s3652_s0 + $0x1b0] sm:$0xff]  ;;  %v2881_v2 = vld [vmem:[%s3654_s2 + $0x1] ss:$0 sm:$0xff] }
  0x1b   :  { %2361 = vmatmul.msk.f32.gmra.mxu0 %vm92_vm0, %v16_v11  ;;  %2377 = vmatmul.msk.f32.gmra.mxu1 %vm92_vm0, %v32_v12  ;;  %v59_v8 = vld [vmem:[%s3652_s0 + $0x160] sm:$0xff]  ;;  %v70_v9 = vld [vmem:[%s3652_s0 + $0x1b8] sm:$0xff] }
  0x1d   :  { %2393 = vmatmul.msk.f32.gmra.mxu2 %vm92_vm0, %v48_v24  ;;  %v72_v24 = vld [vmem:[%s3652_s0 + $0x1c8] sm:$0xff] }
  0x1f   :  { %2409 = vmatmul.msk.f32.gmra.mxu3 %vm92_vm0, %v64_v43 }
  0x23   :  { %2362 = vmatmul.msk.f32.gmra.mxu0 %vm92_vm0, %v17_v13  ;;  %2378 = vmatmul.msk.f32.gmra.mxu1 %vm92_vm0, %v33_v14 }
  0x25   :  { %2394 = vmatmul.msk.f32.gmra.mxu2 %vm92_vm0, %v49_v27 }
  0x27   :  { %2410 = vmatmul.msk.f32.gmra.mxu3 %vm92_vm0, %v65_v47 }
  0x2b   :  { %2363 = vmatmul.msk.f32.gmra.mxu0 %vm92_vm0, %v18_v15  ;;  %2379 = vmatmul.msk.f32.gmra.mxu1 %vm92_vm0, %v34_v16  ;;  %v60_v16 = vld [vmem:[%s3652_s0 + $0x168] sm:$0xff] }
  0x2d   :  { %2395 = vmatmul.msk.f32.gmra.mxu2 %vm92_vm0, %v50_v32 }
  0x2f   :  { %2411 = vmatmul.msk.f32.gmra.mxu3 %vm92_vm0, %v66_v51 }
  0x33   :  { %2364 = vmatmul.msk.f32.gmra.mxu0 %vm92_vm0, %v19_v17  ;;  %2380 = vmatmul.msk.f32.gmra.mxu1 %vm92_vm0, %v35_v18  ;;  %v71_v17 = vld [vmem:[%s3652_s0 + $0x1c0] sm:$0xff] }
  0x35   :  { %2396 = vmatmul.msk.f32.gmra.mxu2 %vm92_vm0, %v51_v35 }
  0x37   :  { %2412 = vmatmul.msk.f32.gmra.mxu3 %vm92_vm0, %v67_v55 }
  0x3b   :  { %2365 = vmatmul.msk.f32.gmra.mxu0 %vm92_vm0, %v20_v19  ;;  %2381 = vmatmul.msk.f32.gmra.mxu1 %vm92_vm0, %v36_v20 }
  0x3d   :  { %2397 = vmatmul.msk.f32.gmra.mxu2 %vm92_vm0, %v52_v38  ;;  %v74_v38 = vld [vmem:[%s3652_s0 + $0x1d8] sm:$0xff] }
  0x3f   :  { %2413 = vmatmul.msk.f32.gmra.mxu3 %vm92_vm0, %v68_v59 }
  0x43   :  { %2366 = vmatmul.msk.f32.gmra.mxu0 %vm92_vm0, %v21_v22  ;;  %2382 = vmatmul.msk.f32.gmra.mxu1 %vm92_vm0, %v37_v23  ;;  %v61_v23 = vld [vmem:[%s3652_s0 + $0x170] sm:$0xff] }
  0x45   :  { %2398 = vmatmul.msk.f32.gmra.mxu2 %vm92_vm0, %v53_v42 }
  0x47   :  { %2414 = vmatmul.msk.f32.gmra.mxu3 %vm92_vm0, %v69_v1 }
  0x4b   :  { %2367 = vmatmul.msk.f32.gmra.mxu0 %vm92_vm0, %v22_v25  ;;  %2383 = vmatmul.msk.f32.gmra.mxu1 %vm92_vm0, %v38_v26 }
  0x4d   :  { %2399 = vmatmul.msk.f32.gmra.mxu2 %vm92_vm0, %v54_v46 }
  0x4f   :  { %2415 = vmatmul.msk.f32.gmra.mxu3 %vm92_vm0, %v70_v9 }
  0x53   :  { %2368 = vmatmul.msk.f32.gmra.mxu0 %vm92_vm0, %v23_v30  ;;  %2384 = vmatmul.msk.f32.gmra.mxu1 %vm92_vm0, %v39_v31  ;;  %v73_v31 = vld [vmem:[%s3652_s0 + $0x1d0] sm:$0xff] }
  0x55   :  { %2400 = vmatmul.msk.f32.gmra.mxu2 %vm92_vm0, %v55_v50 }
  0x57   :  { %2416 = vmatmul.msk.f32.gmra.mxu3 %vm92_vm0, %v71_v17 }
  0x5b   :  { %2369 = vmatmul.msk.f32.gmra.mxu0 %vm92_vm0, %v24_v33  ;;  %2385 = vmatmul.msk.f32.gmra.mxu1 %vm92_vm0, %v40_v34 }
  0x5d   :  { %2401 = vmatmul.msk.f32.gmra.mxu2 %vm92_vm0, %v56_v54 }
  0x5f   :  { %2417 = vmatmul.msk.f32.gmra.mxu3 %vm92_vm0, %v72_v24 }
  0x63   :  { %2370 = vmatmul.msk.f32.gmra.mxu0 %vm92_vm0, %v25_v36  ;;  %2386 = vmatmul.msk.f32.gmra.mxu1 %vm92_vm0, %v41_v37 }
  0x65   :  { %2402 = vmatmul.msk.f32.gmra.mxu2 %vm92_vm0, %v57_v58  ;;  %v77_v58 = vld [vmem:[%s3652_s0 + $0x1f0] sm:$0xff] }
  0x67   :  { %2418 = vmatmul.msk.f32.gmra.mxu3 %vm92_vm0, %v73_v31 }
  0x6b   :  { %2371 = vmatmul.msk.f32.gmra.mxu0 %vm92_vm0, %v26_v40  ;;  %2387 = vmatmul.msk.f32.gmra.mxu1 %vm92_vm0, %v42_v41 }
  0x6d   :  { %2403 = vmatmul.msk.f32.gmra.mxu2 %vm92_vm0, %v58_v0 }
  0x6f   :  { %2419 = vmatmul.msk.f32.gmra.mxu3 %vm92_vm0, %v74_v38 }
  0x73   :  { %2372 = vmatmul.msk.f32.gmra.mxu0 %vm92_vm0, %v27_v44  ;;  %2388 = vmatmul.msk.f32.gmra.mxu1 %vm92_vm0, %v43_v45  ;;  %v75_v45 = vld [vmem:[%s3652_s0 + $0x1e0] sm:$0xff] }
  0x75   :  { %2404 = vmatmul.msk.f32.gmra.mxu2 %vm92_vm0, %v59_v8 }
  0x77   :  { %2420 = vmatmul.msk.f32.gmra.mxu3 %vm92_vm0, %v75_v45 }
  0x7b   :  { %2373 = vmatmul.msk.f32.gmra.mxu0 %vm92_vm0, %v28_v48  ;;  %2389 = vmatmul.msk.f32.gmra.mxu1 %vm92_vm0, %v44_v49 }
  0x7d   :  { %2405 = vmatmul.msk.f32.gmra.mxu2 %vm92_vm0, %v60_v16 }
  0x83   :  { %2374 = vmatmul.msk.f32.gmra.mxu0 %vm92_vm0, %v29_v52  ;;  %2390 = vmatmul.msk.f32.gmra.mxu1 %vm92_vm0, %v45_v53  ;;  %v76_v52 = vld [vmem:[%s3652_s0 + $0x1e8] sm:$0xff] }
  0x84   :  { %2421 = vmatmul.msk.f32.gmra.mxu3 %vm92_vm0, %v76_v52 }
  0x85   :  { %2406 = vmatmul.msk.f32.gmra.mxu2 %vm92_vm0, %v61_v23 }
  0x8b   :  { %2375 = vmatmul.msk.f32.gmra.mxu0 %vm92_vm0, %v30_v56  ;;  %2391 = vmatmul.msk.f32.gmra.mxu1 %vm92_vm0, %v46_v57 }
  0x8c   :  { %2422 = vmatmul.msk.f32.gmra.mxu3 %vm92_vm0, %v77_v58 }
  0x90   :  { %v302_v61 = vpop.f32.mrf.mxu0  ;;  %v2867_v62 = vpop.f32.mrf.mxu1 }
  0x91   :  { %v303_v63 = vadd.f32 %v2865_v60, %v302_v61 }
  0x93   :  { %2458 = vtanh.f32 %v303_v63 }
  0x98   :  { %v305_v3 = vpop.f32.mrf.mxu0  ;;  %v2884_v6 = vpop.f32.mrf.mxu1 }
  0x99   :  { %v2459_v4 = vpop.eup %2458  ;;  %v306_v5 = vadd.f32 %v2865_v60, %v305_v3 }
  0x9a   :  { %v559_v7 = vmul.f32 %v2459_v4, %v2881_v2  ;;  %v62_v4 = vld [vmem:[%s3652_s0 + $0x178] sm:$0xff] }
  0x9b   :  { %2460 = vtanh.f32 %v306_v5  ;;  %2407 = vmatmul.msk.f32.gmra.mxu2 %vm92_vm0, %v62_v4 }
  0x9c   :  { %v624_v10 = vsel %vm623_vm1, %v559_v7, 0.0 }
  0x9d   :  { %625 = vadd.xlane.f32.xlu0 %v624_v10 }
  0xa0   :  { %v308_v11 = vpop.f32.mrf.mxu0  ;;  %v2898_v15 = vpop.f32.mrf.mxu1 }
  0xa1   :  { %v2461_v12 = vpop.eup %2460  ;;  %v309_v13 = vadd.f32 %v2865_v60, %v308_v11 }
  0xa2   :  { %v560_v14 = vmul.f32 %v2461_v12, %v2881_v2  ;;  %v2976_v12 = vpop.f32.mrf.mxu2 }
  0xa3   :  { %2462 = vtanh.f32 %v309_v13  ;;  %v78_v13 = vld [vmem:[%s3652_s0 + $0x1f8] sm:$0xff] }
  0xa4   :  { %v627_v18 = vsel %vm623_vm1, %v560_v14, 0.0  ;;  %2423 = vmatmul.msk.f32.gmra.mxu3 %vm92_vm0, %v78_v13  ;;  %vm2234_vm0 = vcmask 1048512  }
  0xa5   :  { %628 = vadd.xlane.f32.xlu1 %v627_v18 }
  0xa8   :  { %v311_v19 = vpop.f32.mrf.mxu0  ;;  %v2920_v26 = vpop.f32.mrf.mxu1 }
  0xa9   :  { %v2463_v20 = vpop.eup %2462  ;;  %v312_v21 = vadd.f32 %v2865_v60, %v311_v19 }
  0xaa   :  { %v561_v22 = vmul.f32 %v2463_v20, %v2881_v2 }
  0xab   :  { %2464 = vtanh.f32 %v312_v21 }
  0xac   :  { %v630_v25 = vsel %vm623_vm1, %v561_v22, 0.0  ;;  %v2988_v22 = vpop.f32.mrf.mxu2 }
  0xad   :  { %631 = vadd.xlane.f32.xlu1 %v630_v25 }
  0xb0   :  { %v314_v27 = vpop.f32.mrf.mxu0  ;;  %v2929_v33 = vpop.f32.mrf.mxu1 }
  0xb1   :  { %v2465_v28 = vpop.eup %2464  ;;  %v315_v29 = vadd.f32 %v2865_v60, %v314_v27 }
  0xb2   :  { %v562_v30 = vmul.f32 %v2465_v28, %v2881_v2 }
  0xb3   :  { %2466 = vtanh.f32 %v315_v29 }
  0xb4   :  { %v633_v32 = vsel %vm623_vm1, %v562_v30, 0.0  ;;  %v2995_v30 = vpop.f32.mrf.mxu2 }
  0xb5   :  { %634 = vadd.xlane.f32.xlu2 %v633_v32 }
  0xb8   :  { %v317_v34 = vpop.f32.mrf.mxu0  ;;  %v2939_v43 = vpop.f32.mrf.mxu1 }
  0xb9   :  { %v2467_v35 = vpop.eup %2466  ;;  %v318_v36 = vadd.f32 %v2865_v60, %v317_v34  ;;  %v351_v34 = vadd.f32 %v2865_v60, %v2867_v62 }
  0xba   :  { %v563_v37 = vmul.f32 %v2467_v35, %v2881_v2 }
  0xbb   :  { %2468 = vtanh.f32 %v318_v36 }
  0xbc   :  { %v636_v39 = vsel %vm623_vm1, %v563_v37, 0.0  ;;  %v3008_v62 = vpop.f32.mrf.mxu2 }
  0xbd   :  { %637 = vadd.xlane.f32.xlu2 %v636_v39  ;;  %v354_v39 = vadd.f32 %v2865_v60, %v2884_v6 }
  0xc0   :  { %v320_v40 = vpop.f32.mrf.mxu0  ;;  %v2949_v51 = vpop.f32.mrf.mxu1 }
  0xc1   :  { %v2469_v41 = vpop.eup %2468  ;;  %v321_v42 = vadd.f32 %v2865_v60, %v320_v40 }
  0xc2   :  { %v564_v44 = vmul.f32 %v2469_v41, %v2881_v2 }
  0xc3   :  { %2470 = vtanh.f32 %v321_v42  ;;  %v360_v42 = vadd.f32 %v2865_v60, %v2920_v26  ;;  %v819_v26 = vpop.permute.xlu0 %818 }
  0xc4   :  { %v639_v46 = vsel %vm623_vm1, %v564_v44, 0.0 }
  0xc5   :  { %640 = vadd.xlane.f32.xlu1 %v639_v46 }
  0xc8   :  { %v323_v47 = vpop.f32.mrf.mxu0  ;;  %v2963_v61 = vpop.f32.mrf.mxu1 }
  0xc9   :  { %v2471_v48 = vpop.eup %2470  ;;  %v324_v49 = vadd.f32 %v2865_v60, %v323_v47 }
  0xca   :  { %v565_v50 = vmul.f32 %v2471_v48, %v2881_v2 }
  0xcb   :  { %2472 = vtanh.f32 %v324_v49  ;;  %v363_v49 = vadd.f32 %v2865_v60, %v2929_v33 }
  0xcc   :  { %v642_v53 = vsel %vm623_vm1, %v565_v50, 0.0 }
  0xcd   :  { %643 = vadd.xlane.f32.xlu2 %v642_v53  ;;  %v369_v53 = vadd.f32 %v2865_v60, %v2949_v51 }
  0xd0   :  { %v326_v54 = vpop.f32.mrf.mxu0  ;;  %v2972_v7 = vpop.f32.mrf.mxu1 }
  0xd1   :  { %v2473_v55 = vpop.eup %2472  ;;  %v327_v56 = vadd.f32 %v2865_v60, %v326_v54 }
  0xd2   :  { %v566_v57 = vmul.f32 %v2473_v55, %v2881_v2 }
  0xd3   :  { %2474 = vtanh.f32 %v327_v56  ;;  %v357_v56 = vadd.f32 %v2865_v60, %v2898_v15  ;;  %v3028_v15 = vperm.slane %v819_v26, 0 }
  0xd4   :  { %v645_v59 = vsel %vm623_vm1, %v566_v57, 0.0 }
  0xd5   :  { %646 = vadd.xlane.f32.xlu1 %v645_v59 }
  0xd8   :  { %v329_v63 = vpop.f32.mrf.mxu0  ;;  %v2984_v19 = vpop.f32.mrf.mxu1 }
  0xd9   :  { %v2475_v0 = vpop.eup %2474  ;;  %v330_v1 = vadd.f32 %v2865_v60, %v329_v63  ;;  %v3023_v63 = vpop.f32.mrf.mxu2 }
  0xda   :  { %v567_v3 = vmul.f32 %v2475_v0, %v2881_v2 }
  0xdb   :  { %2476 = vtanh.f32 %v330_v1  ;;  %v372_v1 = vadd.f32 %v2865_v60, %v2963_v61 }
  0xdc   :  { %v648_v5 = vsel %vm623_vm1, %v567_v3, 0.0 }
  0xdd   :  { %649 = vadd.xlane.f32.xlu2 %v648_v5  ;;  %v378_v5 = vadd.f32 %v2865_v60, %v2984_v19 }
  0xe0   :  { %v332_v8 = vpop.f32.mrf.mxu0  ;;  %v2992_v28 = vpop.f32.mrf.mxu1 }
  0xe1   :  { %v2477_v9 = vpop.eup %2476  ;;  %v333_v10 = vadd.f32 %v2865_v60, %v332_v8 }
  0xe2   :  { %v568_v11 = vmul.f32 %v2477_v9, %v2881_v2 }
  0xe3   :  { %2478 = vtanh.f32 %v333_v10 }
  0xe4   :  { %v651_v14 = vsel %vm623_vm1, %v568_v11, 0.0  ;;  %v366_v11 = vadd.f32 %v2865_v60, %v2939_v43 }
  0xe5   :  { %652 = vadd.xlane.f32.xlu1 %v651_v14 }
  0xe8   :  { %v335_v16 = vpop.f32.mrf.mxu0  ;;  %v3002_v38 = vpop.f32.mrf.mxu1 }
  0xe9   :  { %v2479_v17 = vpop.eup %2478  ;;  %v336_v18 = vadd.f32 %v2865_v60, %v335_v16 }
  0xea   :  { %v569_v20 = vmul.f32 %v2479_v17, %v2881_v2 }
  0xeb   :  { %2480 = vtanh.f32 %v336_v18 }
  0xec   :  { %v654_v21 = vsel %vm623_vm1, %v569_v20, 0.0 }
  0xed   :  { %655 = vadd.xlane.f32.xlu2 %v654_v21 }
  0xf0   :  { %v338_v23 = vpop.f32.mrf.mxu0  ;;  %v386_v48 = vpop.f32.mrf.mxu1 }
  0xf1   :  { %v2481_v24 = vpop.eup %2480  ;;  %v339_v25 = vadd.f32 %v2865_v60, %v338_v23 }
  0xf2   :  { %v570_v27 = vmul.f32 %v2481_v24, %v2881_v2  ;;  %v3043_v24 = vpop.f32.mrf.mxu2 }
  0xf3   :  { %2482 = vtanh.f32 %v339_v25 }
  0xf4   :  { %v657_v29 = vsel %vm623_vm1, %v570_v27, 0.0 }
  0xf5   :  { %658 = vadd.xlane.f32.xlu1 %v657_v29 }
  0xf8   :  { %v341_v31 = vpop.f32.mrf.mxu0  ;;  %v3035_v9 = vpop.f32.mrf.mxu1 }
  0xf9   :  { %v2483_v32 = vpop.eup %2482  ;;  %v342_v35 = vadd.f32 %v2865_v60, %v341_v31 }
  0xfa   :  { %v571_v36 = vmul.f32 %v2483_v32, %v2881_v2 }
  0xfb   :  { %2484 = vtanh.f32 %v342_v35  ;;  %v387_v35 = vadd.f32 %v2865_v60, %v386_v48 }
  0xfc   :  { %v660_v37 = vsel %vm623_vm1, %v571_v36, 0.0  ;;  %2486 = vtanh.f32 %v351_v34  ;;  %v381_v34 = vadd.f32 %v2865_v60, %v2992_v28 }
  0xfd   :  { %661 = vadd.xlane.f32.xlu2 %v660_v37 }
 0x100   :  { %v344_v40 = vpop.f32.mrf.mxu0 }
 0x101   :  { %v2485_v41 = vpop.eup %2484  ;;  %v345_v44 = vadd.f32 %v2865_v60, %v344_v40 }
 0x102   :  { %v572_v45 = vmul.f32 %v2485_v41, %v2881_v2  ;;  %v2487_v46 = vpop.eup %2486 }
 0x103   :  { %2488 = vtanh.f32 %v345_v44  ;;  %v575_v6 = vmul.f32 %v2487_v46, %v2881_v2 }
 0x104   :  { %2490 = vtanh.f32 %v354_v39  ;;  %v663_v47 = vsel %vm623_vm1, %v572_v45, 0.0  ;;  %v375_v39 = vadd.f32 %v2865_v60, %v2972_v7  ;;  %v3056_v45 = vpop.f32.mrf.mxu1 }
 0x105   :  { %2492 = vtanh.f32 %v360_v42  ;;  %664 = vadd.xlane.f32.xlu1 %v663_v47  ;;  %v672_v58 = vsel %vm623_vm1, %v575_v6, 0.0  ;;  %v3061_v6 = vpop.f32.mrf.mxu2 }
 0x108   :  { %v347_v50 = vpop.f32.mrf.mxu0 }
 0x109   :  { %v2489_v52 = vpop.eup %2488  ;;  %v348_v54 = vadd.f32 %v2865_v60, %v347_v50 }
 0x10a   :  { %v2491_v55 = vpop.eup %2490  ;;  %v573_v57 = vmul.f32 %v2489_v52, %v2881_v2 }
 0x10b   :  { %v2493_v59 = vpop.eup %2492  ;;  %2494 = vtanh.f32 %v348_v54  ;;  %v576_v51 = vmul.f32 %v2491_v55, %v2881_v2 }
 0x10c   :  { %2496 = vtanh.f32 %v363_v49  ;;  %v666_v33 = vsel %vm623_vm1, %v573_v57, 0.0  ;;  %v578_v0 = vmul.f32 %v2493_v59, %v2881_v2 }
 0x10d   :  { %2498 = vtanh.f32 %v369_v53  ;;  %667 = vadd.xlane.f32.xlu2 %v666_v33  ;;  %673 = vadd.xlane.f32.xlu1 %v672_v58  ;;  %v675_v13 = vsel %vm623_vm1, %v576_v51, 0.0 }
 0x10e   :  { %2500 = vtanh.f32 %v357_v56  ;;  %v681_v14 = vsel %vm623_vm1, %v578_v0, 0.0  ;;  %v395_v0 = vpop.f32.mrf.mxu1 }
 0x10f   :  { %2502 = vtanh.f32 %v372_v1  ;;  %v384_v1 = vadd.f32 %v2865_v60, %v3002_v38 }
 0x110   :  { %v626_v3 = vpop.xlane.xlu0 %625  ;;  %2504 = vtanh.f32 %v378_v5 }
 0x111   :  { %v2495_v4 = vpop.eup %2494  ;;  %v822_v8 = vadd.f32 %v3028_v15, %v626_v3  ;;  %2506 = vtanh.f32 %v366_v11 }
 0x112   :  { %v2497_v10 = vpop.eup %2496  ;;  %v574_v16 = vmul.f32 %v2495_v4, %v2881_v2  ;;  %2508 = vtanh.f32 %v381_v34 }
 0x113   :  { %v2499_v61 = vpop.eup %2498  ;;  %v950_v17 = vrot.slane %v822_v8, 1  ;;  %v951_v18 = vrot.slane %v822_v8, 2  ;;  %v952_v20 = vrot.slane %v822_v8, 3  ;;  %1398 = vst [vmem:[#allocation1] ss:$9 sm:$0xff] %v822_v8  ;;  %v953_v21 = vrot.slane %v822_v8, 4 }
 0x114   :  { %v2501_v19 = vpop.eup %2500  ;;  %v669_v23 = vsel %vm623_vm1, %v574_v16, 0.0  ;;  %v954_v43 = vrot.slane %v822_v8, 5  ;;  %v955_v25 = vrot.slane %v822_v8, 6  ;;  %v579_v27 = vmul.f32 %v2497_v10, %v2881_v2 }
 0x115   :  { %1400 = vst [vmem:[#allocation1 + $0x1] ss:$9 sm:$0xff] %v950_v17  ;;  %676 = vadd.xlane.f32.xlu2 %v675_v13  ;;  %682 = vadd.xlane.f32.xlu1 %v681_v14  ;;  %v581_v29 = vmul.f32 %v2499_v61, %v2881_v2  ;;  %v956_v31 = vrot.slane %v822_v8, 7  ;;  %v577_v32 = vmul.f32 %v2501_v19, %v2881_v2  ;;  %v2503_v37 = vpop.eup %2502  ;;  %2510 = vtanh.f32 %v387_v35  ;;  %v3077_v14 = vpop.f32.mrf.mxu2 }
 0x116   :  { %1402 = vst [vmem:[#allocation1 + $0x2] ss:$9 sm:$0xff] %v951_v18  ;;  %670 = vadd.xlane.f32.xlu0 %v669_v23  ;;  %v684_v40 = vsel %vm623_vm1, %v579_v27, 0.0  ;;  %v2505_v42 = vpop.eup %2504  ;;  %2512 = vtanh.f32 %v375_v39  ;;  %v582_v7 = vmul.f32 %v2503_v37, %v2881_v2  ;;  %v390_v8 = vadd.f32 %v2865_v60, %v3035_v9  ;;  %v3083_v17 = vpop.f32.mrf.mxu3 }
 0x117   :  { %1404 = vst [vmem:[#allocation1 + $0x3] ss:$9 sm:$0xff] %v952_v20  ;;  %v690_v41 = vsel %vm623_vm1, %v581_v29, 0.0  ;;  %v678_v44 = vsel %vm623_vm1, %v577_v32, 0.0  ;;  %v2507_v28 = vpop.eup %2506  ;;  %v584_v47 = vmul.f32 %v2505_v42, %v2881_v2  ;;  %v396_v13 = vadd.f32 %v2865_v60, %v395_v0 }
 0x118   :  { %1406 = vst [vmem:[#allocation1 + $0x4] ss:$9 sm:$0xff] %v953_v21  ;;  %v629_v36 = vpop.xlane.xlu1 %628  ;;  %v580_v48 = vmul.f32 %v2507_v28, %v2881_v2  ;;  %v2509_v50 = vpop.eup %2508  ;;  %v693_v54 = vsel %vm623_vm1, %v582_v7, 0.0  ;;  %2514 = vtanh.f32 %v384_v1  ;;  %v399_v32 = vadd.f32 %v2865_v60, %v2976_v12 }
 0x119   :  { %1408 = vst [vmem:[#allocation1 + $0x5] ss:$9 sm:$0xff] %v954_v43  ;;  %v823_v46 = vadd.f32 %v3028_v15, %v629_v36  ;;  %v699_v55 = vsel %vm623_vm1, %v584_v47, 0.0  ;;  %v585_v4 = vmul.f32 %v2509_v50, %v2881_v2  ;;  %2516 = vtanh.f32 %v390_v8 }
 0x11a   :  { %1410 = vst [vmem:[#allocation1 + $0x6] ss:$9 sm:$0xff] %v955_v25  ;;  %v687_v58 = vsel %vm623_vm1, %v580_v48, 0.0  ;;  %2518 = vtanh.f32 %v396_v13  ;;  %v405_v36 = vadd.f32 %v2865_v60, %v2995_v30  ;;  %v408_v0 = vadd.f32 %v2865_v60, %v3008_v62 }
 0x11b   :  { %1412 = vst [vmem:[#allocation1 + $0x7] ss:$9 sm:$0xff] %v956_v31  ;;  %v957_v49 = vrot.slane %v823_v46, 1  ;;  %v958_v26 = vrot.slane %v823_v46, 2  ;;  %v959_v53 = vrot.slane %v823_v46, 3  ;;  %v2511_v56 = vpop.eup %2510  ;;  %v960_v57 = vrot.slane %v823_v46, 4 }
 0x11c   :  { %v2513_v59 = vpop.eup %2512  ;;  %v961_v33 = vrot.slane %v823_v46, 5  ;;  %v962_v51 = vrot.slane %v823_v46, 6  ;;  %v963_v3 = vrot.slane %v823_v46, 7  ;;  %v587_v5 = vmul.f32 %v2511_v56, %v2881_v2 }
 0x11d   :  { %685 = vadd.xlane.f32.xlu2 %v684_v40  ;;  %691 = vadd.xlane.f32.xlu1 %v690_v41  ;;  %v583_v10 = vmul.f32 %v2513_v59, %v2881_v2  ;;  %v702_v38 = vsel %vm623_vm1, %v585_v4, 0.0  ;;  %v3087_v29 = vpop.f32.mrf.mxu2  ;;  %v393_v41 = vadd.f32 %v2865_v60, %v3056_v45  ;;  %2520 = vtanh.f32 %v399_v32 }
 0x11e   :  { %679 = vadd.xlane.f32.xlu0 %v678_v44  ;;  %v708_v16 = vsel %vm623_vm1, %v587_v5, 0.0  ;;  %v2515_v20 = vpop.eup %2514  ;;  %v3101_v30 = vpop.f32.mrf.mxu3  ;;  %2522 = vtanh.f32 %v405_v36  ;;  %v423_v36 = vadd.f32 %v2865_v60, %v3087_v29 }
 0x11f   :  { %v696_v9 = vsel %vm623_vm1, %v583_v10, 0.0  ;;  %v2517_v21 = vpop.eup %2516  ;;  %v586_v40 = vmul.f32 %v2515_v20, %v2881_v2  ;;  %2524 = vtanh.f32 %v393_v41 }
 0x120   :  { %v632_v11 = vpop.xlane.xlu1 %631  ;;  %v2519_v25 = vpop.eup %2518  ;;  %v588_v35 = vmul.f32 %v2517_v21, %v2881_v2 }
 0x121   :  { %v824_v61 = vadd.f32 %v3028_v15, %v632_v11  ;;  %v590_v39 = vmul.f32 %v2519_v25, %v2881_v2  ;;  %v705_v28 = vsel %vm623_vm1, %v586_v40, 0.0 }
 0x122   :  { %v3064_v52 = vld [vmem:[#allocation1] sm:$0xff]  ;;  %v711_v42 = vsel %vm623_vm1, %v588_v35, 0.0 }
 0x123   :  { %1414 = vst [vmem:[#allocation1] ss:$9 sm:$0xff] %v823_v46  ;;  %v964_v18 = vrot.slane %v824_v61, 1  ;;  %v965_v19 = vrot.slane %v824_v61, 2  ;;  %v966_v43 = vrot.slane %v824_v61, 3  ;;  %v967_v27 = vrot.slane %v824_v61, 4  ;;  %v2521_v7 = vpop.eup %2520 }
 0x124   :  { %1415 = vst [vmem:[#allocation1 + $0x1] ss:$9 sm:$0xff] %v957_v49  ;;  %v968_v31 = vrot.slane %v824_v61, 5  ;;  %v969_v34 = vrot.slane %v824_v61, 6  ;;  %v970_v37 = vrot.slane %v824_v61, 7  ;;  %v717_v44 = vsel %vm623_vm1, %v590_v39, 0.0  ;;  %v2523_v48 = vpop.eup %2522 }
 0x125   :  { %1416 = vst [vmem:[#allocation1 + $0x2] ss:$9 sm:$0xff] %v958_v26  ;;  %694 = vadd.xlane.f32.xlu2 %v693_v54  ;;  %700 = vadd.xlane.f32.xlu1 %v699_v55  ;;  %v3104_v46 = vpop.f32.mrf.mxu2  ;;  %v2525_v26 = vpop.eup %2524  ;;  %v402_v55 = vadd.f32 %v2865_v60, %v2988_v22  ;;  %v591_v59 = vmul.f32 %v2521_v7, %v2881_v2 }
 0x126   :  { %1417 = vst [vmem:[#allocation1 + $0x3] ss:$9 sm:$0xff] %v959_v53  ;;  %688 = vadd.xlane.f32.xlu0 %v687_v58  ;;  %v3110_v56 = vpop.f32.mrf.mxu3  ;;  %v414_v22 = vadd.f32 %v2865_v60, %v3043_v24 }
 0x127   :  { %1418 = vst [vmem:[#allocation1 + $0x4] ss:$9 sm:$0xff] %v960_v57  ;;  %2526 = vtanh.f32 %v402_v55 }
 0x128   :  { %1419 = vst [vmem:[#allocation1 + $0x5] ss:$9 sm:$0xff] %v961_v33  ;;  %v635_v12 = vpop.xlane.xlu2 %634  ;;  %v593_v33 = vmul.f32 %v2523_v48, %v2881_v2  ;;  %2528 = vtanh.f32 %v408_v0 }
 0x129   :  { %1420 = vst [vmem:[#allocation1 + $0x6] ss:$9 sm:$0xff] %v962_v51  ;;  %v825_v45 = vadd.f32 %v3028_v15, %v635_v12  ;;  %v589_v51 = vmul.f32 %v2525_v26, %v2881_v2  ;;  %2530 = vtanh.f32 %v414_v22 }
 0x12a   :  { %1421 = vst [vmem:[#allocation1 + $0x7] ss:$9 sm:$0xff] %v963_v3  ;;  %v720_v3 = vsel %vm623_vm1, %v591_v59, 0.0  ;;  %v726_v4 = vsel %vm623_vm1, %v593_v33, 0.0  ;;  %v426_v59 = vadd.f32 %v2865_v60, %v3104_v46 }
 0x12b   :  { %v971_v47 = vrot.slane %v825_v45, 1  ;;  %v972_v49 = vrot.slane %v825_v45, 2  ;;  %v973_v53 = vrot.slane %v825_v45, 3  ;;  %v974_v54 = vrot.slane %v825_v45, 4 }
 0x12c   :  { %v975_v57 = vrot.slane %v825_v45, 5  ;;  %v976_v58 = vrot.slane %v825_v45, 6  ;;  %v977_v1 = vrot.slane %v825_v45, 7  ;;  %v714_v5 = vsel %vm623_vm1, %v589_v51, 0.0 }
 0x12d   :  { %703 = vadd.xlane.f32.xlu2 %v702_v38  ;;  %709 = vadd.xlane.f32.xlu1 %v708_v16  ;;  %v3122_v10 = vpop.f32.mrf.mxu2  ;;  %v2527_v11 = vpop.eup %2526 }
 0x12e   :  { %697 = vadd.xlane.f32.xlu0 %v696_v9  ;;  %v3125_v24 = vpop.f32.mrf.mxu3  ;;  %v2529_v38 = vpop.eup %2528  ;;  %v592_v32 = vmul.f32 %v2527_v11, %v2881_v2 }
 0x130   :  { %v638_v8 = vpop.xlane.xlu2 %637  ;;  %v723_v39 = vsel %vm623_vm1, %v592_v32, 0.0 }
 0x131   :  { %v3085_v23 = vld [vmem:[#allocation1] sm:$0xff]  ;;  %v826_v62 = vadd.f32 %v3028_v15, %v638_v8 }
 0x132   :  { %1423 = vst [vmem:[#allocation1] ss:$9 sm:$0xff] %v824_v61  ;;  %v2531_v61 = vpop.eup %2530 }
 0x133   :  { %1424 = vst [vmem:[#allocation1 + $0x1] ss:$9 sm:$0xff] %v964_v18  ;;  %v978_v13 = vrot.slane %v826_v62, 1  ;;  %v979_v16 = vrot.slane %v826_v62, 2  ;;  %v980_v18 = vrot.slane %v826_v62, 3  ;;  %v981_v20 = vrot.slane %v826_v62, 4 }
 0x134   :  { %1425 = vst [vmem:[#allocation1 + $0x2] ss:$9 sm:$0xff] %v965_v19  ;;  %v411_v19 = vadd.f32 %v2865_v60, %v3023_v63  ;;  %v982_v21 = vrot.slane %v826_v62, 5  ;;  %v983_v25 = vrot.slane %v826_v62, 6  ;;  %v984_v35 = vrot.slane %v826_v62, 7 }
 0x135   :  { %1426 = vst [vmem:[#allocation1 + $0x3] ss:$9 sm:$0xff] %v966_v43  ;;  %712 = vadd.xlane.f32.xlu2 %v711_v42  ;;  %718 = vadd.xlane.f32.xlu1 %v717_v44  ;;  %v431_v43 = vpop.f32.mrf.mxu2 }
 0x136   :  { %1427 = vst [vmem:[#allocation1 + $0x4] ss:$9 sm:$0xff] %v967_v27  ;;  %706 = vadd.xlane.f32.xlu0 %v705_v28  ;;  %v594_v27 = vmul.f32 %v2529_v38, %v2881_v2  ;;  %2532 = vtanh.f32 %v411_v19  ;;  %v3141_v41 = vpop.f32.mrf.mxu3  ;;  %v432_v51 = vadd.f32 %v2865_v60, %v431_v43 }
 0x137   :  { %1428 = vst [vmem:[#allocation1 + $0x5] ss:$9 sm:$0xff] %v968_v31  ;;  %v596_v31 = vmul.f32 %v2531_v61, %v2881_v2 }
 0x138   :  { %1429 = vst [vmem:[#allocation1 + $0x6] ss:$9 sm:$0xff] %v969_v34  ;;  %v417_v34 = vadd.f32 %v2865_v60, %v3061_v6  ;;  %v729_v63 = vsel %vm623_vm1, %v594_v27, 0.0  ;;  %v641_v40 = vpop.xlane.xlu1 %640 }
 0x139   :  { %1430 = vst [vmem:[#allocation1 + $0x7] ss:$9 sm:$0xff] %v970_v37  ;;  %v735_v37 = vsel %vm623_vm1, %v596_v31, 0.0  ;;  %v827_v6 = vadd.f32 %v3028_v15, %v641_v40 }
 0x13a   :  { %2534 = vtanh.f32 %v417_v34 }
 0x13b   :  { %2536 = vtanh.f32 %v423_v36  ;;  %v985_v12 = vrot.slane %v827_v6, 1  ;;  %v986_v28 = vrot.slane %v827_v6, 2  ;;  %v988_v48 = vrot.slane %v827_v6, 4 }
 0x13c   :  { %v2533_v42 = vpop.eup %2532  ;;  %v991_v33 = vrot.slane %v827_v6, 7 }
 0x13d   :  { %721 = vadd.xlane.f32.xlu2 %v720_v3  ;;  %727 = vadd.xlane.f32.xlu1 %v726_v4  ;;  %v434_v29 = vpop.f32.mrf.mxu2 }
 0x13e   :  { %715 = vadd.xlane.f32.xlu0 %v714_v5  ;;  %v3148_v26 = vpop.f32.mrf.mxu3  ;;  %v435_v31 = vadd.f32 %v2865_v60, %v434_v29 }
 0x140   :  { %v3106_v50 = vld [vmem:[#allocation1] sm:$0xff]  ;;  %v2535_v44 = vpop.eup %2534  ;;  %v644_v22 = vpop.xlane.xlu2 %643 }
 0x141   :  { %1432 = vst [vmem:[#allocation1] ss:$9 sm:$0xff] %v825_v45  ;;  %v2537_v45 = vpop.eup %2536  ;;  %v597_v55 = vmul.f32 %v2535_v44, %v2881_v2  ;;  %v828_v46 = vadd.f32 %v3028_v15, %v644_v22 }
 0x142   :  { %1433 = vst [vmem:[#allocation1 + $0x1] ss:$9 sm:$0xff] %v971_v47  ;;  %v987_v47 = vrot.slane %v827_v6, 3 }
 0x143   :  { %1434 = vst [vmem:[#allocation1 + $0x2] ss:$9 sm:$0xff] %v972_v49  ;;  %v420_v49 = vadd.f32 %v2865_v60, %v3077_v14  ;;  %v738_v14 = vsel %vm623_vm1, %v597_v55, 0.0  ;;  %v992_v8 = vrot.slane %v828_v46, 1  ;;  %v993_v11 = vrot.slane %v828_v46, 2 }
 0x144   :  { %1435 = vst [vmem:[#allocation1 + $0x3] ss:$9 sm:$0xff] %v973_v53  ;;  %v989_v53 = vrot.slane %v827_v6, 5  ;;  %v995_v61 = vrot.slane %v828_v46, 4  ;;  %v998_v32 = vrot.slane %v828_v46, 7 }
 0x145   :  { %1436 = vst [vmem:[#allocation1 + $0x4] ss:$9 sm:$0xff] %v974_v54  ;;  %730 = vadd.xlane.f32.xlu2 %v729_v63  ;;  %736 = vadd.xlane.f32.xlu1 %v735_v37  ;;  %v990_v54 = vrot.slane %v827_v6, 6  ;;  %2538 = vtanh.f32 %v420_v49  ;;  %v3159_v3 = vpop.f32.mrf.mxu2 }
 0x146   :  { %1437 = vst [vmem:[#allocation1 + $0x5] ss:$9 sm:$0xff] %v975_v57  ;;  %724 = vadd.xlane.f32.xlu0 %v723_v39  ;;  %v599_v57 = vmul.f32 %v2537_v45, %v2881_v2  ;;  %2540 = vtanh.f32 %v426_v59  ;;  %v3162_v4 = vpop.f32.mrf.mxu3 }
 0x147   :  { %1438 = vst [vmem:[#allocation1 + $0x6] ss:$9 sm:$0xff] %v976_v58  ;;  %v595_v58 = vmul.f32 %v2533_v42, %v2881_v2  ;;  %2542 = vtanh.f32 %v432_v51 }
 0x148   :  { %1439 = vst [vmem:[#allocation1 + $0x7] ss:$9 sm:$0xff] %v977_v1  ;;  %v744_v0 = vsel %vm623_vm1, %v599_v57, 0.0  ;;  %v647_v63 = vpop.xlane.xlu1 %646 }
 0x149   :  { %v732_v1 = vsel %vm623_vm1, %v595_v58, 0.0  ;;  %v829_v39 = vadd.f32 %v3028_v15, %v647_v63  ;;  %v453_v58 = vadd.f32 %v2865_v60, %v3110_v56 }
 0x14b   :  { %v2539_v5 = vpop.eup %2538  ;;  %v1000_v42 = vrot.slane %v829_v39, 2  ;;  %v1002_v45 = vrot.slane %v829_v39, 4  ;;  %v1003_v49 = vrot.slane %v829_v39, 5  ;;  %v1005_v59 = vrot.slane %v829_v39, 7 }
 0x14c   :  { %v598_v27 = vmul.f32 %v2539_v5, %v2881_v2 }
 0x14d   :  { %739 = vadd.xlane.f32.xlu2 %v738_v14  ;;  %745 = vadd.xlane.f32.xlu1 %v744_v0  ;;  %v440_v19 = vpop.f32.mrf.mxu2 }
 0x14e   :  { %733 = vadd.xlane.f32.xlu0 %v732_v1  ;;  %v441_v34 = vadd.f32 %v2865_v60, %v440_v19  ;;  %v741_v36 = vsel %vm623_vm1, %v598_v27, 0.0  ;;  %v3176_v37 = vpop.f32.mrf.mxu3 }
 0x14f   :  { %v3127_v9 = vld [vmem:[#allocation1] sm:$0xff] }
 0x150   :  { %1441 = vst [vmem:[#allocation1] ss:$9 sm:$0xff] %v826_v62  ;;  %v2541_v62 = vpop.eup %2540  ;;  %v650_v0 = vpop.xlane.xlu2 %649 }
 0x151   :  { %1442 = vst [vmem:[#allocation1 + $0x1] ss:$9 sm:$0xff] %v978_v13  ;;  %v2543_v13 = vpop.eup %2542  ;;  %v600_v43 = vmul.f32 %v2541_v62, %v2881_v2 }
 0x152   :  { %1443 = vst [vmem:[#allocation1 + $0x2] ss:$9 sm:$0xff] %v979_v16  ;;  %v994_v16 = vrot.slane %v828_v46, 3 }
 0x153   :  { %1444 = vst [vmem:[#allocation1 + $0x3] ss:$9 sm:$0xff] %v980_v18  ;;  %v429_v18 = vadd.f32 %v2865_v60, %v3122_v10  ;;  %v747_v10 = vsel %vm623_vm1, %v600_v43, 0.0 }
 0x154   :  { %1445 = vst [vmem:[#allocation1 + $0x4] ss:$9 sm:$0xff] %v981_v20  ;;  %v996_v20 = vrot.slane %v828_v46, 5 }
 0x155   :  { %1446 = vst [vmem:[#allocation1 + $0x5] ss:$9 sm:$0xff] %v982_v21  ;;  %v997_v21 = vrot.slane %v828_v46, 6  ;;  %748 = vadd.xlane.f32.xlu2 %v747_v10  ;;  %2544 = vtanh.f32 %v429_v18  ;;  %v3210_v18 = vld [vmem:[%s3654_s2 + $0x1] ss:$0 sm:$0xff] }
 0x156   :  { %1447 = vst [vmem:[#allocation1 + $0x6] ss:$9 sm:$0xff] %v983_v25  ;;  %v602_v25 = vmul.f32 %v2543_v13, %v2881_v2  ;;  %742 = vadd.xlane.f32.xlu0 %v741_v36  ;;  %2546 = vtanh.f32 %v435_v31 }
 0x157   :  { %1448 = vst [vmem:[#allocation1 + $0x7] ss:$9 sm:$0xff] %v984_v35  ;;  %2548 = vtanh.f32 %v441_v34 }
 0x158   :  { %v753_v35 = vsel %vm623_vm1, %v602_v25, 0.0  ;;  %v653_v34 = vpop.xlane.xlu1 %652 }
 0x159   :  { %754 = vadd.xlane.f32.xlu1 %v753_v35 }
 0x15b   :  { %v2545_v40 = vpop.eup %2544 }
 0x15c   :  { %v2547_v29 = vpop.eup %2546  ;;  %v601_v57 = vmul.f32 %v2545_v40, %v2881_v2 }
 0x15e   :  { %v3144_v7 = vld [vmem:[#allocation1] sm:$0xff]  ;;  %v750_v14 = vsel %vm623_vm1, %v601_v57, 0.0 }
 0x15f   :  { %1450 = vst [vmem:[#allocation1] ss:$9 sm:$0xff] %v827_v6  ;;  %v999_v6 = vrot.slane %v829_v39, 1  ;;  %751 = vadd.xlane.f32.xlu0 %v750_v14 }
 0x160   :  { %1451 = vst [vmem:[#allocation1 + $0x1] ss:$9 sm:$0xff] %v985_v12  ;;  %v2549_v12 = vpop.eup %2548 }
 0x161   :  { %1452 = vst [vmem:[#allocation1 + $0x2] ss:$9 sm:$0xff] %v986_v28  ;;  %v1001_v28 = vrot.slane %v829_v39, 3  ;;  %v605_v55 = vmul.f32 %v2549_v12, %v2881_v2 }
 0x162   :  { %1453 = vst [vmem:[#allocation1 + $0x3] ss:$9 sm:$0xff] %v987_v47  ;;  %v450_v47 = vadd.f32 %v2865_v60, %v3101_v30  ;;  %v438_v30 = vadd.f32 %v2865_v60, %v3159_v3 }
 0x163   :  { %1454 = vst [vmem:[#allocation1 + $0x4] ss:$9 sm:$0xff] %v988_v48  ;;  %v3183_v48 = vpop.f32.mrf.mxu3  ;;  %v762_v51 = vsel %vm623_vm1, %v605_v55, 0.0 }
 0x164   :  { %1455 = vst [vmem:[#allocation1 + $0x5] ss:$9 sm:$0xff] %v989_v53  ;;  %v1004_v53 = vrot.slane %v829_v39, 6  ;;  %763 = vadd.xlane.f32.xlu1 %v762_v51  ;;  %2550 = vtanh.f32 %v450_v47 }
 0x165   :  { %1456 = vst [vmem:[#allocation1 + $0x6] ss:$9 sm:$0xff] %v990_v54  ;;  %v603_v54 = vmul.f32 %v2547_v29, %v2881_v2  ;;  %2552 = vtanh.f32 %v453_v58  ;;  %v830_v2 = vadd.f32 %v3028_v15, %v650_v0 }
 0x166   :  { %1457 = vst [vmem:[#allocation1 + $0x7] ss:$9 sm:$0xff] %v991_v33  ;;  %2554 = vtanh.f32 %v438_v30  ;;  %v656_v30 = vpop.xlane.xlu2 %655 }
 0x167   :  { %v756_v33 = vsel %vm623_vm1, %v603_v54, 0.0  ;;  %v1006_v1 = vrot.slane %v830_v2, 1  ;;  %v1007_v3 = vrot.slane %v830_v2, 2  ;;  %v1009_v62 = vrot.slane %v830_v2, 4 }
 0x168   :  { %757 = vadd.xlane.f32.xlu2 %v756_v33  ;;  %v1012_v25 = vrot.slane %v830_v2, 7 }
 0x16a   :  { %v2551_v56 = vpop.eup %2550 }
 0x16b   :  { %v3196_v60 = vpop.f32.mrf.mxu3  ;;  %v2553_v22 = vpop.eup %2552  ;;  %v608_v19 = vmul.f32 %v3210_v18, %v2551_v56 }
 0x16d   :  { %v3164_v38 = vld [vmem:[#allocation1] sm:$0xff]  ;;  %v771_v31 = vsel %vm623_vm1, %v608_v19, 0.0 }
 0x16e   :  { %1459 = vst [vmem:[#allocation1] ss:$9 sm:$0xff] %v828_v46  ;;  %v2555_v46 = vpop.eup %2554  ;;  %772 = vadd.xlane.f32.xlu1 %v771_v31 }
 0x16f   :  { %1460 = vst [vmem:[#allocation1 + $0x1] ss:$9 sm:$0xff] %v992_v8  ;;  %v1008_v8 = vrot.slane %v830_v2, 3 }
 0x170   :  { %1461 = vst [vmem:[#allocation1 + $0x2] ss:$9 sm:$0xff] %v993_v11  ;;  %v3203_v11 = vld [vmem:[%s3654_s2] ss:$0 sm:$0xff]  ;;  %s2615_s2 = smov [#allocation2]  }
 0x171   :  { %1462 = vst [vmem:[#allocation1 + $0x3] ss:$9 sm:$0xff] %v994_v16  ;;  %v447_v13 = vadd.f32 %v3203_v11, %v3083_v17  ;;  %v1010_v16 = vrot.slane %v830_v2, 5  ;;  %v459_v43 = vadd.f32 %v3203_v11, %v3141_v41  ;;  %v462_v17 = vadd.f32 %v3203_v11, %v3148_v26  ;;  %s2349_s27 = sshll.u32 %s2615_s2, 4  ;;  %s2350_s27 = int_to_ptr.vmem [resolvable:$true] %s2349_s27 }
 0x172   :  { %1463 = vst [vmem:[#allocation1 + $0x4] ss:$9 sm:$0xff] %v995_v61  ;;  %v1011_v61 = vrot.slane %v830_v2, 6  ;;  %v831_v41 = vadd.f32 %v3028_v15, %v653_v34  ;;  %v468_v54 = vadd.f32 %v3203_v11, %v3176_v37  ;;  %v471_v57 = vadd.f32 %v3203_v11, %v3183_v48 }
 0x173   :  { %1464 = vst [vmem:[#allocation1 + $0x5] ss:$9 sm:$0xff] %v996_v20  ;;  %v609_v20 = vmul.f32 %v3210_v18, %v2553_v22  ;;  %2556 = vtanh.f32 %v447_v13  ;;  %v476_v10 = vpop.f32.mrf.mxu3  ;;  %v832_v37 = vadd.f32 %v3028_v15, %v656_v30 }
 0x174   :  { %1465 = vst [vmem:[#allocation1 + $0x6] ss:$9 sm:$0xff] %v997_v21  ;;  %v604_v21 = vmul.f32 %v3210_v18, %v2555_v46  ;;  %2558 = vtanh.f32 %v459_v43  ;;  %v1013_v35 = vrot.slane %v831_v41, 1  ;;  %v1014_v63 = vrot.slane %v831_v41, 2 }
 0x175   :  { %1466 = vst [vmem:[#allocation1 + $0x7] ss:$9 sm:$0xff] %v998_v32  ;;  %v774_v27 = vsel %vm623_vm1, %v609_v20, 0.0  ;;  %2560 = vtanh.f32 %v462_v17  ;;  %v1016_v29 = vrot.slane %v831_v41, 4  ;;  %v1017_v12 = vrot.slane %v831_v41, 5 }
 0x176   :  { %v759_v32 = vsel %vm623_vm1, %v604_v21, 0.0  ;;  %775 = vadd.xlane.f32.xlu2 %v774_v27  ;;  %v1019_v55 = vrot.slane %v831_v41, 7  ;;  %v1020_v51 = vrot.slane %v832_v37, 1  ;;  %v1021_v0 = vrot.slane %v832_v37, 2 }
 0x177   :  { %760 = vadd.xlane.f32.xlu0 %v759_v32  ;;  %v1023_v22 = vrot.slane %v832_v37, 4  ;;  %v1024_v46 = vrot.slane %v832_v37, 5  ;;  %v1026_v20 = vrot.slane %v832_v37, 7 }
 0x179   :  { %v2557_v26 = vpop.eup %2556 }
 0x17a   :  { %v2559_v36 = vpop.eup %2558 }
 0x17c   :  { %v3179_v44 = vld [vmem:[#allocation1] sm:$0xff] }
 0x17d   :  { %1468 = vst [vmem:[#allocation1] ss:$9 sm:$0xff] %v829_v39  ;;  %v2561_v39 = vpop.eup %2560 }
 0x17e   :  { %1469 = vst [vmem:[#allocation1 + $0x1] ss:$9 sm:$0xff] %v999_v6  ;;  %v1015_v6 = vrot.slane %v831_v41, 3  ;;  %v612_v47 = vmul.f32 %v3210_v18, %v2561_v39 }
 0x17f   :  { %1470 = vst [vmem:[#allocation1 + $0x2] ss:$9 sm:$0xff] %v1000_v42  ;;  %v456_v42 = vadd.f32 %v3203_v11, %v3125_v24 }
 0x180   :  { %1471 = vst [vmem:[#allocation1 + $0x3] ss:$9 sm:$0xff] %v1001_v28  ;;  %v479_v28 = vpop.f32.mrf.mxu3  ;;  %v783_v24 = vsel %vm623_vm1, %v612_v47, 0.0 }
 0x181   :  { %1472 = vst [vmem:[#allocation1 + $0x4] ss:$9 sm:$0xff] %v1002_v45  ;;  %v1018_v45 = vrot.slane %v831_v41, 6  ;;  %784 = vadd.xlane.f32.xlu2 %v783_v24  ;;  %2562 = vtanh.f32 %v456_v42  ;;  %v480_v19 = vadd.f32 %v3203_v11, %v479_v28 }
 0x182   :  { %1473 = vst [vmem:[#allocation1 + $0x5] ss:$9 sm:$0xff] %v1003_v49  ;;  %v611_v49 = vmul.f32 %v3210_v18, %v2559_v36  ;;  %2564 = vtanh.f32 %v468_v54 }
 0x183   :  { %1474 = vst [vmem:[#allocation1 + $0x6] ss:$9 sm:$0xff] %v1004_v53  ;;  %v607_v53 = vmul.f32 %v3210_v18, %v2557_v26  ;;  %2566 = vtanh.f32 %v471_v57 }
 0x184   :  { %1475 = vst [vmem:[#allocation1 + $0x7] ss:$9 sm:$0xff] %v1005_v59  ;;  %v780_v58 = vsel %vm623_vm1, %v611_v49, 0.0 }
 0x185   :  { %v768_v59 = vsel %vm623_vm1, %v607_v53, 0.0  ;;  %781 = vadd.xlane.f32.xlu1 %v780_v58 }
 0x186   :  { %769 = vadd.xlane.f32.xlu0 %v768_v59 }
 0x187   :  { %v2563_v33 = vpop.eup %2562 }
 0x188   :  { %v3238_v48 = vpop.f32.mrf.mxu3  ;;  %v2565_v14 = vpop.eup %2564 }
 0x189   :  { %v614_v13 = vmul.f32 %v3210_v18, %v2565_v14 }
 0x18b   :  { %v3198_v5 = vld [vmem:[#allocation1] sm:$0xff] }
 0x18c   :  { %1477 = vst [vmem:[#allocation1] ss:$9 sm:$0xff] %v830_v2  ;;  %v2567_v2 = vpop.eup %2566 }
 0x18d   :  { %1478 = vst [vmem:[#allocation1 + $0x1] ss:$9 sm:$0xff] %v1006_v1  ;;  %v1022_v1 = vrot.slane %v832_v37, 3 }
 0x18e   :  { %1479 = vst [vmem:[#allocation1 + $0x2] ss:$9 sm:$0xff] %v1007_v3  ;;  %v465_v3 = vadd.f32 %v3203_v11, %v3162_v4  ;;  %v789_v4 = vsel %vm623_vm1, %v614_v13, 0.0 }
 0x18f   :  { %1480 = vst [vmem:[#allocation1 + $0x3] ss:$9 sm:$0xff] %v1008_v8  ;;  %v1025_v8 = vrot.slane %v832_v37, 6  ;;  %790 = vadd.xlane.f32.xlu1 %v789_v4 }
 0x190   :  { %1481 = vst [vmem:[#allocation1 + $0x4] ss:$9 sm:$0xff] %v1009_v62  ;;  %v615_v62 = vmul.f32 %v3210_v18, %v2567_v2  ;;  %2568 = vtanh.f32 %v465_v3  ;;  %v485_v17 = vpop.f32.mrf.mxu3 }
 0x191   :  { %1482 = vst [vmem:[#allocation1 + $0x5] ss:$9 sm:$0xff] %v1010_v16  ;;  %v610_v16 = vmul.f32 %v3210_v18, %v2563_v33  ;;  %v486_v47 = vadd.f32 %v3203_v11, %v485_v17 }
 0x192   :  { %1483 = vst [vmem:[#allocation1 + $0x6] ss:$9 sm:$0xff] %v1011_v61  ;;  %v477_v61 = vadd.f32 %v3203_v11, %v476_v10  ;;  %v792_v21 = vsel %vm623_vm1, %v615_v62, 0.0 }
 0x193   :  { %1484 = vst [vmem:[#allocation1 + $0x7] ss:$9 sm:$0xff] %v1012_v25  ;;  %v777_v43 = vsel %vm623_vm1, %v610_v16, 0.0  ;;  %v659_v25 = vpop.xlane.xlu1 %658  ;;  %793 = vadd.xlane.f32.xlu2 %v792_v21 }
 0x194   :  { %778 = vadd.xlane.f32.xlu0 %v777_v43  ;;  %2570 = vtanh.f32 %v477_v61  ;;  %v833_v27 = vadd.f32 %v3028_v15, %v659_v25  ;;  %v443_v25 = vpop.f32.mrf.mxu2 }
 0x195   :  { %2572 = vtanh.f32 %v480_v19 }
 0x196   :  { %v2569_v31 = vpop.eup %2568  ;;  %v1027_v32 = vrot.slane %v833_v27, 1  ;;  %v1028_v10 = vrot.slane %v833_v27, 2  ;;  %v1030_v36 = vrot.slane %v833_v27, 4  ;;  %v1031_v39 = vrot.slane %v833_v27, 5 }
 0x197   :  { %v613_v28 = vmul.f32 %v3210_v18, %v2569_v31 }
 0x199   :  { %v786_v54 = vsel %vm623_vm1, %v613_v28, 0.0 }
 0x19a   :  { %v3223_v40 = vld [vmem:[#allocation1] sm:$0xff]  ;;  %v2571_v34 = vpop.eup %2570 }
 0x19b   :  { %1486 = vst [vmem:[#allocation1] ss:$9 sm:$0xff] %v831_v41  ;;  %v2573_v41 = vpop.eup %2572  ;;  %v665_v62 = vpop.xlane.xlu1 %664 }
 0x19c   :  { %1487 = vst [vmem:[#allocation1 + $0x1] ss:$9 sm:$0xff] %v1013_v35  ;;  %v1029_v35 = vrot.slane %v833_v27, 3  ;;  %v618_v42 = vmul.f32 %v3210_v18, %v2573_v41  ;;  %787 = vadd.xlane.f32.xlu0 %v786_v54  ;;  %v835_v61 = vadd.f32 %v3028_v15, %v665_v62 }
 0x19d   :  { %1488 = vst [vmem:[#allocation1 + $0x2] ss:$9 sm:$0xff] %v1014_v63  ;;  %v474_v63 = vadd.f32 %v3203_v11, %v3196_v60 }
 0x19e   :  { %1489 = vst [vmem:[#allocation1 + $0x3] ss:$9 sm:$0xff] %v1015_v6  ;;  %v488_v6 = vpop.f32.mrf.mxu3  ;;  %v801_v60 = vsel %vm623_vm1, %v618_v42, 0.0  ;;  %v1042_v19 = vrot.slane %v835_v61, 2  ;;  %v1043_v4 = vrot.slane %v835_v61, 3  ;;  %v1044_v43 = vrot.slane %v835_v61, 4 }
 0x19f   :  { %1490 = vst [vmem:[#allocation1 + $0x4] ss:$9 sm:$0xff] %v1016_v29  ;;  %v1032_v29 = vrot.slane %v833_v27, 6  ;;  %v489_v49 = vadd.f32 %v3203_v11, %v488_v6  ;;  %802 = vadd.xlane.f32.xlu2 %v801_v60  ;;  %2574 = vtanh.f32 %v474_v63  ;;  %v1045_v17 = vrot.slane %v835_v61, 5 }
 0x1a0   :  { %1491 = vst [vmem:[#allocation1 + $0x5] ss:$9 sm:$0xff] %v1017_v12  ;;  %v617_v12 = vmul.f32 %v3210_v18, %v2571_v34  ;;  %2576 = vtanh.f32 %v486_v47  ;;  %v1046_v31 = vrot.slane %v835_v61, 6  ;;  %v444_v34 = vadd.f32 %v3203_v11, %v443_v25 }
 0x1a1   :  { %1492 = vst [vmem:[#allocation1 + $0x6] ss:$9 sm:$0xff] %v1018_v45  ;;  %v1033_v45 = vrot.slane %v833_v27, 7  ;;  %2578 = vtanh.f32 %v489_v49 }
 0x1a2   :  { %1493 = vst [vmem:[#allocation1 + $0x7] ss:$9 sm:$0xff] %v1019_v55  ;;  %v798_v53 = vsel %vm623_vm1, %v617_v12, 0.0  ;;  %v662_v55 = vpop.xlane.xlu2 %661 }
 0x1a3   :  { %799 = vadd.xlane.f32.xlu1 %v798_v53  ;;  %v834_v57 = vadd.f32 %v3028_v15, %v662_v55  ;;  %v671_v53 = vpop.xlane.xlu0 %670 }
 0x1a4   :  { %v837_v54 = vadd.f32 %v3028_v15, %v671_v53 }
 0x1a5   :  { %v2575_v24 = vpop.eup %2574  ;;  %v1034_v58 = vrot.slane %v834_v57, 1  ;;  %v1035_v30 = vrot.slane %v834_v57, 2  ;;  %v1037_v14 = vrot.slane %v834_v57, 4  ;;  %v1039_v2 = vrot.slane %v834_v57, 6 }
 0x1a6   :  { %v2577_v59 = vpop.eup %2576  ;;  %v616_v3 = vmul.f32 %v3210_v18, %v2575_v24  ;;  %v1056_v55 = vrot.slane %v837_v54, 2  ;;  %v491_v24 = vpop.f32.mrf.mxu3 }
 0x1a8   :  { %v795_v16 = vsel %vm623_vm1, %v616_v3, 0.0 }
 0x1a9   :  { %v3240_v56 = vld [vmem:[#allocation1] sm:$0xff]  ;;  %796 = vadd.xlane.f32.xlu0 %v795_v16 }
 0x1aa   :  { %1495 = vst [vmem:[#allocation1] ss:$9 sm:$0xff] %v832_v37  ;;  %v2579_v37 = vpop.eup %2578 }
 0x1ab   :  { %1496 = vst [vmem:[#allocation1 + $0x1] ss:$9 sm:$0xff] %v1020_v51  ;;  %v1036_v51 = vrot.slane %v834_v57, 3 }
 0x1ac   :  { %1497 = vst [vmem:[#allocation1 + $0x2] ss:$9 sm:$0xff] %v1021_v0  ;;  %v1038_v0 = vrot.slane %v834_v57, 5 }
 0x1ad   :  { %1498 = vst [vmem:[#allocation1 + $0x3] ss:$9 sm:$0xff] %v1022_v1  ;;  %v621_v1 = vmul.f32 %v3210_v18, %v2579_v37  ;;  %v492_v37 = vadd.f32 %v3203_v11, %v491_v24 }
 0x1ae   :  { %1499 = vst [vmem:[#allocation1 + $0x4] ss:$9 sm:$0xff] %v1023_v22  ;;  %v620_v22 = vmul.f32 %v3210_v18, %v2577_v59  ;;  %v1058_v59 = vrot.slane %v837_v54, 4 }
 0x1af   :  { %1500 = vst [vmem:[#allocation1 + $0x5] ss:$9 sm:$0xff] %v1024_v46  ;;  %v1040_v46 = vrot.slane %v834_v57, 7 }
 0x1b0   :  { %1501 = vst [vmem:[#allocation1 + $0x6] ss:$9 sm:$0xff] %v1025_v8  ;;  %v810_v8 = vsel %vm623_vm1, %v621_v1, 0.0  ;;  %v807_v13 = vsel %vm623_vm1, %v620_v22, 0.0 }
 0x1b1   :  { %1502 = vst [vmem:[#allocation1 + $0x7] ss:$9 sm:$0xff] %v1026_v20  ;;  %811 = vadd.xlane.f32.xlu2 %v810_v8  ;;  %808 = vadd.xlane.f32.xlu1 %v807_v13  ;;  %v1041_v20 = vrot.slane %v835_v61, 1 }
 0x1b8   :  { %v3253_v26 = vld [vmem:[#allocation1] sm:$0xff] }
 0x1b9   :  { %1504 = vst [vmem:[#allocation1] ss:$9 sm:$0xff] %v833_v27  ;;  %v483_v27 = vadd.f32 %v3203_v11, %v3238_v48 }
 0x1ba   :  { %1505 = vst [vmem:[#allocation1 + $0x1] ss:$9 sm:$0xff] %v1027_v32  ;;  %v1047_v32 = vrot.slane %v835_v61, 7 }
 0x1bb   :  { %1506 = vst [vmem:[#allocation1 + $0x2] ss:$9 sm:$0xff] %v1028_v10  ;;  %v668_v10 = vpop.xlane.xlu2 %667  ;;  %2580 = vtanh.f32 %v483_v27 }
 0x1bc   :  { %1507 = vst [vmem:[#allocation1 + $0x3] ss:$9 sm:$0xff] %v1029_v35  ;;  %2582 = vtanh.f32 %v444_v34  ;;  %v836_v41 = vadd.f32 %v3028_v15, %v668_v10 }
 0x1bd   :  { %1508 = vst [vmem:[#allocation1 + $0x4] ss:$9 sm:$0xff] %v1030_v36  ;;  %2584 = vtanh.f32 %v492_v37 }
 0x1be   :  { %1509 = vst [vmem:[#allocation1 + $0x5] ss:$9 sm:$0xff] %v1031_v39  ;;  %v1048_v36 = vrot.slane %v836_v41, 1  ;;  %v1049_v39 = vrot.slane %v836_v41, 2  ;;  %v1050_v6 = vrot.slane %v836_v41, 3  ;;  %v1052_v42 = vrot.slane %v836_v41, 5 }
 0x1bf   :  { %1510 = vst [vmem:[#allocation1 + $0x6] ss:$9 sm:$0xff] %v1032_v29  ;;  %v1051_v29 = vrot.slane %v836_v41, 4  ;;  %v1054_v47 = vrot.slane %v836_v41, 7 }
 0x1c0   :  { %1511 = vst [vmem:[#allocation1 + $0x7] ss:$9 sm:$0xff] %v1033_v45  ;;  %v1053_v45 = vrot.slane %v836_v41, 6 }
 0x1c1   :  { %v2581_v35 = vpop.eup %2580 }
 0x1c2   :  { %v2583_v63 = vpop.eup %2582  ;;  %v619_v28 = vmul.f32 %v3210_v18, %v2581_v35 }
 0x1c3   :  { %v606_v12 = vmul.f32 %v3210_v18, %v2583_v63  ;;  %v677_v13 = vpop.xlane.xlu2 %676 }
 0x1c4   :  { %v804_v60 = vsel %vm623_vm1, %v619_v28, 0.0 }
 0x1c5   :  { %v765_v49 = vsel %vm623_vm1, %v606_v12, 0.0  ;;  %805 = vadd.xlane.f32.xlu0 %v804_v60 }
 0x1c6   :  { %766 = vadd.xlane.f32.xlu2 %v765_v49 }
 0x1c7   :  { %v3266_v33 = vld [vmem:[#allocation1] sm:$0xff] }
 0x1c8   :  { %1513 = vst [vmem:[#allocation1] ss:$9 sm:$0xff] %v834_v57 }
 0x1c9   :  { %1514 = vst [vmem:[#allocation1 + $0x1] ss:$9 sm:$0xff] %v1034_v58  ;;  %v1057_v58 = vrot.slane %v837_v54, 3 }
 0x1ca   :  { %1515 = vst [vmem:[#allocation1 + $0x2] ss:$9 sm:$0xff] %v1035_v30  ;;  %1982 = vperm.xlu1 %2454, %v3064_v52   ;;  %v1055_v52 = vrot.slane %v837_v54, 1  ;;  %v1059_v30 = vrot.slane %v837_v54, 5 }
 0x1cb   :  { %1516 = vst [vmem:[#allocation1 + $0x3] ss:$9 sm:$0xff] %v1036_v51  ;;  %v1060_v51 = vrot.slane %v837_v54, 6 }
 0x1cc   :  { %1517 = vst [vmem:[#allocation1 + $0x4] ss:$9 sm:$0xff] %v1037_v14  ;;  %v1061_v14 = vrot.slane %v837_v54, 7 }
 0x1cd   :  { %1518 = vst [vmem:[#allocation1 + $0x5] ss:$9 sm:$0xff] %v1038_v0 }
 0x1ce   :  { %1519 = vst [vmem:[#allocation1 + $0x6] ss:$9 sm:$0xff] %v1039_v2  ;;  %v2585_v2 = vpop.eup %2584 }
 0x1cf   :  { %1520 = vst [vmem:[#allocation1 + $0x7] ss:$9 sm:$0xff] %v1040_v46 }
 0x1d2   :  { %1997 = vperm.xlu1 %2454, %v3164_v38   ;;  %v674_v38 = vpop.xlane.xlu1 %673 }
 0x1d3   :  { %v838_v0 = vadd.f32 %v3028_v15, %v674_v38 }
 0x1d5   :  { %v1062_v11 = vrot.slane %v838_v0, 1  ;;  %v1063_v22 = vrot.slane %v838_v0, 2  ;;  %v1064_v3 = vrot.slane %v838_v0, 3  ;;  %v1065_v46 = vrot.slane %v838_v0, 4 }
 0x1d6   :  { %v3275_v21 = vld [vmem:[#allocation1] sm:$0xff]  ;;  %v1066_v62 = vrot.slane %v838_v0, 5 }
 0x1d7   :  { %1522 = vst [vmem:[#allocation1] ss:$9 sm:$0xff] %v835_v61 }
 0x1d8   :  { %1523 = vst [vmem:[#allocation1 + $0x1] ss:$9 sm:$0xff] %v1041_v20 }
 0x1d9   :  { %1524 = vst [vmem:[#allocation1 + $0x2] ss:$9 sm:$0xff] %v1042_v19 }
 0x1da   :  { %1525 = vst [vmem:[#allocation1 + $0x3] ss:$9 sm:$0xff] %v1043_v4  ;;  %2006 = vperm.xlu1 %2454, %v3223_v40   ;;  %v622_v40 = vmul.f32 %v3210_v18, %v2585_v2  ;;  %v839_v18 = vadd.f32 %v3028_v15, %v677_v13  ;;  %v683_v35 = vpop.xlane.xlu1 %682 }
 0x1db   :  { %1526 = vst [vmem:[#allocation1 + $0x4] ss:$9 sm:$0xff] %v1044_v43 }
 0x1dc   :  { %1527 = vst [vmem:[#allocation1 + $0x5] ss:$9 sm:$0xff] %v1045_v17  ;;  %v813_v8 = vsel %vm623_vm1, %v622_v40, 0.0  ;;  %v1069_v16 = vrot.slane %v839_v18, 1  ;;  %v1070_v20 = vrot.slane %v839_v18, 2  ;;  %v1071_v19 = vrot.slane %v839_v18, 3 }
 0x1dd   :  { %1528 = vst [vmem:[#allocation1 + $0x6] ss:$9 sm:$0xff] %v1046_v31  ;;  %814 = vadd.xlane.f32.xlu0 %v813_v8  ;;  %v1072_v4 = vrot.slane %v839_v18, 4  ;;  %v1073_v43 = vrot.slane %v839_v18, 5  ;;  %v1074_v25 = vrot.slane %v839_v18, 6  ;;  %v1075_v17 = vrot.slane %v839_v18, 7 }
 0x1de   :  { %1529 = vst [vmem:[#allocation1 + $0x7] ss:$9 sm:$0xff] %v1047_v32  ;;  %1985 = vperm.xlu2 %2455, %v3085_v23   ;;  %v1068_v23 = vrot.slane %v838_v0, 7  ;;  %vm2332_vm1 = vcmask 1040384  }
 0x1e2   :  { %2015 = vperm.xlu1 %2454, %v3266_v33   ;;  %v1067_v33 = vrot.slane %v838_v0, 6  ;;  %v692_v38 = vpop.xlane.xlu1 %691 }
 0x1e5   :  { %v3281_v48 = vld [vmem:[#allocation1] sm:$0xff] }
 0x1e6   :  { %1531 = vst [vmem:[#allocation1] ss:$9 sm:$0xff] %v836_v41  ;;  %1994 = vperm.xlu2 %2455, %v3144_v7   ;;  %v680_v7 = vpop.xlane.xlu0 %679 }
 0x1e7   :  { %1532 = vst [vmem:[#allocation1 + $0x1] ss:$9 sm:$0xff] %v1048_v36  ;;  %v841_v36 = vadd.f32 %v3028_v15, %v683_v35 }
 0x1e8   :  { %1533 = vst [vmem:[#allocation1 + $0x2] ss:$9 sm:$0xff] %v1049_v39 }
 0x1e9   :  { %1534 = vst [vmem:[#allocation1 + $0x3] ss:$9 sm:$0xff] %v1050_v6  ;;  %v1083_v63 = vrot.slane %v841_v36, 1  ;;  %v1086_v6 = vrot.slane %v841_v36, 4  ;;  %v1089_v12 = vrot.slane %v841_v36, 7 }
 0x1ea   :  { %1535 = vst [vmem:[#allocation1 + $0x4] ss:$9 sm:$0xff] %v1051_v29  ;;  %v1087_v29 = vrot.slane %v841_v36, 5 }
 0x1eb   :  { %1536 = vst [vmem:[#allocation1 + $0x5] ss:$9 sm:$0xff] %v1052_v42  ;;  %v1088_v42 = vrot.slane %v841_v36, 6 }
 0x1ec   :  { %1537 = vst [vmem:[#allocation1 + $0x6] ss:$9 sm:$0xff] %v1053_v45 }
 0x1ed   :  { %1538 = vst [vmem:[#allocation1 + $0x7] ss:$9 sm:$0xff] %v1054_v47 }
 0x1ee   :  { %2003 = vperm.xlu2 %2455, %v3198_v5   ;;  %v840_v5 = vadd.f32 %v3028_v15, %v680_v7 }
 0x1f0   :  { %v1076_v31 = vrot.slane %v840_v5, 1  ;;  %v1077_v32 = vrot.slane %v840_v5, 2  ;;  %v1078_v34 = vrot.slane %v840_v5, 3  ;;  %v1079_v10 = vrot.slane %v840_v5, 4 }
 0x1f1   :  { %1988 = vperm.xlu0 %2453, %v3106_v50   ;;  %v1080_v41 = vrot.slane %v840_v5, 5  ;;  %v1082_v50 = vrot.slane %v840_v5, 7 }
 0x1f4   :  { %v1539_v57 = vld [vmem:[#allocation1] sm:$0xff] }
 0x1f5   :  { %1540 = vst [vmem:[#allocation1] ss:$9 sm:$0xff] %v837_v54  ;;  %2024 = vperm.xlu1 %2454, %v1539_v57  }
 0x1f6   :  { %1541 = vst [vmem:[#allocation1 + $0x1] ss:$9 sm:$0xff] %v1055_v52  ;;  %2012 = vperm.xlu2 %2455, %v3253_v26   ;;  %v1081_v26 = vrot.slane %v840_v5, 6 }
 0x1f7   :  { %1542 = vst [vmem:[#allocation1 + $0x2] ss:$9 sm:$0xff] %v1056_v55 }
 0x1f8   :  { %1543 = vst [vmem:[#allocation1 + $0x3] ss:$9 sm:$0xff] %v1057_v58 }
 0x1f9   :  { %1544 = vst [vmem:[#allocation1 + $0x4] ss:$9 sm:$0xff] %v1058_v59  ;;  %1991 = vperm.xlu0 %2453, %v3127_v9   ;;  %v1085_v9 = vrot.slane %v841_v36, 3 }
 0x1fa   :  { %1545 = vst [vmem:[#allocation1 + $0x5] ss:$9 sm:$0xff] %v1059_v30 }
 0x1fb   :  { %1546 = vst [vmem:[#allocation1 + $0x6] ss:$9 sm:$0xff] %v1060_v51 }
 0x1fc   :  { %1547 = vst [vmem:[#allocation1 + $0x7] ss:$9 sm:$0xff] %v1061_v14 }
 0x1fe   :  { %2021 = vperm.xlu2 %2455, %v3281_v48   ;;  %v1084_v48 = vrot.slane %v841_v36, 2 }
 0x201   :  { %2000 = vperm.xlu0 %2453, %v3179_v44   ;;  %v686_v44 = vpop.xlane.xlu2 %685 }
 0x202   :  { %v842_v28 = vadd.f32 %v3028_v15, %v686_v44 }
 0x203   :  { %v3295_v1 = vld [vmem:[#allocation1] sm:$0xff] }
 0x204   :  { %1549 = vst [vmem:[#allocation1] ss:$9 sm:$0xff] %v838_v0  ;;  %v1090_v45 = vrot.slane %v842_v28, 1  ;;  %v1091_v49 = vrot.slane %v842_v28, 2  ;;  %v1092_v60 = vrot.slane %v842_v28, 3  ;;  %v1094_v53 = vrot.slane %v842_v28, 5 }
 0x205   :  { %1550 = vst [vmem:[#allocation1 + $0x1] ss:$9 sm:$0xff] %v1062_v11  ;;  %v1095_v54 = vrot.slane %v842_v28, 6  ;;  %v1096_v52 = vrot.slane %v842_v28, 7  ;;  %v844_v0 = vadd.f32 %v3028_v15, %v692_v38 }
 0x206   :  { %1551 = vst [vmem:[#allocation1 + $0x2] ss:$9 sm:$0xff] %v1063_v22 }
 0x207   :  { %1552 = vst [vmem:[#allocation1 + $0x3] ss:$9 sm:$0xff] %v1064_v3  ;;  %v1104_v2 = vrot.slane %v844_v0, 1  ;;  %v1106_v22 = vrot.slane %v844_v0, 3  ;;  %v1107_v40 = vrot.slane %v844_v0, 4  ;;  %v1108_v3 = vrot.slane %v844_v0, 5 }
 0x208   :  { %1553 = vst [vmem:[#allocation1 + $0x4] ss:$9 sm:$0xff] %v1065_v46  ;;  %v1109_v46 = vrot.slane %v844_v0, 6  ;;  %v1110_v8 = vrot.slane %v844_v0, 7 }
 0x209   :  { %1554 = vst [vmem:[#allocation1 + $0x5] ss:$9 sm:$0xff] %v1066_v62  ;;  %2009 = vperm.xlu0 %2453, %v3240_v56   ;;  %v1093_v56 = vrot.slane %v842_v28, 4  ;;  %v695_v62 = vpop.xlane.xlu2 %694 }
 0x20a   :  { %1555 = vst [vmem:[#allocation1 + $0x6] ss:$9 sm:$0xff] %v1067_v33  ;;  %v845_v33 = vadd.f32 %v3028_v15, %v695_v62 }
 0x20b   :  { %1556 = vst [vmem:[#allocation1 + $0x7] ss:$9 sm:$0xff] %v1068_v23 }
 0x20c   :  { %v1111_v23 = vrot.slane %v845_v33, 1 }
 0x211   :  { %2018 = vperm.xlu0 %2453, %v3275_v21   ;;  %v689_v21 = vpop.xlane.xlu0 %688 }
 0x212   :  { %v1557_v61 = vld [vmem:[#allocation1] sm:$0xff]  ;;  %v843_v55 = vadd.f32 %v3028_v15, %v689_v21 }
 0x213   :  { %1558 = vst [vmem:[#allocation1] ss:$9 sm:$0xff] %v839_v18  ;;  %2030 = vperm.xlu2 %2455, %v1557_v61   ;;  %v1112_v18 = vrot.slane %v845_v33, 2  ;;  %v1114_v61 = vrot.slane %v845_v33, 4 }
 0x214   :  { %1559 = vst [vmem:[#allocation1 + $0x1] ss:$9 sm:$0xff] %v1069_v16  ;;  %v1097_v24 = vrot.slane %v843_v55, 1  ;;  %v1098_v58 = vrot.slane %v843_v55, 2  ;;  %v1099_v59 = vrot.slane %v843_v55, 3  ;;  %v1100_v30 = vrot.slane %v843_v55, 4 }
 0x215   :  { %1560 = vst [vmem:[#allocation1 + $0x2] ss:$9 sm:$0xff] %v1070_v20  ;;  %v1101_v37 = vrot.slane %v843_v55, 5  ;;  %v1102_v51 = vrot.slane %v843_v55, 6  ;;  %v1103_v14 = vrot.slane %v843_v55, 7  ;;  %v1113_v16 = vrot.slane %v845_v33, 3 }
 0x216   :  { %1561 = vst [vmem:[#allocation1 + $0x3] ss:$9 sm:$0xff] %v1071_v19  ;;  %v1115_v20 = vrot.slane %v845_v33, 5  ;;  %v1116_v19 = vrot.slane %v845_v33, 6 }
 0x217   :  { %1562 = vst [vmem:[#allocation1 + $0x4] ss:$9 sm:$0xff] %v1072_v4  ;;  %v1117_v4 = vrot.slane %v845_v33, 7 }
 0x218   :  { %1563 = vst [vmem:[#allocation1 + $0x5] ss:$9 sm:$0xff] %v1073_v43 }
 0x219   :  { %1564 = vst [vmem:[#allocation1 + $0x6] ss:$9 sm:$0xff] %v1074_v25  ;;  %2027 = vperm.xlu0 %2453, %v3295_v1   ;;  %v1105_v1 = vrot.slane %v844_v0, 2  ;;  %v698_v43 = vpop.xlane.xlu0 %697 }
 0x21a   :  { %1565 = vst [vmem:[#allocation1 + $0x7] ss:$9 sm:$0xff] %v1075_v17  ;;  %v846_v25 = vadd.f32 %v3028_v15, %v698_v43 }
 0x21c   :  { %v1118_v7 = vrot.slane %v846_v25, 1 }
 0x221   :  { %v1566_v27 = vld [vmem:[#allocation1] sm:$0xff] }
 0x222   :  { %1567 = vst [vmem:[#allocation1] ss:$9 sm:$0xff] %v840_v5  ;;  %2033 = vperm.xlu1 %2454, %v1566_v27   ;;  %v1119_v5 = vrot.slane %v846_v25, 2  ;;  %v1120_v27 = vrot.slane %v846_v25, 3 }
 0x223   :  { %1568 = vst [vmem:[#allocation1 + $0x1] ss:$9 sm:$0xff] %v1076_v31  ;;  %v1121_v31 = vrot.slane %v846_v25, 4 }
 0x224   :  { %1569 = vst [vmem:[#allocation1 + $0x2] ss:$9 sm:$0xff] %v1077_v32  ;;  %v1122_v32 = vrot.slane %v846_v25, 5 }
 0x225   :  { %1570 = vst [vmem:[#allocation1 + $0x3] ss:$9 sm:$0xff] %v1078_v34  ;;  %v1123_v34 = vrot.slane %v846_v25, 6 }
 0x226   :  { %1571 = vst [vmem:[#allocation1 + $0x4] ss:$9 sm:$0xff] %v1079_v10  ;;  %v1124_v10 = vrot.slane %v846_v25, 7 }
 0x227   :  { %1572 = vst [vmem:[#allocation1 + $0x5] ss:$9 sm:$0xff] %v1080_v41  ;;  %v701_v41 = vpop.xlane.xlu1 %700 }
 0x228   :  { %1573 = vst [vmem:[#allocation1 + $0x6] ss:$9 sm:$0xff] %v1081_v26  ;;  %v847_v26 = vadd.f32 %v3028_v15, %v701_v41 }
 0x229   :  { %1574 = vst [vmem:[#allocation1 + $0x7] ss:$9 sm:$0xff] %v1082_v50 }
 0x22a   :  { %v1125_v50 = vrot.slane %v847_v26, 1 }
 0x230   :  { %v1575_v39 = vld [vmem:[#allocation1] sm:$0xff] }
 0x231   :  { %1576 = vst [vmem:[#allocation1] ss:$9 sm:$0xff] %v841_v36  ;;  %2036 = vperm.xlu0 %2453, %v1575_v39   ;;  %v1126_v36 = vrot.slane %v847_v26, 2  ;;  %v1128_v39 = vrot.slane %v847_v26, 4 }
 0x232   :  { %1577 = vst [vmem:[#allocation1 + $0x1] ss:$9 sm:$0xff] %v1083_v63  ;;  %v1127_v63 = vrot.slane %v847_v26, 3 }
 0x233   :  { %1578 = vst [vmem:[#allocation1 + $0x2] ss:$9 sm:$0xff] %v1084_v48  ;;  %v1129_v48 = vrot.slane %v847_v26, 5 }
 0x234   :  { %1579 = vst [vmem:[#allocation1 + $0x3] ss:$9 sm:$0xff] %v1085_v9  ;;  %v1130_v9 = vrot.slane %v847_v26, 6 }
 0x235   :  { %1580 = vst [vmem:[#allocation1 + $0x4] ss:$9 sm:$0xff] %v1086_v6  ;;  %v1131_v6 = vrot.slane %v847_v26, 7 }
 0x236   :  { %1581 = vst [vmem:[#allocation1 + $0x5] ss:$9 sm:$0xff] %v1087_v29  ;;  %v704_v29 = vpop.xlane.xlu2 %703 }
 0x237   :  { %1582 = vst [vmem:[#allocation1 + $0x6] ss:$9 sm:$0xff] %v1088_v42  ;;  %v848_v42 = vadd.f32 %v3028_v15, %v704_v29 }
 0x238   :  { %1583 = vst [vmem:[#allocation1 + $0x7] ss:$9 sm:$0xff] %v1089_v12 }
 0x239   :  { %v1132_v12 = vrot.slane %v848_v42, 1 }
 0x23f   :  { %v1584_v47 = vld [vmem:[#allocation1] sm:$0xff] }
 0x240   :  { %1585 = vst [vmem:[#allocation1] ss:$9 sm:$0xff] %v842_v28  ;;  %2039 = vperm.xlu2 %2455, %v1584_v47   ;;  %v1133_v28 = vrot.slane %v848_v42, 2  ;;  %v1135_v47 = vrot.slane %v848_v42, 4 }
 0x241   :  { %1586 = vst [vmem:[#allocation1 + $0x1] ss:$9 sm:$0xff] %v1090_v45  ;;  %v1134_v45 = vrot.slane %v848_v42, 3 }
 0x242   :  { %1587 = vst [vmem:[#allocation1 + $0x2] ss:$9 sm:$0xff] %v1091_v49  ;;  %v1136_v49 = vrot.slane %v848_v42, 5 }
 0x243   :  { %1588 = vst [vmem:[#allocation1 + $0x3] ss:$9 sm:$0xff] %v1092_v60  ;;  %v1137_v60 = vrot.slane %v848_v42, 6 }
 0x244   :  { %1589 = vst [vmem:[#allocation1 + $0x4] ss:$9 sm:$0xff] %v1093_v56  ;;  %v1138_v56 = vrot.slane %v848_v42, 7 }
 0x245   :  { %1590 = vst [vmem:[#allocation1 + $0x5] ss:$9 sm:$0xff] %v1094_v53  ;;  %v707_v53 = vpop.xlane.xlu0 %706 }
 0x246   :  { %1591 = vst [vmem:[#allocation1 + $0x6] ss:$9 sm:$0xff] %v1095_v54  ;;  %v849_v54 = vadd.f32 %v3028_v15, %v707_v53 }
 0x247   :  { %1592 = vst [vmem:[#allocation1 + $0x7] ss:$9 sm:$0xff] %v1096_v52 }
 0x248   :  { %v1139_v21 = vrot.slane %v849_v54, 1 }
 0x24e   :  { %v1593_v57 = vld [vmem:[#allocation1] sm:$0xff] }
 0x24f   :  { %1594 = vst [vmem:[#allocation1] ss:$9 sm:$0xff] %v843_v55  ;;  %2042 = vperm.xlu1 %2454, %v1593_v57   ;;  %v1140_v55 = vrot.slane %v849_v54, 2  ;;  %v1141_v57 = vrot.slane %v849_v54, 3 }
 0x250   :  { %1595 = vst [vmem:[#allocation1 + $0x1] ss:$9 sm:$0xff] %v1097_v24  ;;  %v1142_v24 = vrot.slane %v849_v54, 4 }
 0x251   :  { %1596 = vst [vmem:[#allocation1 + $0x2] ss:$9 sm:$0xff] %v1098_v58  ;;  %v1143_v58 = vrot.slane %v849_v54, 5 }
 0x252   :  { %1597 = vst [vmem:[#allocation1 + $0x3] ss:$9 sm:$0xff] %v1099_v59  ;;  %v1144_v59 = vrot.slane %v849_v54, 6 }
 0x253   :  { %1598 = vst [vmem:[#allocation1 + $0x4] ss:$9 sm:$0xff] %v1100_v30  ;;  %v1145_v30 = vrot.slane %v849_v54, 7 }
 0x254   :  { %1599 = vst [vmem:[#allocation1 + $0x5] ss:$9 sm:$0xff] %v1101_v37  ;;  %v710_v37 = vpop.xlane.xlu1 %709 }
 0x255   :  { %1600 = vst [vmem:[#allocation1 + $0x6] ss:$9 sm:$0xff] %v1102_v51  ;;  %v850_v51 = vadd.f32 %v3028_v15, %v710_v37 }
 0x256   :  { %1601 = vst [vmem:[#allocation1 + $0x7] ss:$9 sm:$0xff] %v1103_v14 }
 0x257   :  { %v1146_v14 = vrot.slane %v850_v51, 1 }
 0x25d   :  { %v1602_v11 = vld [vmem:[#allocation1] sm:$0xff] }
 0x25e   :  { %1603 = vst [vmem:[#allocation1] ss:$9 sm:$0xff] %v844_v0  ;;  %2045 = vperm.xlu0 %2453, %v1602_v11   ;;  %v1147_v0 = vrot.slane %v850_v51, 2  ;;  %v1149_v11 = vrot.slane %v850_v51, 4 }
 0x25f   :  { %1604 = vst [vmem:[#allocation1 + $0x1] ss:$9 sm:$0xff] %v1104_v2  ;;  %v1148_v2 = vrot.slane %v850_v51, 3 }
 0x260   :  { %1605 = vst [vmem:[#allocation1 + $0x2] ss:$9 sm:$0xff] %v1105_v1  ;;  %v1150_v1 = vrot.slane %v850_v51, 5 }
 0x261   :  { %1606 = vst [vmem:[#allocation1 + $0x3] ss:$9 sm:$0xff] %v1106_v22  ;;  %v1151_v22 = vrot.slane %v850_v51, 6 }
 0x262   :  { %1607 = vst [vmem:[#allocation1 + $0x4] ss:$9 sm:$0xff] %v1107_v40  ;;  %v1152_v40 = vrot.slane %v850_v51, 7 }
 0x263   :  { %1608 = vst [vmem:[#allocation1 + $0x5] ss:$9 sm:$0xff] %v1108_v3  ;;  %v713_v3 = vpop.xlane.xlu2 %712 }
 0x264   :  { %1609 = vst [vmem:[#allocation1 + $0x6] ss:$9 sm:$0xff] %v1109_v46  ;;  %v851_v46 = vadd.f32 %v3028_v15, %v713_v3 }
 0x265   :  { %1610 = vst [vmem:[#allocation1 + $0x7] ss:$9 sm:$0xff] %v1110_v8 }
 0x266   :  { %v1153_v8 = vrot.slane %v851_v46, 1 }
 0x26c   :  { %v1611_v13 = vld [vmem:[#allocation1] sm:$0xff] }
 0x26d   :  { %1612 = vst [vmem:[#allocation1] ss:$9 sm:$0xff] %v845_v33  ;;  %2048 = vperm.xlu2 %2455, %v1611_v13   ;;  %v1154_v33 = vrot.slane %v851_v46, 2  ;;  %v1156_v13 = vrot.slane %v851_v46, 4 }
 0x26e   :  { %1613 = vst [vmem:[#allocation1 + $0x1] ss:$9 sm:$0xff] %v1111_v23  ;;  %v1155_v23 = vrot.slane %v851_v46, 3 }
 0x26f   :  { %1614 = vst [vmem:[#allocation1 + $0x2] ss:$9 sm:$0xff] %v1112_v18  ;;  %v1157_v18 = vrot.slane %v851_v46, 5 }
 0x270   :  { %1615 = vst [vmem:[#allocation1 + $0x3] ss:$9 sm:$0xff] %v1113_v16  ;;  %v1158_v16 = vrot.slane %v851_v46, 6 }
 0x271   :  { %1616 = vst [vmem:[#allocation1 + $0x4] ss:$9 sm:$0xff] %v1114_v61  ;;  %v1159_v61 = vrot.slane %v851_v46, 7 }
 0x272   :  { %1617 = vst [vmem:[#allocation1 + $0x5] ss:$9 sm:$0xff] %v1115_v20  ;;  %v716_v20 = vpop.xlane.xlu0 %715 }
 0x273   :  { %1618 = vst [vmem:[#allocation1 + $0x6] ss:$9 sm:$0xff] %v1116_v19  ;;  %v852_v19 = vadd.f32 %v3028_v15, %v716_v20 }
 0x274   :  { %1619 = vst [vmem:[#allocation1 + $0x7] ss:$9 sm:$0xff] %v1117_v4 }
 0x275   :  { %v1160_v43 = vrot.slane %v852_v19, 1 }
 0x27b   :  { %v1620_v17 = vld [vmem:[#allocation1] sm:$0xff] }
 0x27c   :  { %1621 = vst [vmem:[#allocation1] ss:$9 sm:$0xff] %v846_v25  ;;  %2051 = vperm.xlu1 %2454, %v1620_v17   ;;  %v1161_v25 = vrot.slane %v852_v19, 2  ;;  %v1162_v17 = vrot.slane %v852_v19, 3 }
 0x27d   :  { %1622 = vst [vmem:[#allocation1 + $0x1] ss:$9 sm:$0xff] %v1118_v7  ;;  %v1163_v7 = vrot.slane %v852_v19, 4 }
 0x27e   :  { %1623 = vst [vmem:[#allocation1 + $0x2] ss:$9 sm:$0xff] %v1119_v5  ;;  %v1164_v5 = vrot.slane %v852_v19, 5 }
 0x27f   :  { %1624 = vst [vmem:[#allocation1 + $0x3] ss:$9 sm:$0xff] %v1120_v27  ;;  %v1165_v27 = vrot.slane %v852_v19, 6 }
 0x280   :  { %1625 = vst [vmem:[#allocation1 + $0x4] ss:$9 sm:$0xff] %v1121_v31  ;;  %v1166_v31 = vrot.slane %v852_v19, 7 }
 0x281   :  { %1626 = vst [vmem:[#allocation1 + $0x5] ss:$9 sm:$0xff] %v1122_v32  ;;  %v719_v32 = vpop.xlane.xlu1 %718 }
 0x282   :  { %1627 = vst [vmem:[#allocation1 + $0x6] ss:$9 sm:$0xff] %v1123_v34  ;;  %v722_v34 = vpop.xlane.xlu2 %721 }
 0x283   :  { %1628 = vst [vmem:[#allocation1 + $0x7] ss:$9 sm:$0xff] %v1124_v10  ;;  %v853_v10 = vadd.f32 %v3028_v15, %v719_v32 }
 0x285   :  { %v1167_v41 = vrot.slane %v853_v10, 1 }
 0x289   :  { %v728_v29 = vpop.xlane.xlu1 %727 }
 0x28a   :  { %v1629_v35 = vld [vmem:[#allocation1] sm:$0xff] }
 0x28b   :  { %1630 = vst [vmem:[#allocation1] ss:$9 sm:$0xff] %v847_v26  ;;  %2054 = vperm.xlu0 %2453, %v1629_v35   ;;  %v1169_v35 = vrot.slane %v853_v10, 3 }
 0x28c   :  { %1631 = vst [vmem:[#allocation1 + $0x1] ss:$9 sm:$0xff] %v1125_v50  ;;  %v1168_v50 = vrot.slane %v853_v10, 2 }
 0x28d   :  { %1632 = vst [vmem:[#allocation1 + $0x2] ss:$9 sm:$0xff] %v1126_v36  ;;  %v1170_v36 = vrot.slane %v853_v10, 4 }
 0x28e   :  { %1633 = vst [vmem:[#allocation1 + $0x3] ss:$9 sm:$0xff] %v1127_v63  ;;  %v1171_v63 = vrot.slane %v853_v10, 5 }
 0x28f   :  { %1634 = vst [vmem:[#allocation1 + $0x4] ss:$9 sm:$0xff] %v1128_v39  ;;  %v3324_v39 = vpop.xlane.xlu2 %730 }
 0x290   :  { %1635 = vst [vmem:[#allocation1 + $0x5] ss:$9 sm:$0xff] %v1129_v48  ;;  %v1172_v48 = vrot.slane %v853_v10, 6 }
 0x291   :  { %1636 = vst [vmem:[#allocation1 + $0x6] ss:$9 sm:$0xff] %v1130_v9  ;;  %v1173_v9 = vrot.slane %v853_v10, 7 }
 0x292   :  { %1637 = vst [vmem:[#allocation1 + $0x7] ss:$9 sm:$0xff] %v1131_v6  ;;  %v854_v6 = vadd.f32 %v3028_v15, %v722_v34 }
 0x294   :  { %v1180_v53 = vrot.slane %v854_v6, 7 }
 0x299   :  { %v1638_v44 = vld [vmem:[#allocation1] sm:$0xff] }
 0x29a   :  { %1639 = vst [vmem:[#allocation1] ss:$9 sm:$0xff] %v848_v42  ;;  %2057 = vperm.xlu2 %2455, %v1638_v44   ;;  %v3327_v42 = vpop.xlane.xlu2 %739 }
 0x29b   :  { %1640 = vst [vmem:[#allocation1 + $0x1] ss:$9 sm:$0xff] %v1132_v12  ;;  %v1174_v12 = vrot.slane %v854_v6, 1 }
 0x29c   :  { %1641 = vst [vmem:[#allocation1 + $0x2] ss:$9 sm:$0xff] %v1133_v28  ;;  %v725_v28 = vpop.xlane.xlu0 %724 }
 0x29d   :  { %1642 = vst [vmem:[#allocation1 + $0x3] ss:$9 sm:$0xff] %v1134_v45  ;;  %v1175_v45 = vrot.slane %v854_v6, 2 }
 0x29e   :  { %1643 = vst [vmem:[#allocation1 + $0x4] ss:$9 sm:$0xff] %v1135_v47  ;;  %v1176_v47 = vrot.slane %v854_v6, 3 }
 0x29f   :  { %1644 = vst [vmem:[#allocation1 + $0x5] ss:$9 sm:$0xff] %v1136_v49  ;;  %v1177_v49 = vrot.slane %v854_v6, 4 }
 0x2a0   :  { %1645 = vst [vmem:[#allocation1 + $0x6] ss:$9 sm:$0xff] %v1137_v60  ;;  %v1178_v60 = vrot.slane %v854_v6, 5 }
 0x2a1   :  { %1646 = vst [vmem:[#allocation1 + $0x7] ss:$9 sm:$0xff] %v1138_v56  ;;  %v1179_v56 = vrot.slane %v854_v6, 6 }
 0x2a8   :  { %v1647_v52 = vld [vmem:[#allocation1] sm:$0xff] }
 0x2a9   :  { %1648 = vst [vmem:[#allocation1] ss:$9 sm:$0xff] %v849_v54  ;;  %2060 = vperm.xlu1 %2454, %v1647_v52   ;;  %v3329_v54 = vpop.xlane.xlu1 %736  ;;  %v3331_v52 = vpop.xlane.xlu2 %748 }
 0x2aa   :  { %1649 = vst [vmem:[#allocation1 + $0x1] ss:$9 sm:$0xff] %v1139_v21  ;;  %v3333_v21 = vpop.xlane.xlu0 %733 }
 0x2ab   :  { %1650 = vst [vmem:[#allocation1 + $0x2] ss:$9 sm:$0xff] %v1140_v55  ;;  %v855_v55 = vadd.f32 %v3028_v15, %v725_v28 }
 0x2ac   :  { %1651 = vst [vmem:[#allocation1 + $0x3] ss:$9 sm:$0xff] %v1141_v57 }
 0x2ad   :  { %1652 = vst [vmem:[#allocation1 + $0x4] ss:$9 sm:$0xff] %v1142_v24  ;;  %v1181_v24 = vrot.slane %v855_v55, 1  ;;  %v1185_v37 = vrot.slane %v855_v55, 5 }
 0x2ae   :  { %1653 = vst [vmem:[#allocation1 + $0x5] ss:$9 sm:$0xff] %v1143_v58  ;;  %v1182_v58 = vrot.slane %v855_v55, 2 }
 0x2af   :  { %1654 = vst [vmem:[#allocation1 + $0x6] ss:$9 sm:$0xff] %v1144_v59  ;;  %v1183_v59 = vrot.slane %v855_v55, 3 }
 0x2b0   :  { %1655 = vst [vmem:[#allocation1 + $0x7] ss:$9 sm:$0xff] %v1145_v30  ;;  %v1184_v30 = vrot.slane %v855_v55, 4 }
 0x2b7   :  { %v1656_v38 = vld [vmem:[#allocation1] sm:$0xff] }
 0x2b8   :  { %1657 = vst [vmem:[#allocation1] ss:$9 sm:$0xff] %v850_v51  ;;  %2063 = vperm.xlu0 %2453, %v1656_v38   ;;  %v3336_v51 = vpop.xlane.xlu1 %745  ;;  %v1186_v38 = vrot.slane %v855_v55, 6 }
 0x2b9   :  { %1658 = vst [vmem:[#allocation1 + $0x1] ss:$9 sm:$0xff] %v1146_v14  ;;  %v3338_v14 = vpop.xlane.xlu2 %757 }
 0x2ba   :  { %1659 = vst [vmem:[#allocation1 + $0x2] ss:$9 sm:$0xff] %v1147_v0  ;;  %v3340_v0 = vpop.xlane.xlu0 %742 }
 0x2bb   :  { %1660 = vst [vmem:[#allocation1 + $0x3] ss:$9 sm:$0xff] %v1148_v2  ;;  %v1187_v2 = vrot.slane %v855_v55, 7 }
 0x2bc   :  { %1661 = vst [vmem:[#allocation1 + $0x4] ss:$9 sm:$0xff] %v1149_v11  ;;  %v856_v11 = vadd.f32 %v3028_v15, %v728_v29 }
 0x2bd   :  { %1662 = vst [vmem:[#allocation1 + $0x5] ss:$9 sm:$0xff] %v1150_v1 }
 0x2be   :  { %1663 = vst [vmem:[#allocation1 + $0x6] ss:$9 sm:$0xff] %v1151_v22 }
 0x2bf   :  { %1664 = vst [vmem:[#allocation1 + $0x7] ss:$9 sm:$0xff] %v1152_v40  ;;  %v1188_v40 = vrot.slane %v856_v11, 1 }
 0x2c0   :  { %v3343_v1 = vpop.xlane.xlu1 %754 }
 0x2c1   :  { %v3345_v22 = vpop.xlane.xlu2 %775 }
 0x2c6   :  { %v1665_v62 = vld [vmem:[#allocation1] sm:$0xff] }
 0x2c7   :  { %1666 = vst [vmem:[#allocation1] ss:$9 sm:$0xff] %v851_v46  ;;  %2066 = vperm.xlu2 %2455, %v1665_v62   ;;  %v3347_v46 = vpop.xlane.xlu0 %751  ;;  %v1190_v62 = vrot.slane %v856_v11, 3 }
 0x2c8   :  { %1667 = vst [vmem:[#allocation1 + $0x1] ss:$9 sm:$0xff] %v1153_v8  ;;  %v1189_v8 = vrot.slane %v856_v11, 2 }
 0x2c9   :  { %1668 = vst [vmem:[#allocation1 + $0x2] ss:$9 sm:$0xff] %v1154_v33  ;;  %v1191_v33 = vrot.slane %v856_v11, 4 }
 0x2ca   :  { %1669 = vst [vmem:[#allocation1 + $0x3] ss:$9 sm:$0xff] %v1155_v23  ;;  %v1192_v23 = vrot.slane %v856_v11, 5 }
 0x2cb   :  { %1670 = vst [vmem:[#allocation1 + $0x4] ss:$9 sm:$0xff] %v1156_v13  ;;  %v1193_v13 = vrot.slane %v856_v11, 6 }
 0x2cc   :  { %1671 = vst [vmem:[#allocation1 + $0x5] ss:$9 sm:$0xff] %v1157_v18  ;;  %v1194_v18 = vrot.slane %v856_v11, 7 }
 0x2cd   :  { %1672 = vst [vmem:[#allocation1 + $0x6] ss:$9 sm:$0xff] %v1158_v16  ;;  %v3349_v16 = vpop.xlane.xlu1 %763 }
 0x2ce   :  { %1673 = vst [vmem:[#allocation1 + $0x7] ss:$9 sm:$0xff] %v1159_v61  ;;  %v3351_v61 = vpop.xlane.xlu2 %784 }
 0x2cf   :  { %v3353_v20 = vpop.xlane.xlu0 %760 }
 0x2d5   :  { %v1674_v4 = vld [vmem:[#allocation1] sm:$0xff] }
 0x2d6   :  { %1675 = vst [vmem:[#allocation1] ss:$9 sm:$0xff] %v852_v19  ;;  %2069 = vperm.xlu1 %2454, %v1674_v4   ;;  %v857_v19 = vadd.f32 %v3028_v15, %v3324_v39 }
 0x2d7   :  { %1676 = vst [vmem:[#allocation1 + $0x1] ss:$9 sm:$0xff] %v1160_v43  ;;  %v3361_v34 = vpop.xlane.xlu0 %769 }
 0x2d8   :  { %1677 = vst [vmem:[#allocation1 + $0x2] ss:$9 sm:$0xff] %v1161_v25  ;;  %v1195_v4 = vrot.slane %v857_v19, 1  ;;  %v1196_v25 = vrot.slane %v857_v19, 2  ;;  %v1200_v32 = vrot.slane %v857_v19, 6 }
 0x2d9   :  { %1678 = vst [vmem:[#allocation1 + $0x3] ss:$9 sm:$0xff] %v1162_v17  ;;  %v1197_v17 = vrot.slane %v857_v19, 3 }
 0x2da   :  { %1679 = vst [vmem:[#allocation1 + $0x4] ss:$9 sm:$0xff] %v1163_v7  ;;  %v1198_v7 = vrot.slane %v857_v19, 4 }
 0x2db   :  { %1680 = vst [vmem:[#allocation1 + $0x5] ss:$9 sm:$0xff] %v1164_v5  ;;  %v1199_v5 = vrot.slane %v857_v19, 5 }
 0x2dc   :  { %1681 = vst [vmem:[#allocation1 + $0x6] ss:$9 sm:$0xff] %v1165_v27  ;;  %v3357_v27 = vpop.xlane.xlu1 %772 }
 0x2dd   :  { %1682 = vst [vmem:[#allocation1 + $0x7] ss:$9 sm:$0xff] %v1166_v31  ;;  %v3359_v31 = vpop.xlane.xlu2 %793 }
 0x2e4   :  { %v1683_v26 = vld [vmem:[#allocation1] sm:$0xff] }
 0x2e5   :  { %1684 = vst [vmem:[#allocation1] ss:$9 sm:$0xff] %v853_v10  ;;  %2072 = vperm.xlu0 %2453, %v1683_v26   ;;  %v1201_v10 = vrot.slane %v857_v19, 7  ;;  %v3365_v26 = vpop.xlane.xlu1 %781 }
 0x2e6   :  { %1685 = vst [vmem:[#allocation1 + $0x1] ss:$9 sm:$0xff] %v1167_v41  ;;  %v858_v41 = vadd.f32 %v3028_v15, %v3333_v21 }
 0x2e7   :  { %1686 = vst [vmem:[#allocation1 + $0x2] ss:$9 sm:$0xff] %v1168_v50  ;;  %v3367_v50 = vpop.xlane.xlu2 %802 }
 0x2e8   :  { %1687 = vst [vmem:[#allocation1 + $0x3] ss:$9 sm:$0xff] %v1169_v35  ;;  %v1203_v39 = vrot.slane %v858_v41, 2  ;;  %v1207_v29 = vrot.slane %v858_v41, 6 }
 0x2e9   :  { %1688 = vst [vmem:[#allocation1 + $0x4] ss:$9 sm:$0xff] %v1170_v36  ;;  %v1202_v36 = vrot.slane %v858_v41, 1 }
 0x2ea   :  { %1689 = vst [vmem:[#allocation1 + $0x5] ss:$9 sm:$0xff] %v1171_v63  ;;  %v3369_v63 = vpop.xlane.xlu0 %778 }
 0x2eb   :  { %1690 = vst [vmem:[#allocation1 + $0x6] ss:$9 sm:$0xff] %v1172_v48  ;;  %v1204_v48 = vrot.slane %v858_v41, 3 }
 0x2ec   :  { %1691 = vst [vmem:[#allocation1 + $0x7] ss:$9 sm:$0xff] %v1173_v9  ;;  %v1205_v9 = vrot.slane %v858_v41, 4 }
 0x2ef   :  { %v3373_v28 = vpop.xlane.xlu2 %811 }
 0x2f3   :  { %v1692_v44 = vld [vmem:[#allocation1] sm:$0xff] }
 0x2f4   :  { %1693 = vst [vmem:[#allocation1] ss:$9 sm:$0xff] %v854_v6  ;;  %2075 = vperm.xlu2 %2455, %v1692_v44   ;;  %v1206_v6 = vrot.slane %v858_v41, 5  ;;  %v3371_v44 = vpop.xlane.xlu1 %790 }
 0x2f5   :  { %1694 = vst [vmem:[#allocation1 + $0x1] ss:$9 sm:$0xff] %v1174_v12  ;;  %v1208_v12 = vrot.slane %v858_v41, 7 }
 0x2f6   :  { %1695 = vst [vmem:[#allocation1 + $0x2] ss:$9 sm:$0xff] %v1175_v45  ;;  %v3375_v45 = vpop.xlane.xlu0 %787 }
 0x2f7   :  { %1696 = vst [vmem:[#allocation1 + $0x3] ss:$9 sm:$0xff] %v1176_v47  ;;  %v859_v47 = vadd.f32 %v3028_v15, %v3329_v54 }
 0x2f8   :  { %1697 = vst [vmem:[#allocation1 + $0x4] ss:$9 sm:$0xff] %v1177_v49 }
 0x2f9   :  { %1698 = vst [vmem:[#allocation1 + $0x5] ss:$9 sm:$0xff] %v1178_v60  ;;  %v1209_v49 = vrot.slane %v859_v47, 1  ;;  %v1212_v21 = vrot.slane %v859_v47, 4  ;;  %v1215_v54 = vrot.slane %v859_v47, 7 }
 0x2fa   :  { %1699 = vst [vmem:[#allocation1 + $0x6] ss:$9 sm:$0xff] %v1179_v56  ;;  %v1210_v56 = vrot.slane %v859_v47, 2 }
 0x2fb   :  { %1700 = vst [vmem:[#allocation1 + $0x7] ss:$9 sm:$0xff] %v1180_v53  ;;  %v1211_v53 = vrot.slane %v859_v47, 3 }
 0x302   :  { %v1701_v57 = vld [vmem:[#allocation1] sm:$0xff] }
 0x303   :  { %1702 = vst [vmem:[#allocation1] ss:$9 sm:$0xff] %v855_v55  ;;  %2078 = vperm.xlu1 %2454, %v1701_v57   ;;  %v1213_v55 = vrot.slane %v859_v47, 5  ;;  %v3379_v57 = vpop.xlane.xlu1 %799 }
 0x304   :  { %1703 = vst [vmem:[#allocation1 + $0x1] ss:$9 sm:$0xff] %v1181_v24  ;;  %v3381_v24 = vpop.xlane.xlu2 %766 }
 0x305   :  { %1704 = vst [vmem:[#allocation1 + $0x2] ss:$9 sm:$0xff] %v1182_v58  ;;  %v1214_v58 = vrot.slane %v859_v47, 6 }
 0x306   :  { %1705 = vst [vmem:[#allocation1 + $0x3] ss:$9 sm:$0xff] %v1183_v59  ;;  %v3383_v59 = vpop.xlane.xlu0 %796 }
 0x307   :  { %1706 = vst [vmem:[#allocation1 + $0x4] ss:$9 sm:$0xff] %v1184_v30  ;;  %v860_v30 = vadd.f32 %v3028_v15, %v3327_v42 }
 0x308   :  { %1707 = vst [vmem:[#allocation1 + $0x5] ss:$9 sm:$0xff] %v1185_v37  ;;  %v2173_v37 = vlaneseq }
 0x309   :  { %1708 = vst [vmem:[#allocation1 + $0x6] ss:$9 sm:$0xff] %v1186_v38 }
 0x30a   :  { %1709 = vst [vmem:[#allocation1 + $0x7] ss:$9 sm:$0xff] %v1187_v2 }
 0x30b   :  { %v3387_v38 = vpop.xlane.xlu1 %808 }
 0x30c   :  { %v1986_v2 = vpop.permute.xlu2 %1985 }
 0x311   :  { %v1710_v3 = vld [vmem:[#allocation1] sm:$0xff] }
 0x312   :  { %1711 = vst [vmem:[#allocation1] ss:$9 sm:$0xff] %v856_v11  ;;  %2081 = vperm.xlu0 %2453, %v1710_v3   ;;  %v1216_v11 = vrot.slane %v860_v30, 1  ;;  %v3389_v3 = vpop.xlane.xlu0 %805 }
 0x313   :  { %1712 = vst [vmem:[#allocation1 + $0x1] ss:$9 sm:$0xff] %v1188_v40 }
 0x314   :  { %1713 = vst [vmem:[#allocation1 + $0x2] ss:$9 sm:$0xff] %v1189_v8  ;;  %v3392_v8 = vand.u32 127, %v2173_v37 }
 0x315   :  { %1714 = vst [vmem:[#allocation1 + $0x3] ss:$9 sm:$0xff] %v1190_v62  ;;  %v1217_v62 = vrot.slane %v860_v30, 2 }
 0x316   :  { %1715 = vst [vmem:[#allocation1 + $0x4] ss:$9 sm:$0xff] %v1191_v33  ;;  %v1218_v33 = vrot.slane %v860_v30, 3  ;;  %v3395_v42 = vadd.s32 4294967288, %v3392_v8 }
 0x317   :  { %1716 = vst [vmem:[#allocation1 + $0x5] ss:$9 sm:$0xff] %v1192_v23  ;;  %v1219_v23 = vrot.slane %v860_v30, 4 }
 0x318   :  { %1717 = vst [vmem:[#allocation1 + $0x6] ss:$9 sm:$0xff] %v1193_v13  ;;  %v1220_v13 = vrot.slane %v860_v30, 5 }
 0x319   :  { %1718 = vst [vmem:[#allocation1 + $0x7] ss:$9 sm:$0xff] %v1194_v18  ;;  %v1221_v18 = vrot.slane %v860_v30, 6 }
 0x320   :  { %v1719_v43 = vld [vmem:[#allocation1] sm:$0xff] }
 0x321   :  { %1720 = vst [vmem:[#allocation1] ss:$9 sm:$0xff] %v857_v19  ;;  %2084 = vperm.xlu2 %2455, %v1719_v43   ;;  %v1222_v19 = vrot.slane %v860_v30, 7  ;;  %v1995_v43 = vpop.permute.xlu2 %1994 }
 0x322   :  { %1721 = vst [vmem:[#allocation1 + $0x1] ss:$9 sm:$0xff] %v1195_v4  ;;  %v1983_v4 = vpop.permute.xlu1 %1982 }
 0x323   :  { %1722 = vst [vmem:[#allocation1 + $0x2] ss:$9 sm:$0xff] %v1196_v25  ;;  %v2177_v25 = vperm.slane %v1986_v2, %v3395_v42 }
 0x324   :  { %1723 = vst [vmem:[#allocation1 + $0x3] ss:$9 sm:$0xff] %v1197_v17  ;;  %v2175_v17 = vperm.slane %v1983_v4, %v3392_v8 }
 0x325   :  { %1724 = vst [vmem:[#allocation1 + $0x4] ss:$9 sm:$0xff] %v1198_v7  ;;  %v3399_v7 = vpop.xlane.xlu0 %814 }
 0x326   :  { %1725 = vst [vmem:[#allocation1 + $0x5] ss:$9 sm:$0xff] %v1199_v5  ;;  %v2179_v5 = vsel %vm2178_vm2, %v2177_v25, %v2175_v17  ;;  %v3434_v17 = vadd.s32 4294967232, %v3392_v8 }
 0x327   :  { %1726 = vst [vmem:[#allocation1 + $0x6] ss:$9 sm:$0xff] %v1200_v32  ;;  %v861_v32 = vadd.f32 %v3028_v15, %v3340_v0 }
 0x328   :  { %1727 = vst [vmem:[#allocation1 + $0x7] ss:$9 sm:$0xff] %v1201_v10 }
 0x32f   :  { %v1728_v35 = vld [vmem:[#allocation1] sm:$0xff] }
 0x330   :  { %1729 = vst [vmem:[#allocation1] ss:$9 sm:$0xff] %v858_v41  ;;  %2087 = vperm.xlu1 %2454, %v1728_v35   ;;  %v1223_v41 = vrot.slane %v861_v32, 1  ;;  %v1998_v35 = vpop.permute.xlu1 %1997 }
 0x331   :  { %1730 = vst [vmem:[#allocation1 + $0x1] ss:$9 sm:$0xff] %v1202_v36  ;;  %v3404_v36 = vpop.permute.xlu2 %2003 }
 0x332   :  { %1731 = vst [vmem:[#allocation1 + $0x2] ss:$9 sm:$0xff] %v1203_v39  ;;  %v1224_v39 = vrot.slane %v861_v32, 2 }
 0x333   :  { %1732 = vst [vmem:[#allocation1 + $0x3] ss:$9 sm:$0xff] %v1204_v48  ;;  %v1225_v48 = vrot.slane %v861_v32, 3 }
 0x334   :  { %1733 = vst [vmem:[#allocation1 + $0x4] ss:$9 sm:$0xff] %v1205_v9  ;;  %v3407_v9 = vadd.s32 4294967280, %v3392_v8 }
 0x335   :  { %1734 = vst [vmem:[#allocation1 + $0x5] ss:$9 sm:$0xff] %v1206_v6  ;;  %v1226_v6 = vrot.slane %v861_v32, 4 }
 0x336   :  { %1735 = vst [vmem:[#allocation1 + $0x6] ss:$9 sm:$0xff] %v1207_v29  ;;  %v1989_v29 = vpop.permute.xlu0 %1988 }
 0x337   :  { %1736 = vst [vmem:[#allocation1 + $0x7] ss:$9 sm:$0xff] %v1208_v12  ;;  %v1227_v12 = vrot.slane %v861_v32, 5  ;;  %v2181_v0 = vperm.slane %v1989_v29, %v3407_v9 }
 0x33e   :  { %v1737_v60 = vld [vmem:[#allocation1] sm:$0xff] }
 0x33f   :  { %1738 = vst [vmem:[#allocation1] ss:$9 sm:$0xff] %v859_v47  ;;  %2090 = vperm.xlu0 %2453, %v1737_v60   ;;  %v1228_v47 = vrot.slane %v861_v32, 6  ;;  %v2183_v60 = vsel %vm2182_vm3, %v2181_v0, %v2179_v5  ;;  %v3437_v5 = vadd.s32 4294967248, %v3392_v8 }
 0x340   :  { %1739 = vst [vmem:[#allocation1 + $0x1] ss:$9 sm:$0xff] %v1209_v49  ;;  %v1229_v49 = vrot.slane %v861_v32, 7 }
 0x341   :  { %1740 = vst [vmem:[#allocation1 + $0x2] ss:$9 sm:$0xff] %v1210_v56  ;;  %v2007_v56 = vpop.permute.xlu1 %2006 }
 0x342   :  { %1741 = vst [vmem:[#allocation1 + $0x3] ss:$9 sm:$0xff] %v1211_v53  ;;  %v3412_v53 = vadd.s32 4294967264, %v3392_v8  ;;  %v2205_v29 = vperm.slane %v2007_v56, %v3434_v17  ;;  %v3457_v56 = vadd.s32 4294967224, %v3392_v8 }
 0x343   :  { %1742 = vst [vmem:[#allocation1 + $0x4] ss:$9 sm:$0xff] %v1212_v21  ;;  %v3415_v21 = vadd.s32 4294967256, %v3392_v8 }
 0x344   :  { %1743 = vst [vmem:[#allocation1 + $0x5] ss:$9 sm:$0xff] %v1213_v55  ;;  %v3417_v55 = vpop.permute.xlu2 %2012 }
 0x345   :  { %1744 = vst [vmem:[#allocation1 + $0x6] ss:$9 sm:$0xff] %v1214_v58  ;;  %v3420_v58 = vadd.s32 4294967272, %v3392_v8 }
 0x346   :  { %1745 = vst [vmem:[#allocation1 + $0x7] ss:$9 sm:$0xff] %v1215_v54  ;;  %v862_v54 = vadd.f32 %v3028_v15, %v3336_v51 }
 0x348   :  { %v1232_v4 = vrot.slane %v862_v54, 3  ;;  %v1233_v25 = vrot.slane %v862_v54, 4 }
 0x34d   :  { %v1746_v40 = vld [vmem:[#allocation1] sm:$0xff] }
 0x34e   :  { %1747 = vst [vmem:[#allocation1] ss:$9 sm:$0xff] %v860_v30  ;;  %2093 = vperm.xlu2 %2455, %v1746_v40   ;;  %v1992_v30 = vpop.permute.xlu0 %1991  ;;  %v2193_v40 = vperm.slane %v1998_v35, %v3415_v21  ;;  %v3439_v35 = vpop.permute.xlu2 %2021 }
 0x34f   :  { %1748 = vst [vmem:[#allocation1 + $0x1] ss:$9 sm:$0xff] %v1216_v11  ;;  %v2185_v2 = vperm.slane %v1992_v30, %v3420_v58  ;;  %v2189_v11 = vperm.slane %v1995_v43, %v3412_v53  ;;  %v3431_v43 = vadd.s32 4294967240, %v3392_v8 }
 0x350   :  { %1749 = vst [vmem:[#allocation1 + $0x2] ss:$9 sm:$0xff] %v1217_v62 }
 0x351   :  { %1750 = vst [vmem:[#allocation1 + $0x3] ss:$9 sm:$0xff] %v1218_v33  ;;  %v2187_v62 = vsel %vm2186_vm4, %v2185_v2, %v2183_v60  ;;  %v1230_v33 = vrot.slane %v862_v54, 1  ;;  %v3449_v60 = vadd.s32 4294967216, %v3392_v8 }
 0x352   :  { %1751 = vst [vmem:[#allocation1 + $0x4] ss:$9 sm:$0xff] %v1219_v23 }
 0x353   :  { %1752 = vst [vmem:[#allocation1 + $0x5] ss:$9 sm:$0xff] %v1220_v13  ;;  %v2191_v13 = vsel %vm2190_vm5, %v2189_v11, %v2187_v62  ;;  %v2213_v11 = vperm.slane %v3417_v55, %v3449_v60 }
 0x354   :  { %1753 = vst [vmem:[#allocation1 + $0x6] ss:$9 sm:$0xff] %v1221_v18  ;;  %v1231_v18 = vrot.slane %v862_v54, 2  ;;  %v2195_v51 = vsel %vm2194_vm6, %v2193_v40, %v2191_v13 }
 0x355   :  { %1754 = vst [vmem:[#allocation1 + $0x7] ss:$9 sm:$0xff] %v1222_v19  ;;  %v2016_v19 = vpop.permute.xlu1 %2015 }
 0x35c   :  { %v1755_v10 = vld [vmem:[#allocation1] sm:$0xff] }
 0x35d   :  { %1756 = vst [vmem:[#allocation1] ss:$9 sm:$0xff] %v861_v32  ;;  %2096 = vperm.xlu1 %2454, %v1755_v10   ;;  %v1234_v32 = vrot.slane %v862_v54, 5  ;;  %v2001_v10 = vpop.permute.xlu0 %2000 }
 0x35e   :  { %1757 = vst [vmem:[#allocation1 + $0x1] ss:$9 sm:$0xff] %v1223_v41  ;;  %v1235_v41 = vrot.slane %v862_v54, 6 }
 0x35f   :  { %1758 = vst [vmem:[#allocation1 + $0x2] ss:$9 sm:$0xff] %v1224_v39  ;;  %v2197_v39 = vperm.slane %v2001_v10, %v3437_v5 }
 0x360   :  { %1759 = vst [vmem:[#allocation1 + $0x3] ss:$9 sm:$0xff] %v1225_v48  ;;  %v1236_v48 = vrot.slane %v862_v54, 7 }
 0x361   :  { %1760 = vst [vmem:[#allocation1 + $0x4] ss:$9 sm:$0xff] %v1226_v6  ;;  %v2201_v6 = vperm.slane %v3404_v36, %v3431_v43  ;;  %v863_v36 = vadd.f32 %v3028_v15, %v3331_v52 }
 0x362   :  { %1761 = vst [vmem:[#allocation1 + $0x5] ss:$9 sm:$0xff] %v1227_v12  ;;  %v2199_v12 = vsel %vm2198_vm7, %v2197_v39, %v2195_v51  ;;  %v3472_v39 = vadd.s32 4294967184, %v3392_v8 }
 0x363   :  { %1762 = vst [vmem:[#allocation1 + $0x6] ss:$9 sm:$0xff] %v1228_v47  ;;  %v2203_v0 = vsel %vm2202_vm8, %v2201_v6, %v2199_v12  ;;  %v2025_v47 = vpop.permute.xlu1 %2024  ;;  %v1237_v40 = vrot.slane %v863_v36, 1  ;;  %v1238_v13 = vrot.slane %v863_v36, 2  ;;  %v1239_v51 = vrot.slane %v863_v36, 3 }
 0x364   :  { %1763 = vst [vmem:[#allocation1 + $0x7] ss:$9 sm:$0xff] %v1229_v49  ;;  %v2207_v49 = vsel %vm2206_vm9, %v2205_v29, %v2203_v0  ;;  %v1242_v6 = vrot.slane %v863_v36, 6  ;;  %v1243_v0 = vrot.slane %v863_v36, 7 }
 0x365   :  { %v2010_v30 = vpop.permute.xlu0 %2009 }
 0x366   :  { %v2209_v2 = vperm.slane %v2010_v30, %v3457_v56 }
 0x368   :  { %v2211_v52 = vsel %vm2210_vm10, %v2209_v2, %v2207_v49  ;;  %v2229_v2 = vperm.slane %v2025_v47, %v3472_v39 }
 0x36b   :  { %v1764_v23 = vld [vmem:[#allocation1] sm:$0xff] }
 0x36c   :  { %1765 = vst [vmem:[#allocation1] ss:$9 sm:$0xff] %v862_v54  ;;  %2099 = vperm.xlu0 %2453, %v1764_v23   ;;  %v3454_v54 = vadd.s32 4294967208, %v3392_v8  ;;  %v2031_v23 = vpop.permute.xlu2 %2030 }
 0x36d   :  { %1766 = vst [vmem:[#allocation1 + $0x1] ss:$9 sm:$0xff] %v1230_v33  ;;  %v2019_v12 = vpop.permute.xlu0 %2018 }
 0x36e   :  { %1767 = vst [vmem:[#allocation1 + $0x2] ss:$9 sm:$0xff] %v1231_v18  ;;  %v2217_v33 = vperm.slane %v2016_v19, %v3454_v54  ;;  %v2215_v18 = vsel %vm2214_vm11, %v2213_v11, %v2211_v52  ;;  %v2236_v19 = vperm.slane %v2031_v23, %v3392_v8 }
 0x36f   :  { %1768 = vst [vmem:[#allocation1 + $0x3] ss:$9 sm:$0xff] %v1232_v4  ;;  %v2034_v4 = vpop.permute.xlu1 %2033 }
 0x370   :  { %1769 = vst [vmem:[#allocation1 + $0x4] ss:$9 sm:$0xff] %v1233_v25  ;;  %v2219_v55 = vsel %vm2218_vm12, %v2217_v33, %v2215_v18  ;;  %v1240_v25 = vrot.slane %v863_v36, 4  ;;  %v2237_v10 = vperm.slane %v2034_v4, %v3395_v42  ;;  %v3488_v33 = vadd.s32 4294967176, %v3392_v8 }
 0x371   :  { %1770 = vst [vmem:[#allocation1 + $0x5] ss:$9 sm:$0xff] %v1234_v32  ;;  %v3467_v32 = vadd.s32 4294967192, %v3392_v8 }
 0x372   :  { %1771 = vst [vmem:[#allocation1 + $0x6] ss:$9 sm:$0xff] %v1235_v41  ;;  %v1241_v41 = vrot.slane %v863_v36, 5  ;;  %v2238_v29 = vsel %vm2178_vm2, %v2237_v10, %v2236_v19 }
 0x373   :  { %1772 = vst [vmem:[#allocation1 + $0x7] ss:$9 sm:$0xff] %v1236_v48  ;;  %v3475_v48 = vadd.s32 4294967200, %v3392_v8  ;;  %v2225_v30 = vperm.slane %v3439_v35, %v3467_v32 }
 0x374   :  { %v2040_v18 = vpop.permute.xlu2 %2039 }
 0x375   :  { %v2221_v49 = vperm.slane %v2019_v12, %v3475_v48  ;;  %v2028_v23 = vpop.permute.xlu0 %2027  ;;  %v2241_v12 = vperm.slane %v2040_v18, %v3420_v58 }
 0x376   :  { %v2233_v35 = vperm.slane %v2028_v23, %v3488_v33 }
 0x377   :  { %v2223_v11 = vsel %vm2222_vm13, %v2221_v49, %v2219_v55 }
 0x37a   :  { %v1773_v62 = vld [vmem:[#allocation1] sm:$0xff] }
 0x37b   :  { %1774 = vst [vmem:[#allocation1] ss:$9 sm:$0xff] %v863_v36  ;;  %2102 = vperm.xlu2 %2455, %v1773_v62   ;;  %v864_v36 = vadd.f32 %v3028_v15, %v3347_v46 }
 0x37c   :  { %1775 = vst [vmem:[#allocation1 + $0x1] ss:$9 sm:$0xff] %v1237_v40  ;;  %v2227_v40 = vsel %vm2226_vm14, %v2225_v30, %v2223_v11  ;;  %v2049_v11 = vpop.permute.xlu2 %2048 }
 0x37d   :  { %1776 = vst [vmem:[#allocation1 + $0x2] ss:$9 sm:$0xff] %v1238_v13  ;;  %v2231_v62 = vsel %vm2230_vm15, %v2229_v2, %v2227_v40  ;;  %v1244_v13 = vrot.slane %v864_v36, 1  ;;  %v1245_v47 = vrot.slane %v864_v36, 2  ;;  %v1246_v4 = vrot.slane %v864_v36, 3 }
 0x37e   :  { %1777 = vst [vmem:[#allocation1 + $0x3] ss:$9 sm:$0xff] %v1239_v51  ;;  %v3492_v51 = vsel %vm2234_vm0, %v2233_v35, %v2231_v62  ;;  %v1247_v55 = vrot.slane %v864_v36, 4  ;;  %v1248_v46 = vrot.slane %v864_v36, 5  ;;  %v1249_v19 = vrot.slane %v864_v36, 6 }
 0x37f   :  { %1778 = vst [vmem:[#allocation1 + $0x4] ss:$9 sm:$0xff] %v1240_v25  ;;  %v2043_v25 = vpop.permute.xlu1 %2042  ;;  %v1250_v10 = vrot.slane %v864_v36, 7  ;;  %v865_v2 = vadd.f32 %v3028_v15, %v3343_v1 }
 0x380   :  { %1779 = vst [vmem:[#allocation1 + $0x5] ss:$9 sm:$0xff] %v1241_v41  ;;  %v2037_v41 = vpop.permute.xlu0 %2036 }
 0x381   :  { %1780 = vst [vmem:[#allocation1 + $0x6] ss:$9 sm:$0xff] %v1242_v6  ;;  %v2239_v6 = vperm.slane %v2037_v41, %v3407_v9  ;;  %v1251_v23 = vrot.slane %v865_v2, 1 }
 0x382   :  { %1781 = vst [vmem:[#allocation1 + $0x7] ss:$9 sm:$0xff] %v1243_v0  ;;  %v2243_v0 = vperm.slane %v2043_v25, %v3412_v53 }
 0x383   :  { %v2240_v49 = vsel %vm2182_vm3, %v2239_v6, %v2238_v29  ;;  %v1253_v29 = vrot.slane %v865_v2, 3 }
 0x384   :  { %v2242_v30 = vsel %vm2186_vm4, %v2241_v12, %v2240_v49  ;;  %v2058_v41 = vpop.permute.xlu2 %2057 }
 0x385   :  { %v2244_v40 = vsel %vm2190_vm5, %v2243_v0, %v2242_v30  ;;  %v2253_v0 = vperm.slane %v2058_v41, %v3457_v56  ;;  %v866_v30 = vadd.f32 %v3028_v15, %v3338_v14 }
 0x387   :  { %v2052_v62 = vpop.permute.xlu1 %2051 }
 0x388   :  { %v2249_v18 = vperm.slane %v2052_v62, %v3431_v43 }
 0x389   :  { %v1782_v52 = vld [vmem:[#allocation1] sm:$0xff] }
 0x38a   :  { %1783 = vst [vmem:[#allocation1] ss:$9 sm:$0xff] %v864_v36  ;;  %2105 = vperm.xlu1 %2454, %v1782_v52   ;;  %v2046_v36 = vpop.permute.xlu0 %2045 }
 0x38b   :  { %1784 = vst [vmem:[#allocation1 + $0x1] ss:$9 sm:$0xff] %v1244_v13  ;;  %v2245_v52 = vperm.slane %v2046_v36, %v3415_v21  ;;  %v1252_v13 = vrot.slane %v865_v2, 2  ;;  %v1258_v36 = vrot.slane %v866_v30, 1 }
 0x38c   :  { %1785 = vst [vmem:[#allocation1 + $0x2] ss:$9 sm:$0xff] %v1245_v47  ;;  %v2247_v47 = vperm.slane %v2049_v11, %v3437_v5 }
 0x38d   :  { %1786 = vst [vmem:[#allocation1 + $0x3] ss:$9 sm:$0xff] %v1246_v4  ;;  %v2246_v1 = vsel %vm2194_vm6, %v2245_v52, %v2244_v40  ;;  %v1254_v4 = vrot.slane %v865_v2, 4  ;;  %v1260_v52 = vrot.slane %v866_v30, 3 }
 0x38e   :  { %1787 = vst [vmem:[#allocation1 + $0x4] ss:$9 sm:$0xff] %v1247_v55  ;;  %v2248_v55 = vsel %vm2198_vm7, %v2247_v47, %v2246_v1  ;;  %v2067_v47 = vpop.permute.xlu2 %2066 }
 0x38f   :  { %1788 = vst [vmem:[#allocation1 + $0x5] ss:$9 sm:$0xff] %v1248_v46  ;;  %v1255_v46 = vrot.slane %v865_v2, 5  ;;  %v2250_v25 = vsel %vm2202_vm8, %v2249_v18, %v2248_v55  ;;  %v2061_v11 = vpop.permute.xlu1 %2060  ;;  %v1263_v18 = vrot.slane %v866_v30, 6  ;;  %v2259_v55 = vperm.slane %v2067_v47, %v3475_v48 }
 0x390   :  { %1789 = vst [vmem:[#allocation1 + $0x6] ss:$9 sm:$0xff] %v1249_v19  ;;  %v1256_v19 = vrot.slane %v865_v2, 6  ;;  %v2255_v62 = vperm.slane %v2061_v11, %v3449_v60 }
 0x391   :  { %1790 = vst [vmem:[#allocation1 + $0x7] ss:$9 sm:$0xff] %v1250_v10  ;;  %v1257_v10 = vrot.slane %v865_v2, 7 }
 0x392   :  { %v2055_v6 = vpop.permute.xlu0 %2054 }
 0x393   :  { %v2251_v12 = vperm.slane %v2055_v6, %v3434_v17 }
 0x395   :  { %v2252_v49 = vsel %vm2206_vm9, %v2251_v12, %v2250_v25 }
 0x396   :  { %v2254_v40 = vsel %vm2210_vm10, %v2253_v0, %v2252_v49 }
 0x397   :  { %v2070_v11 = vpop.permute.xlu1 %2069 }
 0x398   :  { %v1791_v35 = vld [vmem:[#allocation1] sm:$0xff] }
 0x399   :  { %1792 = vst [vmem:[#allocation1] ss:$9 sm:$0xff] %v865_v2  ;;  %2108 = vperm.xlu0 %2453, %v1791_v35   ;;  %v2256_v2 = vsel %vm2214_vm11, %v2255_v62, %v2254_v40  ;;  %v1259_v35 = vrot.slane %v866_v30, 2  ;;  %v2261_v62 = vperm.slane %v2070_v11, %v3467_v32 }
 0x39a   :  { %1793 = vst [vmem:[#allocation1 + $0x1] ss:$9 sm:$0xff] %v1251_v23  ;;  %v2064_v14 = vpop.permute.xlu0 %2063 }
 0x39b   :  { %1794 = vst [vmem:[#allocation1 + $0x2] ss:$9 sm:$0xff] %v1252_v13  ;;  %v1261_v13 = vrot.slane %v866_v30, 4  ;;  %v2257_v1 = vperm.slane %v2064_v14, %v3454_v54 }
 0x39c   :  { %1795 = vst [vmem:[#allocation1 + $0x3] ss:$9 sm:$0xff] %v1253_v29  ;;  %v1262_v29 = vrot.slane %v866_v30, 5 }
 0x39d   :  { %1796 = vst [vmem:[#allocation1 + $0x4] ss:$9 sm:$0xff] %v1254_v4  ;;  %v1264_v4 = vrot.slane %v866_v30, 7 }
 0x39e   :  { %1797 = vst [vmem:[#allocation1 + $0x5] ss:$9 sm:$0xff] %v1255_v46  ;;  %v2258_v46 = vsel %vm2218_vm12, %v2257_v1, %v2256_v2  ;;  %v868_v2 = vadd.f32 %v3028_v15, %v3349_v16 }
 0x39f   :  { %1798 = vst [vmem:[#allocation1 + $0x6] ss:$9 sm:$0xff] %v1256_v19  ;;  %v2260_v25 = vsel %vm2222_vm13, %v2259_v55, %v2258_v46  ;;  %v867_v19 = vadd.f32 %v3028_v15, %v3353_v20 }
 0x3a0   :  { %1799 = vst [vmem:[#allocation1 + $0x7] ss:$9 sm:$0xff] %v1257_v10  ;;  %v2262_v20 = vsel %vm2226_vm14, %v2261_v62, %v2260_v25  ;;  %v1276_v16 = vrot.slane %v868_v2, 5  ;;  %v1277_v55 = vrot.slane %v868_v2, 6  ;;  %v1278_v46 = vrot.slane %v868_v2, 7 }
 0x3a1   :  { %v1265_v41 = vrot.slane %v867_v19, 1  ;;  %v1266_v6 = vrot.slane %v867_v19, 2  ;;  %v1267_v12 = vrot.slane %v867_v19, 3  ;;  %v1268_v0 = vrot.slane %v867_v19, 4 }
 0x3a2   :  { %v1269_v49 = vrot.slane %v867_v19, 5  ;;  %v1271_v40 = vrot.slane %v867_v19, 7  ;;  %v869_v25 = vadd.f32 %v3028_v15, %v3381_v24 }
 0x3a4   :  { %v1285_v11 = vrot.slane %v869_v25, 7 }
 0x3a7   :  { %v1800_v23 = vld [vmem:[#allocation1] sm:$0xff] }
 0x3a8   :  { %1801 = vst [vmem:[#allocation1] ss:$9 sm:$0xff] %v866_v30  ;;  %2111 = vperm.xlu2 %2455, %v1800_v23   ;;  %v1270_v30 = vrot.slane %v867_v19, 6  ;;  %v2073_v23 = vpop.permute.xlu0 %2072 }
 0x3a9   :  { %1802 = vst [vmem:[#allocation1 + $0x1] ss:$9 sm:$0xff] %v1258_v36  ;;  %v2076_v36 = vpop.permute.xlu2 %2075 }
 0x3aa   :  { %1803 = vst [vmem:[#allocation1 + $0x2] ss:$9 sm:$0xff] %v1259_v35  ;;  %v2263_v35 = vperm.slane %v2073_v23, %v3472_v39  ;;  %v2265_v47 = vperm.slane %v2076_v36, %v3488_v33 }
 0x3ab   :  { %1804 = vst [vmem:[#allocation1 + $0x3] ss:$9 sm:$0xff] %v1260_v52  ;;  %v1272_v52 = vrot.slane %v868_v2, 1 }
 0x3ac   :  { %1805 = vst [vmem:[#allocation1 + $0x4] ss:$9 sm:$0xff] %v1261_v13  ;;  %v2264_v14 = vsel %vm2230_vm15, %v2263_v35, %v2262_v20 }
 0x3ad   :  { %1806 = vst [vmem:[#allocation1 + $0x5] ss:$9 sm:$0xff] %v1262_v29  ;;  %v1273_v29 = vrot.slane %v868_v2, 2  ;;  %v3530_v1 = vsel %vm2234_vm0, %v2265_v47, %v2264_v14 }
 0x3ae   :  { %1807 = vst [vmem:[#allocation1 + $0x6] ss:$9 sm:$0xff] %v1263_v18  ;;  %v1274_v18 = vrot.slane %v868_v2, 3 }
 0x3af   :  { %1808 = vst [vmem:[#allocation1 + $0x7] ss:$9 sm:$0xff] %v1264_v4  ;;  %v1275_v4 = vrot.slane %v868_v2, 4 }
 0x3b6   :  { %v1809_v10 = vld [vmem:[#allocation1] sm:$0xff] }
 0x3b7   :  { %1810 = vst [vmem:[#allocation1] ss:$9 sm:$0xff] %v867_v19  ;;  %2114 = vperm.xlu1 %2454, %v1809_v10   ;;  %v1279_v10 = vrot.slane %v869_v25, 1 }
 0x3b8   :  { %1811 = vst [vmem:[#allocation1 + $0x1] ss:$9 sm:$0xff] %v1265_v41  ;;  %v1280_v41 = vrot.slane %v869_v25, 2 }
 0x3b9   :  { %1812 = vst [vmem:[#allocation1 + $0x2] ss:$9 sm:$0xff] %v1266_v6  ;;  %v1281_v6 = vrot.slane %v869_v25, 3 }
 0x3ba   :  { %1813 = vst [vmem:[#allocation1 + $0x3] ss:$9 sm:$0xff] %v1267_v12  ;;  %v1282_v12 = vrot.slane %v869_v25, 4 }
 0x3bb   :  { %1814 = vst [vmem:[#allocation1 + $0x4] ss:$9 sm:$0xff] %v1268_v0  ;;  %v1283_v0 = vrot.slane %v869_v25, 5 }
 0x3bc   :  { %1815 = vst [vmem:[#allocation1 + $0x5] ss:$9 sm:$0xff] %v1269_v49  ;;  %v1284_v49 = vrot.slane %v869_v25, 6 }
 0x3bd   :  { %1816 = vst [vmem:[#allocation1 + $0x6] ss:$9 sm:$0xff] %v1270_v30  ;;  %v2079_v30 = vpop.permute.xlu1 %2078 }
 0x3be   :  { %1817 = vst [vmem:[#allocation1 + $0x7] ss:$9 sm:$0xff] %v1271_v40  ;;  %v2082_v40 = vpop.permute.xlu0 %2081  ;;  %v2267_v24 = vperm.slane %v2079_v30, %v3392_v8 }
 0x3bf   :  { %v2268_v62 = vperm.slane %v2082_v40, %v3395_v42 }
 0x3c1   :  { %v3537_v20 = vsel %vm2178_vm2, %v2268_v62, %v2267_v24 }
 0x3c5   :  { %v1818_v13 = vld [vmem:[#allocation1] sm:$0xff] }
 0x3c6   :  { %1819 = vst [vmem:[#allocation1] ss:$9 sm:$0xff] %v868_v2  ;;  %2117 = vperm.xlu0 %2453, %v1818_v13   ;;  %v870_v2 = vadd.f32 %v3028_v15, %v3361_v34  ;;  %v871_v34 = vadd.f32 %v3028_v15, %v3357_v27  ;;  %v872_v27 = vadd.f32 %v3028_v15, %v3345_v22 }
 0x3c7   :  { %1820 = vst [vmem:[#allocation1 + $0x1] ss:$9 sm:$0xff] %v1272_v52  ;;  %v873_v22 = vadd.f32 %v3028_v15, %v3369_v63  ;;  %v874_v63 = vadd.f32 %v3028_v15, %v3365_v26 }
 0x3c8   :  { %1821 = vst [vmem:[#allocation1 + $0x2] ss:$9 sm:$0xff] %v1273_v29  ;;  %v1286_v36 = vrot.slane %v870_v2, 1  ;;  %v1287_v35 = vrot.slane %v870_v2, 2  ;;  %v1288_v52 = vrot.slane %v870_v2, 3  ;;  %v1289_v13 = vrot.slane %v870_v2, 4 }
 0x3c9   :  { %1822 = vst [vmem:[#allocation1 + $0x3] ss:$9 sm:$0xff] %v1274_v18  ;;  %v1290_v47 = vrot.slane %v870_v2, 5  ;;  %v1291_v29 = vrot.slane %v870_v2, 6  ;;  %v1292_v14 = vrot.slane %v870_v2, 7  ;;  %v1293_v18 = vrot.slane %v871_v34, 1 }
 0x3ca   :  { %1823 = vst [vmem:[#allocation1 + $0x4] ss:$9 sm:$0xff] %v1275_v4  ;;  %v1304_v30 = vrot.slane %v872_v27, 5  ;;  %v1306_v40 = vrot.slane %v872_v27, 7  ;;  %v1307_v24 = vrot.slane %v873_v22, 1 }
 0x3cb   :  { %1824 = vst [vmem:[#allocation1 + $0x5] ss:$9 sm:$0xff] %v1276_v16  ;;  %v1294_v16 = vrot.slane %v871_v34, 2 }
 0x3cc   :  { %1825 = vst [vmem:[#allocation1 + $0x6] ss:$9 sm:$0xff] %v1277_v55  ;;  %v1295_v55 = vrot.slane %v871_v34, 3 }
 0x3cd   :  { %1826 = vst [vmem:[#allocation1 + $0x7] ss:$9 sm:$0xff] %v1278_v46  ;;  %v1296_v46 = vrot.slane %v871_v34, 4 }
 0x3d4   :  { %v1827_v19 = vld [vmem:[#allocation1] sm:$0xff] }
 0x3d5   :  { %1828 = vst [vmem:[#allocation1] ss:$9 sm:$0xff] %v869_v25  ;;  %2120 = vperm.xlu2 %2455, %v1827_v19   ;;  %v1297_v25 = vrot.slane %v871_v34, 5  ;;  %v1298_v19 = vrot.slane %v871_v34, 6 }
 0x3d6   :  { %1829 = vst [vmem:[#allocation1 + $0x1] ss:$9 sm:$0xff] %v1279_v10  ;;  %v1299_v10 = vrot.slane %v871_v34, 7 }
 0x3d7   :  { %1830 = vst [vmem:[#allocation1 + $0x2] ss:$9 sm:$0xff] %v1280_v41  ;;  %v1300_v41 = vrot.slane %v872_v27, 1 }
 0x3d8   :  { %1831 = vst [vmem:[#allocation1 + $0x3] ss:$9 sm:$0xff] %v1281_v6 }
 0x3d9   :  { %1832 = vst [vmem:[#allocation1 + $0x4] ss:$9 sm:$0xff] %v1282_v12  ;;  %v1301_v12 = vrot.slane %v872_v27, 2 }
 0x3da   :  { %1833 = vst [vmem:[#allocation1 + $0x5] ss:$9 sm:$0xff] %v1283_v0  ;;  %v1302_v0 = vrot.slane %v872_v27, 3 }
 0x3db   :  { %1834 = vst [vmem:[#allocation1 + $0x6] ss:$9 sm:$0xff] %v1284_v49  ;;  %v1303_v49 = vrot.slane %v872_v27, 4 }
 0x3dc   :  { %1835 = vst [vmem:[#allocation1 + $0x7] ss:$9 sm:$0xff] %v1285_v11  ;;  %v1305_v11 = vrot.slane %v872_v27, 6 }
 0x3e3   :  { %v1836_v23 = vld [vmem:[#allocation1] sm:$0xff] }
 0x3e4   :  { %1837 = vst [vmem:[#allocation1] ss:$9 sm:$0xff] %v870_v2  ;;  %2123 = vperm.xlu1 %2454, %v1836_v23   ;;  %v1308_v2 = vrot.slane %v873_v22, 2  ;;  %v1310_v23 = vrot.slane %v873_v22, 4 }
 0x3e5   :  { %1838 = vst [vmem:[#allocation1 + $0x1] ss:$9 sm:$0xff] %v1286_v36  ;;  %v1309_v36 = vrot.slane %v873_v22, 3 }
 0x3e6   :  { %1839 = vst [vmem:[#allocation1 + $0x2] ss:$9 sm:$0xff] %v1287_v35  ;;  %v1311_v35 = vrot.slane %v873_v22, 5 }
 0x3e7   :  { %1840 = vst [vmem:[#allocation1 + $0x3] ss:$9 sm:$0xff] %v1288_v52  ;;  %v1312_v52 = vrot.slane %v873_v22, 6 }
 0x3e8   :  { %1841 = vst [vmem:[#allocation1 + $0x4] ss:$9 sm:$0xff] %v1289_v13  ;;  %v1313_v13 = vrot.slane %v873_v22, 7 }
 0x3e9   :  { %1842 = vst [vmem:[#allocation1 + $0x5] ss:$9 sm:$0xff] %v1290_v47  ;;  %v1314_v47 = vrot.slane %v874_v63, 1 }
 0x3ea   :  { %1843 = vst [vmem:[#allocation1 + $0x6] ss:$9 sm:$0xff] %v1291_v29 }
 0x3eb   :  { %1844 = vst [vmem:[#allocation1 + $0x7] ss:$9 sm:$0xff] %v1292_v14  ;;  %v1315_v14 = vrot.slane %v874_v63, 2 }
 0x3f2   :  { %v1845_v4 = vld [vmem:[#allocation1] sm:$0xff] }
 0x3f3   :  { %1846 = vst [vmem:[#allocation1] ss:$9 sm:$0xff] %v871_v34  ;;  %2126 = vperm.xlu0 %2453, %v1845_v4   ;;  %v1316_v34 = vrot.slane %v874_v63, 3  ;;  %v1317_v4 = vrot.slane %v874_v63, 4 }
 0x3f4   :  { %1847 = vst [vmem:[#allocation1 + $0x1] ss:$9 sm:$0xff] %v1293_v18  ;;  %v2329_v18 = vrot.slane %v3530_v1, 7 }
 0x3f5   :  { %1848 = vst [vmem:[#allocation1 + $0x2] ss:$9 sm:$0xff] %v1294_v16  ;;  %v1318_v16 = vrot.slane %v874_v63, 5 }
 0x3f6   :  { %1849 = vst [vmem:[#allocation1 + $0x3] ss:$9 sm:$0xff] %v1295_v55  ;;  %v1319_v55 = vrot.slane %v874_v63, 6  ;;  %v3551_v26 = vsel %vm2332_vm1, %v3492_v51, %v2329_v18 }
 0x3f7   :  { %1850 = vst [vmem:[#allocation1 + $0x4] ss:$9 sm:$0xff] %v1296_v46  ;;  %v1320_v46 = vrot.slane %v874_v63, 7 }
 0x3f8   :  { %1851 = vst [vmem:[#allocation1 + $0x5] ss:$9 sm:$0xff] %v1297_v25  ;;  %v875_v25 = vadd.f32 %v3028_v15, %v3351_v61  ;;  %v876_v61 = vadd.f32 %v3028_v15, %v3375_v45  ;;  %v877_v45 = vadd.f32 %v3028_v15, %v3371_v44  ;;  %v878_v44 = vadd.f32 %v3028_v15, %v3359_v31 }
 0x3f9   :  { %1852 = vst [vmem:[#allocation1 + $0x6] ss:$9 sm:$0xff] %v1298_v19  ;;  %v879_v31 = vadd.f32 %v3028_v15, %v3383_v59  ;;  %v880_v59 = vadd.f32 %v3028_v15, %v3379_v57  ;;  %v881_v57 = vadd.f32 %v3028_v15, %v3367_v50  ;;  %v882_v50 = vadd.f32 %v3028_v15, %v3389_v3 }
 0x3fa   :  { %1853 = vst [vmem:[#allocation1 + $0x7] ss:$9 sm:$0xff] %v1299_v10  ;;  %v1321_v19 = vrot.slane %v875_v25, 1  ;;  %v1322_v10 = vrot.slane %v875_v25, 2  ;;  %v1327_v51 = vrot.slane %v875_v25, 7  ;;  %v1344_v18 = vrot.slane %v878_v44, 3 }
 0x3fb   :  { %v883_v3 = vadd.f32 %v3028_v15, %v3387_v38  ;;  %v884_v38 = vadd.f32 %v3028_v15, %v3373_v28  ;;  %v885_v28 = vadd.f32 %v3028_v15, %v3399_v7  ;;  %v2088_v15 = vpop.permute.xlu1 %2087  ;;  %v2085_v7 = vpop.permute.xlu2 %2084 }
 0x401   :  { %v1854_v6 = vld [vmem:[#allocation1] sm:$0xff] }
 0x402   :  { %1855 = vst [vmem:[#allocation1] ss:$9 sm:$0xff] %v872_v27  ;;  %2129 = vperm.xlu2 %2455, %v1854_v6   ;;  %v1323_v27 = vrot.slane %v875_v25, 3  ;;  %v1325_v6 = vrot.slane %v875_v25, 5 }
 0x403   :  { %1856 = vst [vmem:[#allocation1 + $0x1] ss:$9 sm:$0xff] %v1300_v41  ;;  %v1324_v41 = vrot.slane %v875_v25, 4 }
 0x404   :  { %1857 = vst [vmem:[#allocation1 + $0x2] ss:$9 sm:$0xff] %v1301_v12  ;;  %v1326_v12 = vrot.slane %v875_v25, 6 }
 0x405   :  { %1858 = vst [vmem:[#allocation1 + $0x3] ss:$9 sm:$0xff] %v1302_v0  ;;  %v1328_v0 = vrot.slane %v876_v61, 1 }
 0x406   :  { %1859 = vst [vmem:[#allocation1 + $0x4] ss:$9 sm:$0xff] %v1303_v49 }
 0x407   :  { %1860 = vst [vmem:[#allocation1 + $0x5] ss:$9 sm:$0xff] %v1304_v30  ;;  %v1329_v30 = vrot.slane %v876_v61, 2 }
 0x408   :  { %1861 = vst [vmem:[#allocation1 + $0x6] ss:$9 sm:$0xff] %v1305_v11  ;;  %v1330_v11 = vrot.slane %v876_v61, 3 }
 0x409   :  { %1862 = vst [vmem:[#allocation1 + $0x7] ss:$9 sm:$0xff] %v1306_v40  ;;  %v1331_v40 = vrot.slane %v876_v61, 4 }
 0x410   :  { %v1863_v62 = vld [vmem:[#allocation1] sm:$0xff] }
 0x411   :  { %2132 = vperm.xlu1 %2454, %v1863_v62   ;;  %1864 = vst [vmem:[#allocation1] ss:$9 sm:$0xff] %v873_v22  ;;  %v1332_v22 = vrot.slane %v876_v61, 5  ;;  %v1334_v62 = vrot.slane %v876_v61, 7 }
 0x412   :  { %1865 = vst [vmem:[#allocation1 + $0x1] ss:$9 sm:$0xff] %v1307_v24  ;;  %v1333_v24 = vrot.slane %v876_v61, 6 }
 0x413   :  { %1866 = vst [vmem:[#allocation1 + $0x2] ss:$9 sm:$0xff] %v1308_v2  ;;  %v1335_v2 = vrot.slane %v877_v45, 1 }
 0x414   :  { %1867 = vst [vmem:[#allocation1 + $0x3] ss:$9 sm:$0xff] %v1309_v36 }
 0x415   :  { %1868 = vst [vmem:[#allocation1 + $0x4] ss:$9 sm:$0xff] %v1310_v23  ;;  %v1336_v23 = vrot.slane %v877_v45, 2 }
 0x416   :  { %1869 = vst [vmem:[#allocation1 + $0x5] ss:$9 sm:$0xff] %v1311_v35  ;;  %v1337_v35 = vrot.slane %v877_v45, 3 }
 0x417   :  { %1870 = vst [vmem:[#allocation1 + $0x6] ss:$9 sm:$0xff] %v1312_v52  ;;  %v1338_v52 = vrot.slane %v877_v45, 4 }
 0x418   :  { %1871 = vst [vmem:[#allocation1 + $0x7] ss:$9 sm:$0xff] %v1313_v13  ;;  %v1339_v13 = vrot.slane %v877_v45, 5 }
 0x41f   :  { %v1872_v29 = vld [vmem:[#allocation1] sm:$0xff] }
 0x420   :  { %2135 = vperm.xlu0 %2453, %v1872_v29   ;;  %1873 = vst [vmem:[#allocation1] ss:$9 sm:$0xff] %v874_v63  ;;  %v1340_v63 = vrot.slane %v877_v45, 6  ;;  %v1342_v29 = vrot.slane %v878_v44, 1 }
 0x421   :  { %1874 = vst [vmem:[#allocation1 + $0x1] ss:$9 sm:$0xff] %v1314_v47  ;;  %v1341_v47 = vrot.slane %v877_v45, 7 }
 0x422   :  { %1875 = vst [vmem:[#allocation1 + $0x2] ss:$9 sm:$0xff] %v1315_v14 }
 0x423   :  { %1876 = vst [vmem:[#allocation1 + $0x3] ss:$9 sm:$0xff] %v1316_v34  ;;  %v1343_v34 = vrot.slane %v878_v44, 2 }
 0x424   :  { %1877 = vst [vmem:[#allocation1 + $0x4] ss:$9 sm:$0xff] %v1317_v4  ;;  %v1345_v4 = vrot.slane %v878_v44, 4 }
 0x425   :  { %1878 = vst [vmem:[#allocation1 + $0x5] ss:$9 sm:$0xff] %v1318_v16  ;;  %v1346_v16 = vrot.slane %v878_v44, 5 }
 0x426   :  { %1879 = vst [vmem:[#allocation1 + $0x6] ss:$9 sm:$0xff] %v1319_v55  ;;  %v1347_v55 = vrot.slane %v878_v44, 6 }
 0x427   :  { %1880 = vst [vmem:[#allocation1 + $0x7] ss:$9 sm:$0xff] %v1320_v46  ;;  %v1348_v46 = vrot.slane %v878_v44, 7 }
 0x42e   :  { %v1881_v1 = vld [vmem:[#allocation1] sm:$0xff] }
 0x42f   :  { %2138 = vperm.xlu2 %2455, %v1881_v1   ;;  %1882 = vst [vmem:[#allocation1] ss:$9 sm:$0xff] %v875_v25  ;;  %v1349_v25 = vrot.slane %v879_v31, 1  ;;  %v1350_v1 = vrot.slane %v879_v31, 2 }
 0x430   :  { %1883 = vst [vmem:[#allocation1 + $0x1] ss:$9 sm:$0xff] %v1321_v19 }
 0x431   :  { %1884 = vst [vmem:[#allocation1 + $0x2] ss:$9 sm:$0xff] %v1322_v10  ;;  %v1351_v10 = vrot.slane %v879_v31, 3 }
 0x432   :  { %1885 = vst [vmem:[#allocation1 + $0x3] ss:$9 sm:$0xff] %v1323_v27  ;;  %v1352_v27 = vrot.slane %v879_v31, 4 }
 0x433   :  { %1886 = vst [vmem:[#allocation1 + $0x4] ss:$9 sm:$0xff] %v1324_v41  ;;  %v1353_v41 = vrot.slane %v879_v31, 5 }
 0x434   :  { %1887 = vst [vmem:[#allocation1 + $0x5] ss:$9 sm:$0xff] %v1325_v6  ;;  %v1354_v6 = vrot.slane %v879_v31, 6 }
 0x435   :  { %1888 = vst [vmem:[#allocation1 + $0x6] ss:$9 sm:$0xff] %v1326_v12  ;;  %v1355_v12 = vrot.slane %v879_v31, 7 }
 0x436   :  { %1889 = vst [vmem:[#allocation1 + $0x7] ss:$9 sm:$0xff] %v1327_v51  ;;  %v1356_v51 = vrot.slane %v880_v59, 1 }
 0x43d   :  { %v1890_v49 = vld [vmem:[#allocation1] sm:$0xff] }
 0x43e   :  { %2141 = vperm.xlu1 %2454, %v1890_v49   ;;  %1891 = vst [vmem:[#allocation1] ss:$9 sm:$0xff] %v876_v61  ;;  %v1358_v49 = vrot.slane %v880_v59, 3 }
 0x43f   :  { %1892 = vst [vmem:[#allocation1 + $0x1] ss:$9 sm:$0xff] %v1328_v0  ;;  %v1357_v0 = vrot.slane %v880_v59, 2 }
 0x440   :  { %1893 = vst [vmem:[#allocation1 + $0x2] ss:$9 sm:$0xff] %v1329_v30  ;;  %v1359_v30 = vrot.slane %v880_v59, 4 }
 0x441   :  { %1894 = vst [vmem:[#allocation1 + $0x3] ss:$9 sm:$0xff] %v1330_v11  ;;  %v1360_v11 = vrot.slane %v880_v59, 5 }
 0x442   :  { %1895 = vst [vmem:[#allocation1 + $0x4] ss:$9 sm:$0xff] %v1331_v40  ;;  %v1361_v40 = vrot.slane %v880_v59, 6 }
 0x443   :  { %1896 = vst [vmem:[#allocation1 + $0x5] ss:$9 sm:$0xff] %v1332_v22  ;;  %v1362_v22 = vrot.slane %v880_v59, 7 }
 0x444   :  { %1897 = vst [vmem:[#allocation1 + $0x6] ss:$9 sm:$0xff] %v1333_v24  ;;  %v1363_v24 = vrot.slane %v881_v57, 1 }
 0x445   :  { %1898 = vst [vmem:[#allocation1 + $0x7] ss:$9 sm:$0xff] %v1334_v62 }
 0x44c   :  { %v1899_v36 = vld [vmem:[#allocation1] sm:$0xff] }
 0x44d   :  { %2144 = vperm.xlu0 %2453, %v1899_v36   ;;  %1900 = vst [vmem:[#allocation1] ss:$9 sm:$0xff] %v877_v45  ;;  %v1364_v45 = vrot.slane %v881_v57, 2  ;;  %v1366_v36 = vrot.slane %v881_v57, 4 }
 0x44e   :  { %1901 = vst [vmem:[#allocation1 + $0x1] ss:$9 sm:$0xff] %v1335_v2  ;;  %v1365_v2 = vrot.slane %v881_v57, 3 }
 0x44f   :  { %1902 = vst [vmem:[#allocation1 + $0x2] ss:$9 sm:$0xff] %v1336_v23  ;;  %v1367_v23 = vrot.slane %v881_v57, 5 }
 0x450   :  { %1903 = vst [vmem:[#allocation1 + $0x3] ss:$9 sm:$0xff] %v1337_v35  ;;  %v1368_v35 = vrot.slane %v881_v57, 6 }
 0x451   :  { %1904 = vst [vmem:[#allocation1 + $0x4] ss:$9 sm:$0xff] %v1338_v52  ;;  %v1369_v52 = vrot.slane %v881_v57, 7 }
 0x452   :  { %1905 = vst [vmem:[#allocation1 + $0x5] ss:$9 sm:$0xff] %v1339_v13  ;;  %v1370_v13 = vrot.slane %v882_v50, 1 }
 0x453   :  { %1906 = vst [vmem:[#allocation1 + $0x6] ss:$9 sm:$0xff] %v1340_v63 }
 0x454   :  { %1907 = vst [vmem:[#allocation1 + $0x7] ss:$9 sm:$0xff] %v1341_v47  ;;  %v1371_v47 = vrot.slane %v882_v50, 2 }
 0x45b   :  { %v1908_v14 = vld [vmem:[#allocation1] sm:$0xff] }
 0x45c   :  { %2147 = vperm.xlu2 %2455, %v1908_v14   ;;  %1909 = vst [vmem:[#allocation1] ss:$9 sm:$0xff] %v878_v44  ;;  %v1372_v44 = vrot.slane %v882_v50, 3  ;;  %v1374_v14 = vrot.slane %v882_v50, 5 }
 0x45d   :  { %1910 = vst [vmem:[#allocation1 + $0x1] ss:$9 sm:$0xff] %v1342_v29  ;;  %v1373_v29 = vrot.slane %v882_v50, 4 }
 0x45e   :  { %1911 = vst [vmem:[#allocation1 + $0x2] ss:$9 sm:$0xff] %v1343_v34  ;;  %v1375_v34 = vrot.slane %v882_v50, 6 }
 0x45f   :  { %1912 = vst [vmem:[#allocation1 + $0x3] ss:$9 sm:$0xff] %v1344_v18  ;;  %v1376_v18 = vrot.slane %v882_v50, 7 }
 0x460   :  { %1913 = vst [vmem:[#allocation1 + $0x4] ss:$9 sm:$0xff] %v1345_v4  ;;  %v1377_v4 = vrot.slane %v883_v3, 1 }
 0x461   :  { %1914 = vst [vmem:[#allocation1 + $0x5] ss:$9 sm:$0xff] %v1346_v16 }
 0x462   :  { %1915 = vst [vmem:[#allocation1 + $0x6] ss:$9 sm:$0xff] %v1347_v55  ;;  %v1378_v55 = vrot.slane %v883_v3, 2 }
 0x463   :  { %1916 = vst [vmem:[#allocation1 + $0x7] ss:$9 sm:$0xff] %v1348_v46  ;;  %v1379_v46 = vrot.slane %v883_v3, 3 }
 0x46a   :  { %v1917_v19 = vld [vmem:[#allocation1] sm:$0xff] }
 0x46b   :  { %2150 = vperm.xlu1 %2454, %v1917_v19   ;;  %1918 = vst [vmem:[#allocation1] ss:$9 sm:$0xff] %v879_v31  ;;  %v1380_v31 = vrot.slane %v883_v3, 4  ;;  %v1382_v19 = vrot.slane %v883_v3, 6 }
 0x46c   :  { %1919 = vst [vmem:[#allocation1 + $0x1] ss:$9 sm:$0xff] %v1349_v25  ;;  %v1381_v25 = vrot.slane %v883_v3, 5 }
 0x46d   :  { %1920 = vst [vmem:[#allocation1 + $0x2] ss:$9 sm:$0xff] %v1350_v1  ;;  %v1383_v1 = vrot.slane %v883_v3, 7 }
 0x46e   :  { %1921 = vst [vmem:[#allocation1 + $0x3] ss:$9 sm:$0xff] %v1351_v10  ;;  %v1384_v10 = vrot.slane %v884_v38, 1 }
 0x46f   :  { %1922 = vst [vmem:[#allocation1 + $0x4] ss:$9 sm:$0xff] %v1352_v27 }
 0x470   :  { %1923 = vst [vmem:[#allocation1 + $0x5] ss:$9 sm:$0xff] %v1353_v41  ;;  %v1385_v41 = vrot.slane %v884_v38, 2 }
 0x471   :  { %1924 = vst [vmem:[#allocation1 + $0x6] ss:$9 sm:$0xff] %v1354_v6  ;;  %v1386_v6 = vrot.slane %v884_v38, 3 }
 0x472   :  { %1925 = vst [vmem:[#allocation1 + $0x7] ss:$9 sm:$0xff] %v1355_v12  ;;  %v1387_v12 = vrot.slane %v884_v38, 4 }
 0x479   :  { %v1926_v61 = vld [vmem:[#allocation1] sm:$0xff] }
 0x47a   :  { %2153 = vperm.xlu0 %2453, %v1926_v61   ;;  %1927 = vst [vmem:[#allocation1] ss:$9 sm:$0xff] %v880_v59  ;;  %v1388_v59 = vrot.slane %v884_v38, 5  ;;  %v1390_v61 = vrot.slane %v884_v38, 7 }
 0x47b   :  { %1928 = vst [vmem:[#allocation1 + $0x1] ss:$9 sm:$0xff] %v1356_v51  ;;  %v1389_v51 = vrot.slane %v884_v38, 6 }
 0x47c   :  { %1929 = vst [vmem:[#allocation1 + $0x2] ss:$9 sm:$0xff] %v1357_v0  ;;  %v1391_v0 = vrot.slane %v885_v28, 1 }
 0x47d   :  { %1930 = vst [vmem:[#allocation1 + $0x3] ss:$9 sm:$0xff] %v1358_v49 }
 0x47e   :  { %1931 = vst [vmem:[#allocation1 + $0x4] ss:$9 sm:$0xff] %v1359_v30  ;;  %v1392_v30 = vrot.slane %v885_v28, 2 }
 0x47f   :  { %1932 = vst [vmem:[#allocation1 + $0x5] ss:$9 sm:$0xff] %v1360_v11  ;;  %v1393_v11 = vrot.slane %v885_v28, 3 }
 0x480   :  { %1933 = vst [vmem:[#allocation1 + $0x6] ss:$9 sm:$0xff] %v1361_v40  ;;  %v1394_v40 = vrot.slane %v885_v28, 4 }
 0x481   :  { %1934 = vst [vmem:[#allocation1 + $0x7] ss:$9 sm:$0xff] %v1362_v22  ;;  %v1395_v22 = vrot.slane %v885_v28, 5 }
 0x488   :  { %v1935_v62 = vld [vmem:[#allocation1] sm:$0xff] }
 0x489   :  { %2156 = vperm.xlu2 %2455, %v1935_v62   ;;  %1936 = vst [vmem:[#allocation1] ss:$9 sm:$0xff] %v881_v57  ;;  %v1396_v57 = vrot.slane %v885_v28, 6 }
 0x48a   :  { %1937 = vst [vmem:[#allocation1 + $0x1] ss:$9 sm:$0xff] %v1363_v24  ;;  %v1397_v24 = vrot.slane %v885_v28, 7 }
 0x48b   :  { %1938 = vst [vmem:[#allocation1 + $0x2] ss:$9 sm:$0xff] %v1364_v45  ;;  %v2091_v45 = vpop.permute.xlu0 %2090 }
 0x48c   :  { %1939 = vst [vmem:[#allocation1 + $0x3] ss:$9 sm:$0xff] %v1365_v2  ;;  %v2097_v2 = vpop.permute.xlu1 %2096 }
 0x48d   :  { %1940 = vst [vmem:[#allocation1 + $0x4] ss:$9 sm:$0xff] %v1366_v36  ;;  %v2094_v36 = vpop.permute.xlu2 %2093 }
 0x48e   :  { %1941 = vst [vmem:[#allocation1 + $0x5] ss:$9 sm:$0xff] %v1367_v23 }
 0x48f   :  { %1942 = vst [vmem:[#allocation1 + $0x6] ss:$9 sm:$0xff] %v1368_v35 }
 0x490   :  { %1943 = vst [vmem:[#allocation1 + $0x7] ss:$9 sm:$0xff] %v1369_v52 }
 0x493   :  { %v2100_v23 = vpop.permute.xlu0 %2099 }
 0x494   :  { %v2106_v35 = vpop.permute.xlu1 %2105 }
 0x495   :  { %v2103_v52 = vpop.permute.xlu2 %2102 }
 0x497   :  { %v1944_v63 = vld [vmem:[#allocation1] sm:$0xff] }
 0x498   :  { %2159 = vperm.xlu1 %2454, %v1944_v63   ;;  %1945 = vst [vmem:[#allocation1] ss:$9 sm:$0xff] %v882_v50 }
 0x499   :  { %1946 = vst [vmem:[#allocation1 + $0x1] ss:$9 sm:$0xff] %v1370_v13 }
 0x49a   :  { %1947 = vst [vmem:[#allocation1 + $0x2] ss:$9 sm:$0xff] %v1371_v47 }
 0x49b   :  { %1948 = vst [vmem:[#allocation1 + $0x3] ss:$9 sm:$0xff] %v1372_v44  ;;  %v2109_v50 = vpop.permute.xlu0 %2108 }
 0x49c   :  { %1949 = vst [vmem:[#allocation1 + $0x4] ss:$9 sm:$0xff] %v1373_v29  ;;  %v3575_v13 = vpop.permute.xlu1 %2114 }
 0x49d   :  { %1950 = vst [vmem:[#allocation1 + $0x5] ss:$9 sm:$0xff] %v1374_v14  ;;  %v2112_v63 = vpop.permute.xlu2 %2111 }
 0x49e   :  { %1951 = vst [vmem:[#allocation1 + $0x6] ss:$9 sm:$0xff] %v1375_v34 }
 0x49f   :  { %1952 = vst [vmem:[#allocation1 + $0x7] ss:$9 sm:$0xff] %v1376_v18 }
 0x4a3   :  { %v3577_v47 = vpop.permute.xlu0 %2117 }
 0x4a4   :  { %v3579_v44 = vpop.permute.xlu1 %2123 }
 0x4a5   :  { %v3581_v29 = vpop.permute.xlu2 %2120 }
 0x4a6   :  { %v1953_v16 = vld [vmem:[#allocation1] sm:$0xff] }
 0x4a7   :  { %2162 = vperm.xlu0 %2453, %v1953_v16   ;;  %1954 = vst [vmem:[#allocation1] ss:$9 sm:$0xff] %v883_v3 }
 0x4a8   :  { %1955 = vst [vmem:[#allocation1 + $0x1] ss:$9 sm:$0xff] %v1377_v4 }
 0x4a9   :  { %1956 = vst [vmem:[#allocation1 + $0x2] ss:$9 sm:$0xff] %v1378_v55 }
 0x4aa   :  { %1957 = vst [vmem:[#allocation1 + $0x3] ss:$9 sm:$0xff] %v1379_v46  ;;  %v2272_v46 = vperm.slane %v2088_v15, %v3420_v58  ;;  %v2286_v15 = vperm.slane %v2109_v50, %v3449_v60  ;;  %v2290_v50 = vperm.slane %v3575_v13, %v3475_v48 }
 0x4ab   :  { %1958 = vst [vmem:[#allocation1 + $0x4] ss:$9 sm:$0xff] %v1380_v31  ;;  %v2127_v14 = vpop.permute.xlu0 %2126 }
 0x4ac   :  { %1959 = vst [vmem:[#allocation1 + $0x5] ss:$9 sm:$0xff] %v1381_v25  ;;  %v2133_v34 = vpop.permute.xlu1 %2132  ;;  %v2298_v31 = vperm.slane %v2127_v14, %v3392_v8  ;;  %v2270_v25 = vperm.slane %v2085_v7, %v3407_v9 }
 0x4ad   :  { %1960 = vst [vmem:[#allocation1 + $0x6] ss:$9 sm:$0xff] %v1382_v19  ;;  %v2130_v18 = vpop.permute.xlu2 %2129  ;;  %v2274_v19 = vperm.slane %v2091_v45, %v3412_v53 }
 0x4ae   :  { %1961 = vst [vmem:[#allocation1 + $0x7] ss:$9 sm:$0xff] %v1383_v1  ;;  %v2301_v1 = vperm.slane %v2133_v34, %v3407_v9  ;;  %v2276_v9 = vperm.slane %v2094_v36, %v3415_v21 }
 0x4b3   :  { %v2136_v3 = vpop.permute.xlu0 %2135 }
 0x4b4   :  { %v2142_v4 = vpop.permute.xlu1 %2141 }
 0x4b5   :  { %v1962_v27 = vld [vmem:[#allocation1] sm:$0xff]  ;;  %v2139_v16 = vpop.permute.xlu2 %2138 }
 0x4b6   :  { %2165 = vperm.xlu2 %2455, %v1962_v27   ;;  %1963 = vst [vmem:[#allocation1] ss:$9 sm:$0xff] %v884_v38  ;;  %v2299_v38 = vperm.slane %v2130_v18, %v3395_v42  ;;  %v2280_v42 = vperm.slane %v2100_v23, %v3431_v43 }
 0x4b7   :  { %1964 = vst [vmem:[#allocation1 + $0x1] ss:$9 sm:$0xff] %v1384_v10  ;;  %v2303_v10 = vperm.slane %v2136_v3, %v3420_v58 }
 0x4b8   :  { %1965 = vst [vmem:[#allocation1 + $0x2] ss:$9 sm:$0xff] %v1385_v41  ;;  %v2271_v41 = vsel %vm2182_vm3, %v2270_v25, %v3537_v20 }
 0x4b9   :  { %1966 = vst [vmem:[#allocation1 + $0x3] ss:$9 sm:$0xff] %v1386_v6 }
 0x4ba   :  { %1967 = vst [vmem:[#allocation1 + $0x4] ss:$9 sm:$0xff] %v1387_v12  ;;  %v2273_v12 = vsel %vm2186_vm4, %v2272_v46, %v2271_v41 }
 0x4bb   :  { %1968 = vst [vmem:[#allocation1 + $0x5] ss:$9 sm:$0xff] %v1388_v59  ;;  %v2300_v59 = vsel %vm2178_vm2, %v2299_v38, %v2298_v31  ;;  %v2275_v8 = vsel %vm2190_vm5, %v2274_v19, %v2273_v12  ;;  %vm2334_vm2 = vcmask 1042434  }
 0x4bc   :  { %1969 = vst [vmem:[#allocation1 + $0x6] ss:$9 sm:$0xff] %v1389_v51  ;;  %v2278_v51 = vperm.slane %v2097_v2, %v3437_v5 }
 0x4bd   :  { %1970 = vst [vmem:[#allocation1 + $0x7] ss:$9 sm:$0xff] %v1390_v61  ;;  %v2148_v6 = vpop.permute.xlu2 %2147  ;;  %v2302_v61 = vsel %vm2182_vm3, %v2301_v1, %v2300_v59  ;;  %vm2336_vm3 = vcmask 1041408  }
 0x4be   :  { %v2304_v58 = vsel %vm2186_vm4, %v2303_v10, %v2302_v61  ;;  %v2311_v45 = vperm.slane %v2148_v6, %v3431_v43  ;;  %v2292_v43 = vperm.slane %v3577_v47, %v3467_v32  ;;  %v2296_v47 = vperm.slane %v3579_v44, %v3488_v33 }
 0x4bf   :  { %v2145_v55 = vpop.permute.xlu0 %2144  ;;  %vm2341_vm4 = vcmp.lt.s32.totalorder %v2173_v37, 512 }
 0x4c4   :  { %v1971_v49 = vld [vmem:[#allocation1] sm:$0xff] }
 0x4c5   :  { %2168 = vperm.xlu1 %2454, %v1971_v49   ;;  %1972 = vst [vmem:[#allocation1] ss:$9 sm:$0xff] %v885_v28  ;;  %v2307_v28 = vperm.slane %v2142_v4, %v3415_v21  ;;  %v2309_v49 = vperm.slane %v2145_v55, %v3437_v5  ;;  %v2282_v21 = vperm.slane %v2103_v52, %v3434_v17 }
 0x4c6   :  { %1973 = vst [vmem:[#allocation1 + $0x1] ss:$9 sm:$0xff] %v1391_v0  ;;  %v2305_v0 = vperm.slane %v2139_v16, %v3412_v53 }
 0x4c7   :  { %1974 = vst [vmem:[#allocation1 + $0x2] ss:$9 sm:$0xff] %v1392_v30  ;;  %v2277_v30 = vsel %vm2194_vm6, %v2276_v9, %v2275_v8 }
 0x4c8   :  { %1975 = vst [vmem:[#allocation1 + $0x3] ss:$9 sm:$0xff] %v1393_v11  ;;  %v2279_v11 = vsel %vm2198_vm7, %v2278_v51, %v2277_v30 }
 0x4c9   :  { %1976 = vst [vmem:[#allocation1 + $0x4] ss:$9 sm:$0xff] %v1394_v40  ;;  %v2306_v40 = vsel %vm2190_vm5, %v2305_v0, %v2304_v58 }
 0x4ca   :  { %1977 = vst [vmem:[#allocation1 + $0x5] ss:$9 sm:$0xff] %v1395_v22  ;;  %v2281_v22 = vsel %vm2202_vm8, %v2280_v42, %v2279_v11 }
 0x4cb   :  { %1978 = vst [vmem:[#allocation1 + $0x6] ss:$9 sm:$0xff] %v1396_v57  ;;  %v2284_v57 = vperm.slane %v2106_v35, %v3457_v56  ;;  %v2283_v36 = vsel %vm2206_vm9, %v2282_v21, %v2281_v22 }
 0x4cc   :  { %1979 = vst [vmem:[#allocation1 + $0x7] ss:$9 sm:$0xff] %v1397_v24  ;;  %v2308_v24 = vsel %vm2194_vm6, %v2307_v28, %v2306_v40 }
 0x4cd   :  { %v2310_v53 = vsel %vm2198_vm7, %v2309_v49, %v2308_v24  ;;  %v2285_v23 = vsel %vm2210_vm10, %v2284_v57, %v2283_v36 }
 0x4ce   :  { %v2312_v35 = vsel %vm2202_vm8, %v2311_v45, %v2310_v53  ;;  %v2287_v52 = vsel %vm2214_vm11, %v2286_v15, %v2285_v23 }
 0x4d3   :  { %v1980_v62 = vld [vmem:[#allocation1] sm:$0xff] }
 0x4d4   :  { %2171 = vperm.xlu0 %2453, %v1980_v62  }
 0x4dd   :  { %v2151_v27 = vpop.permute.xlu1 %2150 }
 0x4de   :  { %v2313_v7 = vperm.slane %v2151_v27, %v3434_v17  ;;  %v2288_v17 = vperm.slane %v2112_v63, %v3454_v54 }
 0x4e0   :  { %v2314_v34 = vsel %vm2206_vm9, %v2313_v7, %v2312_v35  ;;  %v2289_v16 = vsel %vm2218_vm12, %v2288_v17, %v2287_v52 }
 0x4e1   :  { %v2291_v13 = vsel %vm2222_vm13, %v2290_v50, %v2289_v16 }
 0x4e2   :  { %v2293_v63 = vsel %vm2226_vm14, %v2292_v43, %v2291_v13 }
 0x4e3   :  { %v2157_v5 = vpop.permute.xlu2 %2156 }
 0x4e4   :  { %v2317_v3 = vperm.slane %v2157_v5, %v3449_v60  ;;  %v2294_v60 = vperm.slane %v3581_v29, %v3472_v39 }
 0x4e6   :  { %v2295_v1 = vsel %vm2230_vm15, %v2294_v60, %v2293_v63 }
 0x4e7   :  { %v2297_v10 = vsel %vm2234_vm0, %v2296_v47, %v2295_v1 }
 0x4ec   :  { %v2154_v20 = vpop.permute.xlu0 %2153 }
 0x4ed   :  { %v2315_v2 = vperm.slane %v2154_v20, %v3457_v56 }
 0x4ef   :  { %v2316_v56 = vsel %vm2210_vm10, %v2315_v2, %v2314_v34 }
 0x4f0   :  { %v2318_v31 = vsel %vm2214_vm11, %v2317_v3, %v2316_v56 }
 0x50a   :  { %v2160_v62 = vpop.permute.xlu1 %2159 }
 0x50b   :  { %v2319_v18 = vperm.slane %v2160_v62, %v3454_v54 }
 0x50d   :  { %v2320_v25 = vsel %vm2218_vm12, %v2319_v18, %v2318_v31 }
 0x510   :  { %v2166_v46 = vpop.permute.xlu2 %2165 }
 0x511   :  { %v2323_v19 = vperm.slane %v2166_v46, %v3467_v32  ;;  %v2330_v32 = vrot.slane %v2297_v10, 6 }
 0x519   :  { %v2163_v14 = vpop.permute.xlu0 %2162 }
 0x51a   :  { %v2321_v4 = vperm.slane %v2163_v14, %v3475_v48 }
 0x51c   :  { %v2322_v54 = vsel %vm2222_vm13, %v2321_v4, %v2320_v25 }
 0x51d   :  { %v2324_v27 = vsel %vm2226_vm14, %v2323_v19, %v2322_v54 }
 0x537   :  { %v2169_v55 = vpop.permute.xlu1 %2168 }
 0x538   :  { %v2325_v48 = vperm.slane %v2169_v55, %v3472_v39 }
 0x53a   :  { %v2326_v41 = vsel %vm2230_vm15, %v2325_v48, %v2324_v27 }
 0x546   :  { %v2172_v38 = vpop.permute.xlu0 %2171 }
 0x547   :  { %v2327_v44 = vperm.slane %v2172_v38, %v3488_v33 }
 0x549   :  { %v2328_v6 = vsel %vm2234_vm0, %v2327_v44, %v2326_v41 }
 0x54a   :  { %v2331_v39 = vrot.slane %v2328_v6, 5 }
 0x54c   :  { %v2335_v29 = vsel %vm2334_vm2, %v2330_v32, %v2331_v39 }
 0x54d   :  { %v2337_v33 = vsel %vm2336_vm3, %v3551_v26, %v2335_v29 }
 0x54e   :  { %2343 = vst.msk [vmem:[#allocation2] sm:$0xf] %vm2341_vm4, %v2337_v33 }
 0x54f   :  { %2354 = dma.vmem_to_hbm [thread:$0]  %s2350_s27, 64, %s2352_s30, [#allocation3]  }
 0x550   :  { %2612 = dma.done.wait [#allocation3], 64  }
 0x551   :  { %2613 = vsyncadd [#allocation3], 4294967232 }
 0x552   :  { %2359 = vsyncpa [#allocation3], 1 }

</bundles_post_ra>
